<compile_context>
chip_gen: v5e
topology: v5e:2x2
jax: 0.10.0
libtpu: 0.0.40
codegen_flags: <defaults>
</compile_context>

<pallas_src>
import jax
import jax.numpy as jnp
import numpy as np
from jax.experimental import pallas as pl
from jax.experimental.pallas import tpu as pltpu

NUM_CLS = 5
LANE = 128
CLAMP_MIN = 0.005
DICE_EPS = 1e-7
MAX_TILE_ROWS = 512                 # 512 rows x 128 lanes: ~1.3 MiB/pred/step (f32)
N_SPLIT = 2                         # parallel split of spatial reduction (v7x: 2 TCs)
VMEM_LIMIT = 40 * 1024 * 1024       # fits v7x 64 MiB physical VMEM with headroom


def _cdiv(a, b):
    return (a + b - 1) // b


def _choose_tile_rows(nr, max_tile_rows):
    """Tile height: multiple of 32 (int8/bf16/f32 tiling), never larger than nr,
    so a ragged tail shows up as a *partial* last block (supported by Pallas)."""
    assert max_tile_rows % 32 == 0 and max_tile_rows >= 32
    if nr >= max_tile_rows:
        return max_tile_rows
    return max(32, 32 * (nr // 32))


def _make_sums_kernel(num_preds, num_cls, tile_rows, nt_half, nr_valid, need_mask):
    """Accumulate, per (pred, class), the 4 spatial partial sums.

    Ref layout (kernel view):
      lbl_ref     : (T, 128) int8   labels for this (batch, split, spatial tile)
      pred_ref[p] : (C, T, 128)     one prediction tensor's tile (native dtype)
      out_ref     : (1 + 3P, C, 128) f32 resident accumulator
          row 0        : sum_t   (one-hot target count, shared by all preds)
          row 1 + 3p   : sum_o
          row 2 + 3p   : sum_o*t
          row 3 + 3p   : sum_t*log(clamp(o))
    """

    def kernel(lbl_ref, *refs):
        pred_refs = refs[:num_preds]
        out_ref = refs[num_preds]
        h = pl.program_id(1)
        t = pl.program_id(2)

        @pl.when(t == 0)
        def _init():
            out_ref[...] = jnp.zeros_like(out_ref)

        lbl = lbl_ref[...].astype(jnp.int32)                        # (T, 128)
        cls = jax.lax.broadcasted_iota(jnp.int32, (num_cls, 1, 1), 0)
        cls_eq = lbl[None, :, :] == cls                             # (C, T, 128) bool
        # f32 one-hot only built once per tile, for the target count.
        out_ref[0] += jnp.sum(cls_eq.astype(jnp.float32), axis=1)   # sum_t (C, 128)

        if need_mask:
            # Logical (unclamped) block index: rows past nr_valid (partial last
            # block or phantom steps of the split axis) contribute nothing.
            row0 = (h * nt_half + t) * tile_rows
            rows = row0 + jax.lax.broadcasted_iota(jnp.int32, (tile_rows, LANE), 0)
            row_ok = rows < nr_valid                                # (T, 128)
        else:
            row_ok = None

        for p in range(num_preds):
            o = pred_refs[p][...].astype(jnp.float32)               # (C, T, 128)
            if row_ok is not None:
                o = jnp.where(row_ok[None, :, :], o, 0.0)
            ot = jnp.where(cls_eq, o, 0.0)                          # o at label class
            # One log per voxel: sum_c t_c*log(clamp(o_c)) == log(clamp(o_label)).
            # Voxels with label == -1 (padding) have cls_eq all-false, so the
            # bogus log(clamp(0)) is zeroed by the final select.
            o_sel = jnp.sum(ot, axis=0)                             # (T, 128)
            log_sel = jnp.log(jnp.clip(o_sel, CLAMP_MIN, 1.0))      # (T, 128)
            out_ref[1 + 3 * p] += jnp.sum(o, axis=1)                # sum_o
            out_ref[2 + 3 * p] += jnp.sum(ot, axis=1)               # sum_o*t
            out_ref[3 + 3 * p] += jnp.sum(
                jnp.where(cls_eq, log_sel[None, :, :], 0.0), axis=1)

    return kernel


def _partial_sums(labels_t, preds_t, tile_rows, nr_valid, nt_total, nt_half):
    B = labels_t.shape[0]
    P = len(preds_t)
    C = preds_t[0].shape[1]
    S = 1 + 3 * P
    need_mask = (N_SPLIT * nt_half * tile_rows) != nr_valid

    lbl_spec = pl.BlockSpec((None, tile_rows, LANE),
                            lambda b, h, t: (b, h * nt_half + t, 0))
    # Clamp so phantom steps (logical block >= nt_total) re-read the previous
    # block index (no extra DMA: consecutive identical block indices are not
    # re-fetched); their contribution is zeroed in-kernel by the row mask.
    pred_spec = pl.BlockSpec(
        (None, C, tile_rows, LANE),
        lambda b, h, t: (b, 0, jnp.minimum(h * nt_half + t, nt_total - 1), 0))
    out_spec = pl.BlockSpec((None, None, S, C, LANE),
                            lambda b, h, t: (b, h, 0, 0, 0))

    return pl.pallas_call(
        _make_sums_kernel(P, C, tile_rows, nt_half, nr_valid, need_mask),
        grid_spec=pltpu.PrefetchScalarGridSpec(
            num_scalar_prefetch=0,
            grid=(B, N_SPLIT, nt_half),
            in_specs=[lbl_spec] + [pred_spec] * P,
            out_specs=out_spec,
        ),
        out_shape=jax.ShapeDtypeStruct((B, N_SPLIT, S, C, LANE), jnp.float32),
        compiler_params=pltpu.CompilerParams(
            dimension_semantics=("parallel", "parallel", "arbitrary"),
            vmem_limit_bytes=VMEM_LIMIT,
        ),
    )(labels_t, *preds_t)


def rfnet_criterion(output, target, max_tile_rows=MAX_TILE_ROWS):
    """output = (fuse_pred, sep_preds, prm_preds); target int labels (B,1,H,W,Z).

    Call this under jax.jit so the cheap reshape/label-pad prep and the scalar
    epilogue fuse around the single Pallas reduction kernel.
    """
    fuse_pred, sep_preds, prm_preds = output
    preds = [fuse_pred] + list(sep_preds) + list(prm_preds)
    P = len(preds)
    B, C, H, W, Z = preds[0].shape
    assert C == NUM_CLS
    N = H * W * Z

    # Number of 128-lane rows in the flattened spatial axis.  Predictions are
    # only padded when strictly needed to form whole rows (no-op for N % 128 == 0)
    # or to reach the 32-row minimum; the ragged *tile* tail is masked in-kernel.
    nr = max(32, _cdiv(N, LANE))
    elem_pad = nr * LANE - N

    tile_rows = _choose_tile_rows(nr, max_tile_rows)
    nt_total = _cdiv(nr, tile_rows)
    nt_half = _cdiv(nt_total, N_SPLIT)
    total_rows = N_SPLIT * nt_half * tile_rows

    # Labels: int8 (class ids < 128); -1 marks padded voxels -> one-hot all zero.
    labels = target.reshape(B, N).astype(jnp.int8)
    labels = jnp.pad(labels, ((0, 0), (0, total_rows * LANE - N)),
                     constant_values=-1)
    labels_t = labels.reshape(B, total_rows, LANE)

    preds_t = []
    for pr in preds:
        x = pr.reshape(B, C, N)          # native dtype (bf16 ok); cast in-kernel
        if elem_pad:
            # TODO(synk): a sub-128 spatial tail still materializes one padded
            # copy; avoiding it entirely needs manual (pl.ANY) DMA of raw layout.
            x = jnp.pad(x, ((0, 0), (0, 0), (0, elem_pad)))
        preds_t.append(x.reshape(B, C, nr, LANE))

    sums = _partial_sums(labels_t, preds_t, tile_rows, nr, nt_total, nt_half)
    lane = sums.sum(axis=(1, 4))                          # (B, 1+3P, C)

    T = lane[:, 0, :]                                     # (B, C) one-hot counts
    w = 1.0 - T / T.sum(axis=1, keepdims=True)            # (B, C) class weights

    total = jnp.float32(0.0)
    for p in range(P):
        O = lane[:, 1 + 3 * p, :]                         # (B, C) sum pred
        OT = lane[:, 2 + 3 * p, :]                        # (B, C) sum pred*target
        TL = lane[:, 3 + 3 * p, :]                        # (B, C) sum t*log(clamp(o))

        # softmax_weighted_loss: mean over (B,H,W,Z) of sum_c -w_{b,c} t log(clamp(o))
        cross = -(w * TL).sum() / (B * N)
        # dice_loss: sums over batch+spatial per class
        num = OT.sum(axis=0)
        l = O.sum(axis=0)
        r = T.sum(axis=0)
        dice = (2.0 * num / (l + r + DICE_EPS)).sum()
        total = total + cross + (1.0 - dice / NUM_CLS)

    return jnp.reshape(total, (1,))                       # matches torch.zeros(1)


def _reference_loss(fuse, seps, prms, target):
    """Pure-JAX reference mirroring the PyTorch module, for sanity checking."""
    tgt = jnp.stack([(target[:, 0] == i) for i in range(NUM_CLS)],
                    axis=1).astype(jnp.float32)           # (B, 5, H, W, Z)

    def swl(out):
        Ttot = tgt.sum(axis=(1, 2, 3, 4))                 # (B,)
        cl = 0.0
        for i in range(NUM_CLS):
            wi = 1.0 - tgt[:, i].sum(axis=(1, 2, 3)) / Ttot
            cl = cl + (-wi[:, None, None, None] * tgt[:, i]
                       * jnp.log(jnp.clip(out[:, i], CLAMP_MIN, 1.0)))
        return cl.mean()

    def dl(out):
        d = 0.0
        for i in range(NUM_CLS):
            num = jnp.sum(out[:, i] * tgt[:, i])
            l = jnp.sum(out[:, i])
            r = jnp.sum(tgt[:, i])
            d = d + 2.0 * num / (l + r + DICE_EPS)
        return 1.0 - d / NUM_CLS

    total = swl(fuse) + dl(fuse)
    for s in seps:
        total = total + swl(s) + dl(s)
    for p in prms:
        total = total + swl(p) + dl(p)
    return total


if __name__ == "__main__":
    key = jax.random.PRNGKey(0)

    def run_case(B, H, W, Z, dtype, max_tile_rows, k, rtol, atol):
        kf, ks1, ks2, kp1, kp2, kt = jax.random.split(k, 6)

        def make_pred(kk):
            logits = jax.random.normal(kk, (B, NUM_CLS, H, W, Z), dtype=jnp.float32)
            return jax.nn.softmax(logits, axis=1).astype(dtype)

        fuse = make_pred(kf)
        seps = [make_pred(ks1), make_pred(ks2)]
        prms = [make_pred(kp1), make_pred(kp2)]
        tgt = jax.random.randint(kt, (B, 1, H, W, Z), 0, NUM_CLS, dtype=jnp.int32)

        loss_fn = jax.jit(lambda f, s, p, t: rfnet_criterion(
            (f, s, p), t, max_tile_rows=max_tile_rows))
        loss = jax.block_until_ready(loss_fn(fuse, seps, prms, tgt))

        ref = _reference_loss(fuse.astype(jnp.float32),
                              [s.astype(jnp.float32) for s in seps],
                              [p.astype(jnp.float32) for p in prms], tgt)
        ref = jax.block_until_ready(ref)
        np.testing.assert_allclose(np.asarray(loss),
                                   np.asarray(ref).reshape(1),
                                   rtol=rtol, atol=atol)

    k1, k2, k3, k4 = jax.random.split(key, 4)
    # Exact tile fit, f32 preds, phantom second split half (B=2, N=4096).
    run_case(2, 16, 16, 16, jnp.float32, MAX_TILE_ROWS, k1, 1e-4, 1e-5)
    # Ragged tile tail: 40 rows with 32-row tiles -> partial last block + mask.
    run_case(2, 16, 16, 20, jnp.float32, 32, k2, 1e-4, 1e-5)
    # No-mask fast path: 64 rows, 32-row tiles, split covers exactly.
    run_case(2, 16, 16, 32, jnp.float32, 32, k3, 1e-4, 1e-5)
    # bf16 predictions with in-kernel f32 cast, B=1 (both split halves still run).
    run_case(1, 16, 16, 16, jnp.bfloat16, MAX_TILE_ROWS, k4, 1e-3, 1e-4)

    print("KERNEL_OK")
</pallas_src>

<mosaic_0001>
module attributes {stable_mosaic.version = 11 : i64} {
  func.func @kernel(%arg0: i32, %arg1: i32, %arg2: i32, %arg3: memref<1x32x128xi8, #tpu.memory_space<vmem>>, %arg4: memref<1x5x32x128xf32, #tpu.memory_space<vmem>>, %arg5: memref<1x5x32x128xf32, #tpu.memory_space<vmem>>, %arg6: memref<1x5x32x128xf32, #tpu.memory_space<vmem>>, %arg7: memref<1x5x32x128xf32, #tpu.memory_space<vmem>>, %arg8: memref<1x5x32x128xf32, #tpu.memory_space<vmem>>, %arg9: memref<1x1x16x5x128xf32, #tpu.memory_space<vmem>>) attributes {dimension_semantics = [#tpu.dimension_semantics<parallel>, #tpu.dimension_semantics<parallel>, #tpu.dimension_semantics<arbitrary>], iteration_bounds = array<i64: 2, 2, 1>, scalar_prefetch = 0 : i64, scratch_operands = 0 : i64, tpu.core_type = #tpu.core_type<tc>, window_params = [{transform_indices = @transform_0, window_bounds = array<i64: 1, 32, 128>}, {transform_indices = @transform_1, window_bounds = array<i64: 1, 5, 32, 128>}, {transform_indices = @transform_2, window_bounds = array<i64: 1, 5, 32, 128>}, {transform_indices = @transform_3, window_bounds = array<i64: 1, 5, 32, 128>}, {transform_indices = @transform_4, window_bounds = array<i64: 1, 5, 32, 128>}, {transform_indices = @transform_5, window_bounds = array<i64: 1, 5, 32, 128>}, {transform_indices = @transform_6, window_bounds = array<i64: 1, 1, 16, 5, 128>}]} {
    %c0_i32 = arith.constant 0 : i32
    %0 = arith.cmpi eq, %arg2, %c0_i32 : i32
    %1 = arith.extui %0 : i1 to i32
    %c0_i32_0 = arith.constant 0 : i32
    %2 = arith.cmpi ne, %1, %c0_i32_0 : i32
    scf.if %2 {
      %cst_214 = arith.constant 0.000000e+00 : f32
      %233 = vector.broadcast %cst_214 : f32 to vector<16x5x128xf32>
      %c0_215 = arith.constant 0 : index
      %c0_216 = arith.constant 0 : index
      %c0_217 = arith.constant 0 : index
      %c0_218 = arith.constant 0 : index
      %c0_219 = arith.constant 0 : index
      %234 = vector.load %arg9[%c0_215, %c0_216, %c0_217, %c0_218, %c0_219] : memref<1x1x16x5x128xf32, #tpu.memory_space<vmem>>, vector<1x1x16x5x128xf32>
      %235 = vector.shape_cast %234 : vector<1x1x16x5x128xf32> to vector<16x5x128xf32>
      %236 = vector.shape_cast %233 : vector<16x5x128xf32> to vector<1x1x16x5x128xf32>
      tpu.vector_store %arg9[%c0_215, %c0_216, %c0_217, %c0_218, %c0_219], %236 {strides = array<i32>} : memref<1x1x16x5x128xf32, #tpu.memory_space<vmem>>, vector<1x1x16x5x128xf32>,
    } else {
    }
    %c0 = arith.constant 0 : index
    %c0_1 = arith.constant 0 : index
    %c0_2 = arith.constant 0 : index
    %3 = vector.load %arg3[%c0, %c0_1, %c0_2] : memref<1x32x128xi8, #tpu.memory_space<vmem>>, vector<1x32x128xi8>
    %4 = vector.shape_cast %3 : vector<1x32x128xi8> to vector<32x128xi8>
    %5 = arith.extsi %4 : vector<32x128xi8> to vector<32x128xi32>
    %6 = tpu.iota {dimensions = array<i32: 0>} : vector<5x1x1xi32>
    %7 = vector.shape_cast %5 : vector<32x128xi32> to vector<1x32x128xi32>
    %8 = vector.broadcast %7 : vector<1x32x128xi32> to vector<5x32x128xi32>
    %9 = vector.broadcast %6 : vector<5x1x1xi32> to vector<5x32x128xi32>
    %10 = arith.cmpi eq, %8, %9 : vector<5x32x128xi32>
    %c0_3 = arith.constant 0 : index
    %c0_4 = arith.constant 0 : index
    %c0_5 = arith.constant 0 : index
    %c0_6 = arith.constant 0 : index
    %c0_7 = arith.constant 0 : index
    %11 = vector.load %arg9[%c0_3, %c0_4, %c0_5, %c0_6, %c0_7] : memref<1x1x16x5x128xf32, #tpu.memory_space<vmem>>, vector<1x1x1x5x128xf32>
    %12 = vector.shape_cast %11 : vector<1x1x1x5x128xf32> to vector<5x128xf32>
    %13 = arith.extui %10 : vector<5x32x128xi1> to vector<5x32x128xi32>
    %14 = arith.sitofp %13 : vector<5x32x128xi32> to vector<5x32x128xf32>
    %cst = arith.constant dense<0.000000e+00> : vector<5x128xf32>
    %15 = vector.multi_reduction <add>, %14, %cst [1] : vector<5x32x128xf32> to vector<5x128xf32>
    %16 = arith.addf %12, %15 : vector<5x128xf32>
    %c0_8 = arith.constant 0 : index
    %c0_9 = arith.constant 0 : index
    %c0_10 = arith.constant 0 : index
    %c0_11 = arith.constant 0 : index
    %c0_12 = arith.constant 0 : index
    %17 = vector.load %arg9[%c0_8, %c0_9, %c0_10, %c0_11, %c0_12] : memref<1x1x16x5x128xf32, #tpu.memory_space<vmem>>, vector<1x1x1x5x128xf32>
    %18 = vector.shape_cast %17 : vector<1x1x1x5x128xf32> to vector<5x128xf32>
    %19 = vector.shape_cast %16 : vector<5x128xf32> to vector<1x1x1x5x128xf32>
    tpu.vector_store %arg9[%c0_8, %c0_9, %c0_10, %c0_11, %c0_12], %19 {strides = array<i32>} : memref<1x1x16x5x128xf32, #tpu.memory_space<vmem>>, vector<1x1x1x5x128xf32>,
    %c1_i32 = arith.constant 1 : i32
    %20 = arith.muli %arg1, %c1_i32 : i32
    %21 = arith.addi %20, %arg2 : i32
    %c32_i32 = arith.constant 32 : i32
    %22 = arith.muli %21, %c32_i32 : i32
    %23 = tpu.iota {dimensions = array<i32: 0>} : vector<32x128xi32>
    %24 = vector.broadcast %22 : i32 to vector<32x128xi32>
    %25 = arith.addi %24, %23 : vector<32x128xi32>
    %c32_i32_13 = arith.constant 32 : i32
    %26 = vector.broadcast %c32_i32_13 : i32 to vector<32x128xi32>
    %27 = arith.cmpi slt, %25, %26 : vector<32x128xi32>
    %c0_14 = arith.constant 0 : index
    %c0_15 = arith.constant 0 : index
    %c0_16 = arith.constant 0 : index
    %c0_17 = arith.constant 0 : index
    %28 = vector.load %arg4[%c0_14, %c0_15, %c0_16, %c0_17] : memref<1x5x32x128xf32, #tpu.memory_space<vmem>>, vector<1x5x32x128xf32>
    %29 = vector.shape_cast %28 : vector<1x5x32x128xf32> to vector<5x32x128xf32>
    %30 = vector.shape_cast %27 : vector<32x128xi1> to vector<1x32x128xi1>
    %cst_18 = arith.constant 0.000000e+00 : f32
    %31 = vector.shape_cast %30 : vector<1x32x128xi1> to vector<1x32x128xi1>
    %32 = vector.broadcast %31 : vector<1x32x128xi1> to vector<5x32x128xi1>
    %33 = vector.broadcast %cst_18 : f32 to vector<5x32x128xf32>
    %34 = arith.select %32, %29, %33 : vector<5x32x128xi1>, vector<5x32x128xf32>
    %cst_19 = arith.constant 0.000000e+00 : f32
    %35 = vector.broadcast %cst_19 : f32 to vector<5x32x128xf32>
    %36 = arith.select %10, %34, %35 : vector<5x32x128xi1>, vector<5x32x128xf32>
    %cst_20 = arith.constant dense<0.000000e+00> : vector<32x128xf32>
    %37 = vector.multi_reduction <add>, %36, %cst_20 [0] : vector<5x32x128xf32> to vector<32x128xf32>
    %cst_21 = arith.constant 5.000000e-03 : f32
    %cst_22 = arith.constant 1.000000e+00 : f32
    %38 = vector.broadcast %cst_21 : f32 to vector<32x128xf32>
    %39 = arith.maximumf %38, %37 : vector<32x128xf32>
    %40 = vector.broadcast %cst_22 : f32 to vector<32x128xf32>
    %41 = arith.minimumf %40, %39 : vector<32x128xf32>
    %42 = math.log %41 : vector<32x128xf32>
    %c0_23 = arith.constant 0 : index
    %c0_24 = arith.constant 0 : index
    %c1 = arith.constant 1 : index
    %c0_25 = arith.constant 0 : index
    %c0_26 = arith.constant 0 : index
    %43 = vector.load %arg9[%c0_23, %c0_24, %c1, %c0_25, %c0_26] : memref<1x1x16x5x128xf32, #tpu.memory_space<vmem>>, vector<1x1x1x5x128xf32>
    %44 = vector.shape_cast %43 : vector<1x1x1x5x128xf32> to vector<5x128xf32>
    %cst_27 = arith.constant dense<0.000000e+00> : vector<5x128xf32>
    %45 = vector.multi_reduction <add>, %34, %cst_27 [1] : vector<5x32x128xf32> to vector<5x128xf32>
    %46 = arith.addf %44, %45 : vector<5x128xf32>
    %c0_28 = arith.constant 0 : index
    %c0_29 = arith.constant 0 : index
    %c1_30 = arith.constant 1 : index
    %c0_31 = arith.constant 0 : index
    %c0_32 = arith.constant 0 : index
    %47 = vector.load %arg9[%c0_28, %c0_29, %c1_30, %c0_31, %c0_32] : memref<1x1x16x5x128xf32, #tpu.memory_space<vmem>>, vector<1x1x1x5x128xf32>
    %48 = vector.shape_cast %47 : vector<1x1x1x5x128xf32> to vector<5x128xf32>
    %49 = vector.shape_cast %46 : vector<5x128xf32> to vector<1x1x1x5x128xf32>
    tpu.vector_store %arg9[%c0_28, %c0_29, %c1_30, %c0_31, %c0_32], %49 {strides = array<i32>} : memref<1x1x16x5x128xf32, #tpu.memory_space<vmem>>, vector<1x1x1x5x128xf32>,
    %c0_33 = arith.constant 0 : index
    %c0_34 = arith.constant 0 : index
    %c2 = arith.constant 2 : index
    %c0_35 = arith.constant 0 : index
    %c0_36 = arith.constant 0 : index
    %50 = vector.load %arg9[%c0_33, %c0_34, %c2, %c0_35, %c0_36] : memref<1x1x16x5x128xf32, #tpu.memory_space<vmem>>, vector<1x1x1x5x128xf32>
    %51 = vector.shape_cast %50 : vector<1x1x1x5x128xf32> to vector<5x128xf32>
    %cst_37 = arith.constant dense<0.000000e+00> : vector<5x128xf32>
    %52 = vector.multi_reduction <add>, %36, %cst_37 [1] : vector<5x32x128xf32> to vector<5x128xf32>
    %53 = arith.addf %51, %52 : vector<5x128xf32>
    %c0_38 = arith.constant 0 : index
    %c0_39 = arith.constant 0 : index
    %c2_40 = arith.constant 2 : index
    %c0_41 = arith.constant 0 : index
    %c0_42 = arith.constant 0 : index
    %54 = vector.load %arg9[%c0_38, %c0_39, %c2_40, %c0_41, %c0_42] : memref<1x1x16x5x128xf32, #tpu.memory_space<vmem>>, vector<1x1x1x5x128xf32>
    %55 = vector.shape_cast %54 : vector<1x1x1x5x128xf32> to vector<5x128xf32>
    %56 = vector.shape_cast %53 : vector<5x128xf32> to vector<1x1x1x5x128xf32>
    tpu.vector_store %arg9[%c0_38, %c0_39, %c2_40, %c0_41, %c0_42], %56 {strides = array<i32>} : memref<1x1x16x5x128xf32, #tpu.memory_space<vmem>>, vector<1x1x1x5x128xf32>,
    %c0_43 = arith.constant 0 : index
    %c0_44 = arith.constant 0 : index
    %c3 = arith.constant 3 : index
    %c0_45 = arith.constant 0 : index
    %c0_46 = arith.constant 0 : index
    %57 = vector.load %arg9[%c0_43, %c0_44, %c3, %c0_45, %c0_46] : memref<1x1x16x5x128xf32, #tpu.memory_space<vmem>>, vector<1x1x1x5x128xf32>
    %58 = vector.shape_cast %57 : vector<1x1x1x5x128xf32> to vector<5x128xf32>
    %59 = vector.shape_cast %42 : vector<32x128xf32> to vector<1x32x128xf32>
    %cst_47 = arith.constant 0.000000e+00 : f32
    %60 = vector.shape_cast %59 : vector<1x32x128xf32> to vector<1x32x128xf32>
    %61 = vector.broadcast %60 : vector<1x32x128xf32> to vector<5x32x128xf32>
    %62 = vector.broadcast %cst_47 : f32 to vector<5x32x128xf32>
    %63 = arith.select %10, %61, %62 : vector<5x32x128xi1>, vector<5x32x128xf32>
    %cst_48 = arith.constant dense<0.000000e+00> : vector<5x128xf32>
    %64 = vector.multi_reduction <add>, %63, %cst_48 [1] : vector<5x32x128xf32> to vector<5x128xf32>
    %65 = arith.addf %58, %64 : vector<5x128xf32>
    %c0_49 = arith.constant 0 : index
    %c0_50 = arith.constant 0 : index
    %c3_51 = arith.constant 3 : index
    %c0_52 = arith.constant 0 : index
    %c0_53 = arith.constant 0 : index
    %66 = vector.load %arg9[%c0_49, %c0_50, %c3_51, %c0_52, %c0_53] : memref<1x1x16x5x128xf32, #tpu.memory_space<vmem>>, vector<1x1x1x5x128xf32>
    %67 = vector.shape_cast %66 : vector<1x1x1x5x128xf32> to vector<5x128xf32>
    %68 = vector.shape_cast %65 : vector<5x128xf32> to vector<1x1x1x5x128xf32>
    tpu.vector_store %arg9[%c0_49, %c0_50, %c3_51, %c0_52, %c0_53], %68 {strides = array<i32>} : memref<1x1x16x5x128xf32, #tpu.memory_space<vmem>>, vector<1x1x1x5x128xf32>,
    %c0_54 = arith.constant 0 : index
    %c0_55 = arith.constant 0 : index
    %c0_56 = arith.constant 0 : index
    %c0_57 = arith.constant 0 : index
    %69 = vector.load %arg5[%c0_54, %c0_55, %c0_56, %c0_57] : memref<1x5x32x128xf32, #tpu.memory_space<vmem>>, vector<1x5x32x128xf32>
    %70 = vector.shape_cast %69 : vector<1x5x32x128xf32> to vector<5x32x128xf32>
    %71 = vector.shape_cast %27 : vector<32x128xi1> to vector<1x32x128xi1>
    %cst_58 = arith.constant 0.000000e+00 : f32
    %72 = vector.shape_cast %71 : vector<1x32x128xi1> to vector<1x32x128xi1>
    %73 = vector.broadcast %72 : vector<1x32x128xi1> to vector<5x32x128xi1>
    %74 = vector.broadcast %cst_58 : f32 to vector<5x32x128xf32>
    %75 = arith.select %73, %70, %74 : vector<5x32x128xi1>, vector<5x32x128xf32>
    %cst_59 = arith.constant 0.000000e+00 : f32
    %76 = vector.broadcast %cst_59 : f32 to vector<5x32x128xf32>
    %77 = arith.select %10, %75, %76 : vector<5x32x128xi1>, vector<5x32x128xf32>
    %cst_60 = arith.constant dense<0.000000e+00> : vector<32x128xf32>
    %78 = vector.multi_reduction <add>, %77, %cst_60 [0] : vector<5x32x128xf32> to vector<32x128xf32>
    %cst_61 = arith.constant 5.000000e-03 : f32
    %cst_62 = arith.constant 1.000000e+00 : f32
    %79 = vector.broadcast %cst_61 : f32 to vector<32x128xf32>
    %80 = arith.maximumf %79, %78 : vector<32x128xf32>
    %81 = vector.broadcast %cst_62 : f32 to vector<32x128xf32>
    %82 = arith.minimumf %81, %80 : vector<32x128xf32>
    %83 = math.log %82 : vector<32x128xf32>
    %c0_63 = arith.constant 0 : index
    %c0_64 = arith.constant 0 : index
    %c4 = arith.constant 4 : index
    %c0_65 = arith.constant 0 : index
    %c0_66 = arith.constant 0 : index
    %84 = vector.load %arg9[%c0_63, %c0_64, %c4, %c0_65, %c0_66] : memref<1x1x16x5x128xf32, #tpu.memory_space<vmem>>, vector<1x1x1x5x128xf32>
    %85 = vector.shape_cast %84 : vector<1x1x1x5x128xf32> to vector<5x128xf32>
    %cst_67 = arith.constant dense<0.000000e+00> : vector<5x128xf32>
    %86 = vector.multi_reduction <add>, %75, %cst_67 [1] : vector<5x32x128xf32> to vector<5x128xf32>
    %87 = arith.addf %85, %86 : vector<5x128xf32>
    %c0_68 = arith.constant 0 : index
    %c0_69 = arith.constant 0 : index
    %c4_70 = arith.constant 4 : index
    %c0_71 = arith.constant 0 : index
    %c0_72 = arith.constant 0 : index
    %88 = vector.load %arg9[%c0_68, %c0_69, %c4_70, %c0_71, %c0_72] : memref<1x1x16x5x128xf32, #tpu.memory_space<vmem>>, vector<1x1x1x5x128xf32>
    %89 = vector.shape_cast %88 : vector<1x1x1x5x128xf32> to vector<5x128xf32>
    %90 = vector.shape_cast %87 : vector<5x128xf32> to vector<1x1x1x5x128xf32>
    tpu.vector_store %arg9[%c0_68, %c0_69, %c4_70, %c0_71, %c0_72], %90 {strides = array<i32>} : memref<1x1x16x5x128xf32, #tpu.memory_space<vmem>>, vector<1x1x1x5x128xf32>,
    %c0_73 = arith.constant 0 : index
    %c0_74 = arith.constant 0 : index
    %c5 = arith.constant 5 : index
    %c0_75 = arith.constant 0 : index
    %c0_76 = arith.constant 0 : index
    %91 = vector.load %arg9[%c0_73, %c0_74, %c5, %c0_75, %c0_76] : memref<1x1x16x5x128xf32, #tpu.memory_space<vmem>>, vector<1x1x1x5x128xf32>
    %92 = vector.shape_cast %91 : vector<1x1x1x5x128xf32> to vector<5x128xf32>
    %cst_77 = arith.constant dense<0.000000e+00> : vector<5x128xf32>
    %93 = vector.multi_reduction <add>, %77, %cst_77 [1] : vector<5x32x128xf32> to vector<5x128xf32>
    %94 = arith.addf %92, %93 : vector<5x128xf32>
    %c0_78 = arith.constant 0 : index
    %c0_79 = arith.constant 0 : index
    %c5_80 = arith.constant 5 : index
    %c0_81 = arith.constant 0 : index
    %c0_82 = arith.constant 0 : index
    %95 = vector.load %arg9[%c0_78, %c0_79, %c5_80, %c0_81, %c0_82] : memref<1x1x16x5x128xf32, #tpu.memory_space<vmem>>, vector<1x1x1x5x128xf32>
    %96 = vector.shape_cast %95 : vector<1x1x1x5x128xf32> to vector<5x128xf32>
    %97 = vector.shape_cast %94 : vector<5x128xf32> to vector<1x1x1x5x128xf32>
    tpu.vector_store %arg9[%c0_78, %c0_79, %c5_80, %c0_81, %c0_82], %97 {strides = array<i32>} : memref<1x1x16x5x128xf32, #tpu.memory_space<vmem>>, vector<1x1x1x5x128xf32>,
    %c0_83 = arith.constant 0 : index
    %c0_84 = arith.constant 0 : index
    %c6 = arith.constant 6 : index
    %c0_85 = arith.constant 0 : index
    %c0_86 = arith.constant 0 : index
    %98 = vector.load %arg9[%c0_83, %c0_84, %c6, %c0_85, %c0_86] : memref<1x1x16x5x128xf32, #tpu.memory_space<vmem>>, vector<1x1x1x5x128xf32>
    %99 = vector.shape_cast %98 : vector<1x1x1x5x128xf32> to vector<5x128xf32>
    %100 = vector.shape_cast %83 : vector<32x128xf32> to vector<1x32x128xf32>
    %cst_87 = arith.constant 0.000000e+00 : f32
    %101 = vector.shape_cast %100 : vector<1x32x128xf32> to vector<1x32x128xf32>
    %102 = vector.broadcast %101 : vector<1x32x128xf32> to vector<5x32x128xf32>
    %103 = vector.broadcast %cst_87 : f32 to vector<5x32x128xf32>
    %104 = arith.select %10, %102, %103 : vector<5x32x128xi1>, vector<5x32x128xf32>
    %cst_88 = arith.constant dense<0.000000e+00> : vector<5x128xf32>
    %105 = vector.multi_reduction <add>, %104, %cst_88 [1] : vector<5x32x128xf32> to vector<5x128xf32>
    %106 = arith.addf %99, %105 : vector<5x128xf32>
    %c0_89 = arith.constant 0 : index
    %c0_90 = arith.constant 0 : index
    %c6_91 = arith.constant 6 : index
    %c0_92 = arith.constant 0 : index
    %c0_93 = arith.constant 0 : index
    %107 = vector.load %arg9[%c0_89, %c0_90, %c6_91, %c0_92, %c0_93] : memref<1x1x16x5x128xf32, #tpu.memory_space<vmem>>, vector<1x1x1x5x128xf32>
    %108 = vector.shape_cast %107 : vector<1x1x1x5x128xf32> to vector<5x128xf32>
    %109 = vector.shape_cast %106 : vector<5x128xf32> to vector<1x1x1x5x128xf32>
    tpu.vector_store %arg9[%c0_89, %c0_90, %c6_91, %c0_92, %c0_93], %109 {strides = array<i32>} : memref<1x1x16x5x128xf32, #tpu.memory_space<vmem>>, vector<1x1x1x5x128xf32>,
    %c0_94 = arith.constant 0 : index
    %c0_95 = arith.constant 0 : index
    %c0_96 = arith.constant 0 : index
    %c0_97 = arith.constant 0 : index
    %110 = vector.load %arg6[%c0_94, %c0_95, %c0_96, %c0_97] : memref<1x5x32x128xf32, #tpu.memory_space<vmem>>, vector<1x5x32x128xf32>
    %111 = vector.shape_cast %110 : vector<1x5x32x128xf32> to vector<5x32x128xf32>
    %112 = vector.shape_cast %27 : vector<32x128xi1> to vector<1x32x128xi1>
    %cst_98 = arith.constant 0.000000e+00 : f32
    %113 = vector.shape_cast %112 : vector<1x32x128xi1> to vector<1x32x128xi1>
    %114 = vector.broadcast %113 : vector<1x32x128xi1> to vector<5x32x128xi1>
    %115 = vector.broadcast %cst_98 : f32 to vector<5x32x128xf32>
    %116 = arith.select %114, %111, %115 : vector<5x32x128xi1>, vector<5x32x128xf32>
    %cst_99 = arith.constant 0.000000e+00 : f32
    %117 = vector.broadcast %cst_99 : f32 to vector<5x32x128xf32>
    %118 = arith.select %10, %116, %117 : vector<5x32x128xi1>, vector<5x32x128xf32>
    %cst_100 = arith.constant dense<0.000000e+00> : vector<32x128xf32>
    %119 = vector.multi_reduction <add>, %118, %cst_100 [0] : vector<5x32x128xf32> to vector<32x128xf32>
    %cst_101 = arith.constant 5.000000e-03 : f32
    %cst_102 = arith.constant 1.000000e+00 : f32
    %120 = vector.broadcast %cst_101 : f32 to vector<32x128xf32>
    %121 = arith.maximumf %120, %119 : vector<32x128xf32>
    %122 = vector.broadcast %cst_102 : f32 to vector<32x128xf32>
    %123 = arith.minimumf %122, %121 : vector<32x128xf32>
    %124 = math.log %123 : vector<32x128xf32>
    %c0_103 = arith.constant 0 : index
    %c0_104 = arith.constant 0 : index
    %c7 = arith.constant 7 : index
    %c0_105 = arith.constant 0 : index
    %c0_106 = arith.constant 0 : index
    %125 = vector.load %arg9[%c0_103, %c0_104, %c7, %c0_105, %c0_106] : memref<1x1x16x5x128xf32, #tpu.memory_space<vmem>>, vector<1x1x1x5x128xf32>
    %126 = vector.shape_cast %125 : vector<1x1x1x5x128xf32> to vector<5x128xf32>
    %cst_107 = arith.constant dense<0.000000e+00> : vector<5x128xf32>
    %127 = vector.multi_reduction <add>, %116, %cst_107 [1] : vector<5x32x128xf32> to vector<5x128xf32>
    %128 = arith.addf %126, %127 : vector<5x128xf32>
    %c0_108 = arith.constant 0 : index
    %c0_109 = arith.constant 0 : index
    %c7_110 = arith.constant 7 : index
    %c0_111 = arith.constant 0 : index
    %c0_112 = arith.constant 0 : index
    %129 = vector.load %arg9[%c0_108, %c0_109, %c7_110, %c0_111, %c0_112] : memref<1x1x16x5x128xf32, #tpu.memory_space<vmem>>, vector<1x1x1x5x128xf32>
    %130 = vector.shape_cast %129 : vector<1x1x1x5x128xf32> to vector<5x128xf32>
    %131 = vector.shape_cast %128 : vector<5x128xf32> to vector<1x1x1x5x128xf32>
    tpu.vector_store %arg9[%c0_108, %c0_109, %c7_110, %c0_111, %c0_112], %131 {strides = array<i32>} : memref<1x1x16x5x128xf32, #tpu.memory_space<vmem>>, vector<1x1x1x5x128xf32>,
    %c0_113 = arith.constant 0 : index
    %c0_114 = arith.constant 0 : index
    %c8 = arith.constant 8 : index
    %c0_115 = arith.constant 0 : index
    %c0_116 = arith.constant 0 : index
    %132 = vector.load %arg9[%c0_113, %c0_114, %c8, %c0_115, %c0_116] : memref<1x1x16x5x128xf32, #tpu.memory_space<vmem>>, vector<1x1x1x5x128xf32>
    %133 = vector.shape_cast %132 : vector<1x1x1x5x128xf32> to vector<5x128xf32>
    %cst_117 = arith.constant dense<0.000000e+00> : vector<5x128xf32>
    %134 = vector.multi_reduction <add>, %118, %cst_117 [1] : vector<5x32x128xf32> to vector<5x128xf32>
    %135 = arith.addf %133, %134 : vector<5x128xf32>
    %c0_118 = arith.constant 0 : index
    %c0_119 = arith.constant 0 : index
    %c8_120 = arith.constant 8 : index
    %c0_121 = arith.constant 0 : index
    %c0_122 = arith.constant 0 : index
    %136 = vector.load %arg9[%c0_118, %c0_119, %c8_120, %c0_121, %c0_122] : memref<1x1x16x5x128xf32, #tpu.memory_space<vmem>>, vector<1x1x1x5x128xf32>
    %137 = vector.shape_cast %136 : vector<1x1x1x5x128xf32> to vector<5x128xf32>
    %138 = vector.shape_cast %135 : vector<5x128xf32> to vector<1x1x1x5x128xf32>
    tpu.vector_store %arg9[%c0_118, %c0_119, %c8_120, %c0_121, %c0_122], %138 {strides = array<i32>} : memref<1x1x16x5x128xf32, #tpu.memory_space<vmem>>, vector<1x1x1x5x128xf32>,
    %c0_123 = arith.constant 0 : index
    %c0_124 = arith.constant 0 : index
    %c9 = arith.constant 9 : index
    %c0_125 = arith.constant 0 : index
    %c0_126 = arith.constant 0 : index
    %139 = vector.load %arg9[%c0_123, %c0_124, %c9, %c0_125, %c0_126] : memref<1x1x16x5x128xf32, #tpu.memory_space<vmem>>, vector<1x1x1x5x128xf32>
    %140 = vector.shape_cast %139 : vector<1x1x1x5x128xf32> to vector<5x128xf32>
    %141 = vector.shape_cast %124 : vector<32x128xf32> to vector<1x32x128xf32>
    %cst_127 = arith.constant 0.000000e+00 : f32
    %142 = vector.shape_cast %141 : vector<1x32x128xf32> to vector<1x32x128xf32>
    %143 = vector.broadcast %142 : vector<1x32x128xf32> to vector<5x32x128xf32>
    %144 = vector.broadcast %cst_127 : f32 to vector<5x32x128xf32>
    %145 = arith.select %10, %143, %144 : vector<5x32x128xi1>, vector<5x32x128xf32>
    %cst_128 = arith.constant dense<0.000000e+00> : vector<5x128xf32>
    %146 = vector.multi_reduction <add>, %145, %cst_128 [1] : vector<5x32x128xf32> to vector<5x128xf32>
    %147 = arith.addf %140, %146 : vector<5x128xf32>
    %c0_129 = arith.constant 0 : index
    %c0_130 = arith.constant 0 : index
    %c9_131 = arith.constant 9 : index
    %c0_132 = arith.constant 0 : index
    %c0_133 = arith.constant 0 : index
    %148 = vector.load %arg9[%c0_129, %c0_130, %c9_131, %c0_132, %c0_133] : memref<1x1x16x5x128xf32, #tpu.memory_space<vmem>>, vector<1x1x1x5x128xf32>
    %149 = vector.shape_cast %148 : vector<1x1x1x5x128xf32> to vector<5x128xf32>
    %150 = vector.shape_cast %147 : vector<5x128xf32> to vector<1x1x1x5x128xf32>
    tpu.vector_store %arg9[%c0_129, %c0_130, %c9_131, %c0_132, %c0_133], %150 {strides = array<i32>} : memref<1x1x16x5x128xf32, #tpu.memory_space<vmem>>, vector<1x1x1x5x128xf32>,
    %c0_134 = arith.constant 0 : index
    %c0_135 = arith.constant 0 : index
    %c0_136 = arith.constant 0 : index
    %c0_137 = arith.constant 0 : index
    %151 = vector.load %arg7[%c0_134, %c0_135, %c0_136, %c0_137] : memref<1x5x32x128xf32, #tpu.memory_space<vmem>>, vector<1x5x32x128xf32>
    %152 = vector.shape_cast %151 : vector<1x5x32x128xf32> to vector<5x32x128xf32>
    %153 = vector.shape_cast %27 : vector<32x128xi1> to vector<1x32x128xi1>
    %cst_138 = arith.constant 0.000000e+00 : f32
    %154 = vector.shape_cast %153 : vector<1x32x128xi1> to vector<1x32x128xi1>
    %155 = vector.broadcast %154 : vector<1x32x128xi1> to vector<5x32x128xi1>
    %156 = vector.broadcast %cst_138 : f32 to vector<5x32x128xf32>
    %157 = arith.select %155, %152, %156 : vector<5x32x128xi1>, vector<5x32x128xf32>
    %cst_139 = arith.constant 0.000000e+00 : f32
    %158 = vector.broadcast %cst_139 : f32 to vector<5x32x128xf32>
    %159 = arith.select %10, %157, %158 : vector<5x32x128xi1>, vector<5x32x128xf32>
    %cst_140 = arith.constant dense<0.000000e+00> : vector<32x128xf32>
    %160 = vector.multi_reduction <add>, %159, %cst_140 [0] : vector<5x32x128xf32> to vector<32x128xf32>
    %cst_141 = arith.constant 5.000000e-03 : f32
    %cst_142 = arith.constant 1.000000e+00 : f32
    %161 = vector.broadcast %cst_141 : f32 to vector<32x128xf32>
    %162 = arith.maximumf %161, %160 : vector<32x128xf32>
    %163 = vector.broadcast %cst_142 : f32 to vector<32x128xf32>
    %164 = arith.minimumf %163, %162 : vector<32x128xf32>
    %165 = math.log %164 : vector<32x128xf32>
    %c0_143 = arith.constant 0 : index
    %c0_144 = arith.constant 0 : index
    %c10 = arith.constant 10 : index
    %c0_145 = arith.constant 0 : index
    %c0_146 = arith.constant 0 : index
    %166 = vector.load %arg9[%c0_143, %c0_144, %c10, %c0_145, %c0_146] : memref<1x1x16x5x128xf32, #tpu.memory_space<vmem>>, vector<1x1x1x5x128xf32>
    %167 = vector.shape_cast %166 : vector<1x1x1x5x128xf32> to vector<5x128xf32>
    %cst_147 = arith.constant dense<0.000000e+00> : vector<5x128xf32>
    %168 = vector.multi_reduction <add>, %157, %cst_147 [1] : vector<5x32x128xf32> to vector<5x128xf32>
    %169 = arith.addf %167, %168 : vector<5x128xf32>
    %c0_148 = arith.constant 0 : index
    %c0_149 = arith.constant 0 : index
    %c10_150 = arith.constant 10 : index
    %c0_151 = arith.constant 0 : index
    %c0_152 = arith.constant 0 : index
    %170 = vector.load %arg9[%c0_148, %c0_149, %c10_150, %c0_151, %c0_152] : memref<1x1x16x5x128xf32, #tpu.memory_space<vmem>>, vector<1x1x1x5x128xf32>
    %171 = vector.shape_cast %170 : vector<1x1x1x5x128xf32> to vector<5x128xf32>
    %172 = vector.shape_cast %169 : vector<5x128xf32> to vector<1x1x1x5x128xf32>
    tpu.vector_store %arg9[%c0_148, %c0_149, %c10_150, %c0_151, %c0_152], %172 {strides = array<i32>} : memref<1x1x16x5x128xf32, #tpu.memory_space<vmem>>, vector<1x1x1x5x128xf32>,
    %c0_153 = arith.constant 0 : index
    %c0_154 = arith.constant 0 : index
    %c11 = arith.constant 11 : index
    %c0_155 = arith.constant 0 : index
    %c0_156 = arith.constant 0 : index
    %173 = vector.load %arg9[%c0_153, %c0_154, %c11, %c0_155, %c0_156] : memref<1x1x16x5x128xf32, #tpu.memory_space<vmem>>, vector<1x1x1x5x128xf32>
    %174 = vector.shape_cast %173 : vector<1x1x1x5x128xf32> to vector<5x128xf32>
    %cst_157 = arith.constant dense<0.000000e+00> : vector<5x128xf32>
    %175 = vector.multi_reduction <add>, %159, %cst_157 [1] : vector<5x32x128xf32> to vector<5x128xf32>
    %176 = arith.addf %174, %175 : vector<5x128xf32>
    %c0_158 = arith.constant 0 : index
    %c0_159 = arith.constant 0 : index
    %c11_160 = arith.constant 11 : index
    %c0_161 = arith.constant 0 : index
    %c0_162 = arith.constant 0 : index
    %177 = vector.load %arg9[%c0_158, %c0_159, %c11_160, %c0_161, %c0_162] : memref<1x1x16x5x128xf32, #tpu.memory_space<vmem>>, vector<1x1x1x5x128xf32>
    %178 = vector.shape_cast %177 : vector<1x1x1x5x128xf32> to vector<5x128xf32>
    %179 = vector.shape_cast %176 : vector<5x128xf32> to vector<1x1x1x5x128xf32>
    tpu.vector_store %arg9[%c0_158, %c0_159, %c11_160, %c0_161, %c0_162], %179 {strides = array<i32>} : memref<1x1x16x5x128xf32, #tpu.memory_space<vmem>>, vector<1x1x1x5x128xf32>,
    %c0_163 = arith.constant 0 : index
    %c0_164 = arith.constant 0 : index
    %c12 = arith.constant 12 : index
    %c0_165 = arith.constant 0 : index
    %c0_166 = arith.constant 0 : index
    %180 = vector.load %arg9[%c0_163, %c0_164, %c12, %c0_165, %c0_166] : memref<1x1x16x5x128xf32, #tpu.memory_space<vmem>>, vector<1x1x1x5x128xf32>
    %181 = vector.shape_cast %180 : vector<1x1x1x5x128xf32> to vector<5x128xf32>
    %182 = vector.shape_cast %165 : vector<32x128xf32> to vector<1x32x128xf32>
    %cst_167 = arith.constant 0.000000e+00 : f32
    %183 = vector.shape_cast %182 : vector<1x32x128xf32> to vector<1x32x128xf32>
    %184 = vector.broadcast %183 : vector<1x32x128xf32> to vector<5x32x128xf32>
    %185 = vector.broadcast %cst_167 : f32 to vector<5x32x128xf32>
    %186 = arith.select %10, %184, %185 : vector<5x32x128xi1>, vector<5x32x128xf32>
    %cst_168 = arith.constant dense<0.000000e+00> : vector<5x128xf32>
    %187 = vector.multi_reduction <add>, %186, %cst_168 [1] : vector<5x32x128xf32> to vector<5x128xf32>
    %188 = arith.addf %181, %187 : vector<5x128xf32>
    %c0_169 = arith.constant 0 : index
    %c0_170 = arith.constant 0 : index
    %c12_171 = arith.constant 12 : index
    %c0_172 = arith.constant 0 : index
    %c0_173 = arith.constant 0 : index
    %189 = vector.load %arg9[%c0_169, %c0_170, %c12_171, %c0_172, %c0_173] : memref<1x1x16x5x128xf32, #tpu.memory_space<vmem>>, vector<1x1x1x5x128xf32>
    %190 = vector.shape_cast %189 : vector<1x1x1x5x128xf32> to vector<5x128xf32>
    %191 = vector.shape_cast %188 : vector<5x128xf32> to vector<1x1x1x5x128xf32>
    tpu.vector_store %arg9[%c0_169, %c0_170, %c12_171, %c0_172, %c0_173], %191 {strides = array<i32>} : memref<1x1x16x5x128xf32, #tpu.memory_space<vmem>>, vector<1x1x1x5x128xf32>,
    %c0_174 = arith.constant 0 : index
    %c0_175 = arith.constant 0 : index
    %c0_176 = arith.constant 0 : index
    %c0_177 = arith.constant 0 : index
    %192 = vector.load %arg8[%c0_174, %c0_175, %c0_176, %c0_177] : memref<1x5x32x128xf32, #tpu.memory_space<vmem>>, vector<1x5x32x128xf32>
    %193 = vector.shape_cast %192 : vector<1x5x32x128xf32> to vector<5x32x128xf32>
    %194 = vector.shape_cast %27 : vector<32x128xi1> to vector<1x32x128xi1>
    %cst_178 = arith.constant 0.000000e+00 : f32
    %195 = vector.shape_cast %194 : vector<1x32x128xi1> to vector<1x32x128xi1>
    %196 = vector.broadcast %195 : vector<1x32x128xi1> to vector<5x32x128xi1>
    %197 = vector.broadcast %cst_178 : f32 to vector<5x32x128xf32>
    %198 = arith.select %196, %193, %197 : vector<5x32x128xi1>, vector<5x32x128xf32>
    %cst_179 = arith.constant 0.000000e+00 : f32
    %199 = vector.broadcast %cst_179 : f32 to vector<5x32x128xf32>
    %200 = arith.select %10, %198, %199 : vector<5x32x128xi1>, vector<5x32x128xf32>
    %cst_180 = arith.constant dense<0.000000e+00> : vector<32x128xf32>
    %201 = vector.multi_reduction <add>, %200, %cst_180 [0] : vector<5x32x128xf32> to vector<32x128xf32>
    %cst_181 = arith.constant 5.000000e-03 : f32
    %cst_182 = arith.constant 1.000000e+00 : f32
    %202 = vector.broadcast %cst_181 : f32 to vector<32x128xf32>
    %203 = arith.maximumf %202, %201 : vector<32x128xf32>
    %204 = vector.broadcast %cst_182 : f32 to vector<32x128xf32>
    %205 = arith.minimumf %204, %203 : vector<32x128xf32>
    %206 = math.log %205 : vector<32x128xf32>
    %c0_183 = arith.constant 0 : index
    %c0_184 = arith.constant 0 : index
    %c13 = arith.constant 13 : index
    %c0_185 = arith.constant 0 : index
    %c0_186 = arith.constant 0 : index
    %207 = vector.load %arg9[%c0_183, %c0_184, %c13, %c0_185, %c0_186] : memref<1x1x16x5x128xf32, #tpu.memory_space<vmem>>, vector<1x1x1x5x128xf32>
    %208 = vector.shape_cast %207 : vector<1x1x1x5x128xf32> to vector<5x128xf32>
    %cst_187 = arith.constant dense<0.000000e+00> : vector<5x128xf32>
    %209 = vector.multi_reduction <add>, %198, %cst_187 [1] : vector<5x32x128xf32> to vector<5x128xf32>
    %210 = arith.addf %208, %209 : vector<5x128xf32>
    %c0_188 = arith.constant 0 : index
    %c0_189 = arith.constant 0 : index
    %c13_190 = arith.constant 13 : index
    %c0_191 = arith.constant 0 : index
    %c0_192 = arith.constant 0 : index
    %211 = vector.load %arg9[%c0_188, %c0_189, %c13_190, %c0_191, %c0_192] : memref<1x1x16x5x128xf32, #tpu.memory_space<vmem>>, vector<1x1x1x5x128xf32>
    %212 = vector.shape_cast %211 : vector<1x1x1x5x128xf32> to vector<5x128xf32>
    %213 = vector.shape_cast %210 : vector<5x128xf32> to vector<1x1x1x5x128xf32>
    tpu.vector_store %arg9[%c0_188, %c0_189, %c13_190, %c0_191, %c0_192], %213 {strides = array<i32>} : memref<1x1x16x5x128xf32, #tpu.memory_space<vmem>>, vector<1x1x1x5x128xf32>,
    %c0_193 = arith.constant 0 : index
    %c0_194 = arith.constant 0 : index
    %c14 = arith.constant 14 : index
    %c0_195 = arith.constant 0 : index
    %c0_196 = arith.constant 0 : index
    %214 = vector.load %arg9[%c0_193, %c0_194, %c14, %c0_195, %c0_196] : memref<1x1x16x5x128xf32, #tpu.memory_space<vmem>>, vector<1x1x1x5x128xf32>
    %215 = vector.shape_cast %214 : vector<1x1x1x5x128xf32> to vector<5x128xf32>
    %cst_197 = arith.constant dense<0.000000e+00> : vector<5x128xf32>
    %216 = vector.multi_reduction <add>, %200, %cst_197 [1] : vector<5x32x128xf32> to vector<5x128xf32>
    %217 = arith.addf %215, %216 : vector<5x128xf32>
    %c0_198 = arith.constant 0 : index
    %c0_199 = arith.constant 0 : index
    %c14_200 = arith.constant 14 : index
    %c0_201 = arith.constant 0 : index
    %c0_202 = arith.constant 0 : index
    %218 = vector.load %arg9[%c0_198, %c0_199, %c14_200, %c0_201, %c0_202] : memref<1x1x16x5x128xf32, #tpu.memory_space<vmem>>, vector<1x1x1x5x128xf32>
    %219 = vector.shape_cast %218 : vector<1x1x1x5x128xf32> to vector<5x128xf32>
    %220 = vector.shape_cast %217 : vector<5x128xf32> to vector<1x1x1x5x128xf32>
    tpu.vector_store %arg9[%c0_198, %c0_199, %c14_200, %c0_201, %c0_202], %220 {strides = array<i32>} : memref<1x1x16x5x128xf32, #tpu.memory_space<vmem>>, vector<1x1x1x5x128xf32>,
    %c0_203 = arith.constant 0 : index
    %c0_204 = arith.constant 0 : index
    %c15 = arith.constant 15 : index
    %c0_205 = arith.constant 0 : index
    %c0_206 = arith.constant 0 : index
    %221 = vector.load %arg9[%c0_203, %c0_204, %c15, %c0_205, %c0_206] : memref<1x1x16x5x128xf32, #tpu.memory_space<vmem>>, vector<1x1x1x5x128xf32>
    %222 = vector.shape_cast %221 : vector<1x1x1x5x128xf32> to vector<5x128xf32>
    %223 = vector.shape_cast %206 : vector<32x128xf32> to vector<1x32x128xf32>
    %cst_207 = arith.constant 0.000000e+00 : f32
    %224 = vector.shape_cast %223 : vector<1x32x128xf32> to vector<1x32x128xf32>
    %225 = vector.broadcast %224 : vector<1x32x128xf32> to vector<5x32x128xf32>
    %226 = vector.broadcast %cst_207 : f32 to vector<5x32x128xf32>
    %227 = arith.select %10, %225, %226 : vector<5x32x128xi1>, vector<5x32x128xf32>
    %cst_208 = arith.constant dense<0.000000e+00> : vector<5x128xf32>
    %228 = vector.multi_reduction <add>, %227, %cst_208 [1] : vector<5x32x128xf32> to vector<5x128xf32>
    %229 = arith.addf %222, %228 : vector<5x128xf32>
    %c0_209 = arith.constant 0 : index
    %c0_210 = arith.constant 0 : index
    %c15_211 = arith.constant 15 : index
    %c0_212 = arith.constant 0 : index
    %c0_213 = arith.constant 0 : index
    %230 = vector.load %arg9[%c0_209, %c0_210, %c15_211, %c0_212, %c0_213] : memref<1x1x16x5x128xf32, #tpu.memory_space<vmem>>, vector<1x1x1x5x128xf32>
    %231 = vector.shape_cast %230 : vector<1x1x1x5x128xf32> to vector<5x128xf32>
    %232 = vector.shape_cast %229 : vector<5x128xf32> to vector<1x1x1x5x128xf32>
    tpu.vector_store %arg9[%c0_209, %c0_210, %c15_211, %c0_212, %c0_213], %232 {strides = array<i32>} : memref<1x1x16x5x128xf32, #tpu.memory_space<vmem>>, vector<1x1x1x5x128xf32>,
    return
  }
  func.func @transform_0(%arg0: i32, %arg1: i32, %arg2: i32) -> (i32, i32, i32) {
    %c1_i32 = arith.constant 1 : i32
    %0 = arith.muli %arg1, %c1_i32 : i32
    %1 = arith.addi %0, %arg2 : i32
    %c0_i32 = arith.constant 0 : i32
    %c0_i32_0 = arith.constant 0 : i32
    return %arg0, %1, %c0_i32 : i32, i32, i32
  }
  func.func @transform_1(%arg0: i32, %arg1: i32, %arg2: i32) -> (i32, i32, i32, i32) {
    %c1_i32 = arith.constant 1 : i32
    %0 = arith.muli %arg1, %c1_i32 : i32
    %1 = arith.addi %0, %arg2 : i32
    %c0_i32 = arith.constant 0 : i32
    %2 = arith.minsi %1, %c0_i32 : i32
    %c0_i32_0 = arith.constant 0 : i32
    %c0_i32_1 = arith.constant 0 : i32
    %c0_i32_2 = arith.constant 0 : i32
    return %arg0, %c0_i32_0, %2, %c0_i32_1 : i32, i32, i32, i32
  }
  func.func @transform_2(%arg0: i32, %arg1: i32, %arg2: i32) -> (i32, i32, i32, i32) {
    %c1_i32 = arith.constant 1 : i32
    %0 = arith.muli %arg1, %c1_i32 : i32
    %1 = arith.addi %0, %arg2 : i32
    %c0_i32 = arith.constant 0 : i32
    %2 = arith.minsi %1, %c0_i32 : i32
    %c0_i32_0 = arith.constant 0 : i32
    %c0_i32_1 = arith.constant 0 : i32
    %c0_i32_2 = arith.constant 0 : i32
    return %arg0, %c0_i32_0, %2, %c0_i32_1 : i32, i32, i32, i32
  }
  func.func @transform_3(%arg0: i32, %arg1: i32, %arg2: i32) -> (i32, i32, i32, i32) {
    %c1_i32 = arith.constant 1 : i32
    %0 = arith.muli %arg1, %c1_i32 : i32
    %1 = arith.addi %0, %arg2 : i32
    %c0_i32 = arith.constant 0 : i32
    %2 = arith.minsi %1, %c0_i32 : i32
    %c0_i32_0 = arith.constant 0 : i32
    %c0_i32_1 = arith.constant 0 : i32
    %c0_i32_2 = arith.constant 0 : i32
    return %arg0, %c0_i32_0, %2, %c0_i32_1 : i32, i32, i32, i32
  }
  func.func @transform_4(%arg0: i32, %arg1: i32, %arg2: i32) -> (i32, i32, i32, i32) {
    %c1_i32 = arith.constant 1 : i32
    %0 = arith.muli %arg1, %c1_i32 : i32
    %1 = arith.addi %0, %arg2 : i32
    %c0_i32 = arith.constant 0 : i32
    %2 = arith.minsi %1, %c0_i32 : i32
    %c0_i32_0 = arith.constant 0 : i32
    %c0_i32_1 = arith.constant 0 : i32
    %c0_i32_2 = arith.constant 0 : i32
    return %arg0, %c0_i32_0, %2, %c0_i32_1 : i32, i32, i32, i32
  }
  func.func @transform_5(%arg0: i32, %arg1: i32, %arg2: i32) -> (i32, i32, i32, i32) {
    %c1_i32 = arith.constant 1 : i32
    %0 = arith.muli %arg1, %c1_i32 : i32
    %1 = arith.addi %0, %arg2 : i32
    %c0_i32 = arith.constant 0 : i32
    %2 = arith.minsi %1, %c0_i32 : i32
    %c0_i32_0 = arith.constant 0 : i32
    %c0_i32_1 = arith.constant 0 : i32
    %c0_i32_2 = arith.constant 0 : i32
    return %arg0, %c0_i32_0, %2, %c0_i32_1 : i32, i32, i32, i32
  }
  func.func @transform_6(%arg0: i32, %arg1: i32, %arg2: i32) -> (i32, i32, i32, i32, i32) {
    %c0_i32 = arith.constant 0 : i32
    %c0_i32_0 = arith.constant 0 : i32
    %c0_i32_1 = arith.constant 0 : i32
    %c0_i32_2 = arith.constant 0 : i32
    return %arg0, %arg1, %c0_i32, %c0_i32_0, %c0_i32_1 : i32, i32, i32, i32, i32
  }
}

</mosaic_0001>

<bundles_post_ra>
// kernel: _lambda_.1
= control target key start
LH: loop header
LB: loop body
LE: loop exit
PB: predicated region body
PF: predicated region fallthrough
CT: control target
= control target key end

     0   :  { %s2616_s21 = smov 0   ;;  %s2618_s22 = smov 0   ;;  %s4069_s0 = inlined_call_operand.vmem [shape: s8[2,64,128], index: 0, kind: input, shape index: {}]   ;;  %s4070_s1 = inlined_call_operand.vmem [shape: f32[2,5,32,128], index: 1, kind: input, shape index: {}]   ;;  %s4071_s2 = inlined_call_operand.vmem [shape: f32[2,5,32,128], index: 2, kind: input, shape index: {}]   ;;  %s4072_s3 = inlined_call_operand.vmem [shape: f32[2,5,32,128], index: 3, kind: input, shape index: {}]   ;;  %s4073_s4 = inlined_call_operand.vmem [shape: f32[2,5,32,128], index: 4, kind: input, shape index: {}]   ;;  %s4074_s5 = inlined_call_operand.vmem [shape: f32[2,5,32,128], index: 5, kind: input, shape index: {}]   ;;  %s4075_s6 = inlined_call_operand.vmem [shape: f32[2,2,16,5,128], index: 6, kind: output, shape index: {}]  }
   0x1   :  { %s2620_s23 = smov 0   ;;  %s2622_s24 = smov 0  }
   0x2   :  { %s2624_s25 = smov 0  }
   0x3 LB: > { %s31_s26 = sadd.s32 1, %s2570_s23  ;;  %s35_s27 = sadd.s32 1, %s2574_s24  ;;  %s2578_s25 = sphi %s2624_s25, %s16_s25   ;;  %s2574_s24 = sphi %s2622_s24, %s4280_s24   ;;  %s2570_s23 = sphi %s2620_s23, %s4279_s23   ;;  %s2566_s22 = sphi %s2618_s22, %s4278_s22   ;;  %s2562_s21 = sphi %s2616_s21, %s4277_s21  }
   0x4   : > { %p33_p0 = scmp.ge.s32.totalorder %s31_s26, 2  ;;  %p2389_p1 = scmp.ge.s32.totalorder %s2578_s25, 1 }
   0x5   : > { %p387_p2 = scmp.lt.s32.totalorder %s2578_s25, 5 }
   0x6   : > { %s4282_s26 = smov (%p33_p0, %s31_s26), 0  ;;  %s4284_s27 = smov (!%p33_p0, %s35_s27), %s2574_s24 }
   0x7   : > { %p388_p3 = pnand %p2389_p1, %p387_p2  ;;  %p37_p4 = scmp.ge.s32.totalorder %s4284_s27, 2 }
   0x8   : > { %p486_p5 = scmp.lt.s32.totalorder (!%p388_p3), %s2566_s22, 1  ;;  %p488_p6 = scmp.lt.s32.totalorder (!%p388_p3), %s2562_s21, 1 }
   0x9   : > { %s4286_s27 = smov (%p37_p4, %s4284_s27), 0  ;;  %391 = sbr.rel (%p388_p3) target bundleno = 404 (0x194), region = 44 }
   0xa   : > { %s2425_s28 = sshll.u32 (!%p388_p3), %s2562_s21, 5  ;;  %p496_p7 = scmp.lt.s32.totalorder (!%p388_p3), %s2562_s21, 0 }
   0xe   : > { %s4288_s22 = smov (!%p486_p5, %s2566_s22), 1  ;;  %v733_v0 = vlaneseq  ;;  %v2664_v3 = vstv %s2425_s28  ;;  %v2580_v4 = vmov 0.0  }
   0xf   : > { %s489_s29 = scalar_select %p488_p6, %s2562_s21, 1 }
  0x10   : > { %s2403_s30 = sshll.u32 %s4288_s22, 5  ;;  %s2390_s7 = sshll.u32 %s4288_s22, 1  ;;  %v734_v1 = vshrl.u32 %v733_v0, 7 }
  0x11   : > { %s2402_s8 = sshll.u32 %s489_s29, 4  ;;  %s491_s9 = sadd.s32 %s2390_s7, %s489_s29 }
  0x12   : > { %s581_s10 = sadd.s32 %s2403_s30, %s2402_s8  ;;  %s2391_s11 = sshll.u32 %s491_s9, 3  ;;  %v2680_v9 = vadd.s32 8, %v734_v1  ;;  %v2682_v10 = vadd.s32 16, %v734_v1  ;;  %v2684_v11 = vadd.s32 24, %v734_v1  ;;  %v2697_v12 = vadd.s32 %v2664_v3, %v734_v1 }
  0x13   : > { %s2404_s12 = sshll.u32 %s581_s10, 3  ;;  %s493_s15 = scalar_lea.vmem %s4069_s0, %s2391_s11 }
  0x14   : > { %s2661_s18 = scalar_lea.vmem %s4075_s6, %s2404_s12  ;;  %v604_v2 = vld [vmem:[%s493_s15] sm:$0xff]  ;;  %s4290_s21 = smov (!%p496_p7, %s2562_s21), 0  ;;  %v2804_v43 = vadd.s32 %v2664_v3, %v2680_v9  ;;  %v2808_v46 = vadd.s32 %v2664_v3, %v2682_v10  ;;  %v2812_v50 = vadd.s32 %v2664_v3, %v2684_v11 }
  0x15   : > { %588 = vst [vmem:[%s2661_s18] sm:$0x1f] %v2580_v4  ;;  %v2668_v5 = vunpack.c.0.s8 %v604_v2  ;;  %v2670_v6 = vunpack.c.1.s8 %v604_v2  ;;  %v2672_v7 = vunpack.c.2.s8 %v604_v2  ;;  %v2674_v8 = vunpack.c.3.s8 %v604_v2  ;;  %s2392_s19 = sshll.u32 %s4290_s21, 2  ;;  %s2458_s20 = smul.u32 20, %s4288_s22 }
  0x16   : > { %589 = vst [vmem:[%s2661_s18 + $0x8] sm:$0x1f] %v2580_v4  ;;  %p501_p8 = scmp.lt.s32.totalorder %s2392_s19, 3 }
  0x17   : > { %590 = vst [vmem:[%s2661_s18 + $0x10] sm:$0x1f] %v2580_v4  ;;  %vm4088_vm0 = vcmp.eq.s32.totalorder %v2668_v5, 0  ;;  %vm4085_vm1 = vcmp.eq.s32.totalorder %v2670_v6, 0  ;;  %vm4087_vm2 = vcmp.eq.s32.totalorder %v2672_v7, 0  ;;  %vm4076_vm3 = vcmp.eq.s32.totalorder %v2674_v8, 0 }
  0x18   : > { %591 = vst [vmem:[%s2661_s18 + $0x18] sm:$0x1f] %v2580_v4  ;;  %vm4086_vm4 = vcmp.eq.s32.totalorder %v2668_v5, 1  ;;  %vm4089_vm5 = vcmp.eq.s32.totalorder %v2670_v6, 1  ;;  %vm4077_vm6 = vcmp.eq.s32.totalorder %v2672_v7, 1  ;;  %vm4078_vm8 = vcmp.eq.s32.totalorder %v2668_v5, 2 }
  0x19   : > { %592 = vst [vmem:[%s2661_s18 + $0x20] sm:$0x1f] %v2580_v4  ;;  %vm621_vm12 = vcmp.eq.s32.totalorder %v2668_v5, 3  ;;  %vm622_vm13 = vcmp.eq.s32.totalorder %v2670_v6, 3  ;;  %vm623_vm14 = vcmp.eq.s32.totalorder %v2672_v7, 3  ;;  %vm4083_vm15 = vcmp.eq.s32.totalorder %v2674_v8, 3 }
  0x1a   : > { %593 = vst [vmem:[%s2661_s18 + $0x28] sm:$0x1f] %v2580_v4  ;;  %vm4082_vm7 = vcmp.eq.s32.totalorder %v2668_v5, 4  ;;  %vm4081_vm10 = vcmp.eq.s32.totalorder %v2670_v6, 4  ;;  %vm4080_vm9 = vcmp.eq.s32.totalorder %v2672_v7, 4  ;;  %vm4079_vm11 = vcmp.eq.s32.totalorder %v2674_v8, 4 }
  0x1b   : > { %594 = vst [vmem:[%s2661_s18 + $0x30] sm:$0x1f] %v2580_v4  ;;  %v2405_v13 = vsel %vm4088_vm0, 1.0, %v2580_v4  ;;  %v2406_v14 = vsel %vm4085_vm1, 1.0, %v2580_v4  ;;  %v2407_v15 = vsel %vm4087_vm2, 1.0, %v2580_v4  ;;  %v2408_v16 = vsel %vm4076_vm3, 1.0, %v2580_v4 }
  0x1c   : > { %595 = vst [vmem:[%s2661_s18 + $0x38] sm:$0x1f] %v2580_v4  ;;  %v2409_v17 = vsel %vm4086_vm4, 1.0, %v2580_v4  ;;  %v2410_v18 = vsel %vm4089_vm5, 1.0, %v2580_v4  ;;  %v2411_v19 = vsel %vm4077_vm6, 1.0, %v2580_v4  ;;  %v2413_v20 = vsel %vm4078_vm8, 1.0, %v2580_v4 }
  0x1d   : > { %596 = vst [vmem:[%s2661_s18 + $0x40] sm:$0x1f] %v2580_v4  ;;  %vm4090_vm3 = vcmp.eq.s32.totalorder %v2670_v6, 2  ;;  %v2417_v22 = vsel %vm621_vm12, 1.0, %v2580_v4  ;;  %v2418_v23 = vsel %vm622_vm13, 1.0, %v2580_v4  ;;  %vm4091_vm6 = vcmp.eq.s32.totalorder %v2674_v8, 1 }
  0x1e   : > { %597 = vst [vmem:[%s2661_s18 + $0x48] sm:$0x1f] %v2580_v4  ;;  %v2414_v21 = vsel %vm4090_vm3, 1.0, %v2580_v4  ;;  %v2412_v24 = vsel %vm4091_vm6, 1.0, %v2580_v4  ;;  %vm4092_vm8 = vcmp.eq.s32.totalorder %v2672_v7, 2  ;;  %v2421_v26 = vsel %vm4082_vm7, 1.0, %v2580_v4 }
  0x1f   : > { %598 = vst [vmem:[%s2661_s18 + $0x50] sm:$0x1f] %v2580_v4  ;;  %v2415_v25 = vsel %vm4092_vm8, 1.0, %v2580_v4  ;;  %v2422_v27 = vsel %vm4081_vm10, 1.0, %v2580_v4  ;;  %v2419_v28 = vsel %vm623_vm14, 1.0, %v2580_v4  ;;  %v2423_v29 = vsel %vm4080_vm9, 1.0, %v2580_v4 }
  0x20   : > { %599 = vst [vmem:[%s2661_s18 + $0x58] sm:$0x1f] %v2580_v4  ;;  %v670_v30 = vadd.f32 %v2406_v14, %v2405_v13  ;;  %v679_v31 = vadd.f32 %v2410_v18, %v2409_v17  ;;  %vm4093_vm3 = vcmp.eq.s32.totalorder %v2674_v8, 2  ;;  %v688_v33 = vadd.f32 %v2414_v21, %v2413_v20  ;;  %s4292_s19 = smov (!%p501_p8, %s2392_s19), 3 }
  0x21   : > { %600 = vst [vmem:[%s2661_s18 + $0x60] sm:$0x1f] %v2580_v4  ;;  %v2416_v32 = vsel %vm4093_vm3, 1.0, %v2580_v4  ;;  %v697_v34 = vadd.f32 %v2418_v23, %v2417_v22  ;;  %v706_v35 = vadd.f32 %v2422_v27, %v2421_v26  ;;  %v2420_v36 = vsel %vm4083_vm15, 1.0, %v2580_v4  ;;  %s504_s21 = sadd.s32 %s2458_s20, %s4292_s19 }
  0x22   : > { %601 = vst [vmem:[%s2661_s18 + $0x68] sm:$0x1f] %v2580_v4  ;;  %v2424_v37 = vsel %vm4079_vm11, 1.0, %v2580_v4  ;;  %v671_v38 = vadd.f32 %v2407_v15, %v670_v30  ;;  %v680_v39 = vadd.f32 %v2411_v19, %v679_v31  ;;  %v689_v40 = vadd.f32 %v2415_v25, %v688_v33  ;;  %s2814_s22 = sshll.u32 %s504_s21, 3 }
  0x23   : > { %602 = vst [vmem:[%s2661_s18 + $0x70] sm:$0x1f] %v2580_v4  ;;  %v698_v41 = vadd.f32 %v2419_v28, %v697_v34  ;;  %v707_v42 = vadd.f32 %v2423_v29, %v706_v35  ;;  %vm743_vm6 = vcmp.lt.s32.totalorder %v2697_v12, 32  ;;  %vm720_vm8 = vcmask 1041409   ;;  %s2821_s30 = scalar_lea.vmem %s4070_s1, %s2814_s22  ;;  %s2993_s9 = scalar_lea.vmem %s4071_s2, %s2814_s22 }
  0x24   : > { %603 = vst [vmem:[%s2661_s18 + $0x78] sm:$0x1f] %v2580_v4  ;;  %v672_v44 = vadd.f32 %v2408_v16, %v671_v38  ;;  %v681_v45 = vadd.f32 %v2412_v24, %v680_v39  ;;  %v690_v47 = vadd.f32 %v2416_v32, %v689_v40  ;;  %vm744_vm3 = vcmp.lt.s32.totalorder %v2804_v43, 32  ;;  %v747_v58 = vld [vmem:[%s2821_s30] sm:$0xff]  ;;  %v748_v59 = vld [vmem:[%s2821_s30 + $0x8] sm:$0xff]  ;;  %v749_v63 = vld [vmem:[%s2821_s30 + $0x10] sm:$0xff]  ;;  %s3251_s12 = scalar_lea.vmem %s4072_s3, %s2814_s22  ;;  %s3500_s15 = scalar_lea.vmem %s4073_s4, %s2814_s22 }
  0x25   : > { %v699_v48 = vadd.f32 %v2420_v36, %v698_v41  ;;  %v708_v49 = vadd.f32 %v2424_v37, %v707_v42  ;;  %vm722_vm11 = vcmask 1042434   ;;  %vm745_vm9 = vcmp.lt.s32.totalorder %v2808_v46, 32  ;;  %v750_v0 = vld [vmem:[%s2821_s30 + $0x18] sm:$0xff]  ;;  %v751_v3 = vld [vmem:[%s2821_s30 + $0x20] sm:$0xff]  ;;  %v752_v14 = vld [vmem:[%s2821_s30 + $0x28] sm:$0xff]  ;;  %s3751_s19 = scalar_lea.vmem %s4074_s5, %s2814_s22 }
  0x26   : > { %v673_v51 = vrot.slane %v672_v44, 4  ;;  %v682_v52 = vrot.slane %v681_v45, 4  ;;  %v691_v53 = vrot.slane %v690_v47, 4  ;;  %vm724_vm10 = vcmask 1043459   ;;  %v753_v15 = vld [vmem:[%s2821_s30 + $0x30] sm:$0xff]  ;;  %v754_v19 = vld [vmem:[%s2821_s30 + $0x38] sm:$0xff] }
  0x27   : > { %v700_v54 = vrot.slane %v699_v48, 4  ;;  %v709_v55 = vrot.slane %v708_v49, 4  ;;  %vm4084_vm7 = vcmp.lt.s32.totalorder %v2812_v50, 32  ;;  %vm726_vm15 = vcmask 1044484   ;;  %v755_v25 = vld [vmem:[%s2821_s30 + $0x40] sm:$0xff]  ;;  %v756_v26 = vld [vmem:[%s2821_s30 + $0x48] sm:$0xff] }
  0x28   : > { %v674_v56 = vadd.f32 %v673_v51, %v672_v44  ;;  %v683_v57 = vadd.f32 %v682_v52, %v681_v45  ;;  %v692_v60 = vadd.f32 %v691_v53, %v690_v47  ;;  %v2833_v4 = vsel %vm743_vm6, %v747_v58, 0.0  ;;  %v757_v30 = vld [vmem:[%s2821_s30 + $0x50] sm:$0xff]  ;;  %v758_v31 = vld [vmem:[%s2821_s30 + $0x58] sm:$0xff]  ;;  %v759_v37 = vld [vmem:[%s2821_s30 + $0x60] sm:$0xff] }
  0x29   : > { %v701_v61 = vadd.f32 %v700_v54, %v699_v48  ;;  %v710_v62 = vadd.f32 %v709_v55, %v708_v49  ;;  %v2837_v9 = vsel %vm744_vm3, %v748_v59, 0.0  ;;  %v777_v20 = vsel %vm745_vm9, %v749_v63, 0.0  ;;  %v760_v38 = vld [vmem:[%s2821_s30 + $0x68] sm:$0xff]  ;;  %v761_v42 = vld [vmem:[%s2821_s30 + $0x70] sm:$0xff]  ;;  %v762_v44 = vld [vmem:[%s2821_s30 + $0x78] sm:$0xff] }
  0x2a   : > { %v675_v1 = vrot.slane %v674_v56, 2  ;;  %v684_v2 = vrot.slane %v683_v57, 2  ;;  %v693_v10 = vrot.slane %v692_v60, 2  ;;  %v849_v16 = vadd.f32 %v2837_v9, %v2833_v4  ;;  %v763_v45 = vld [vmem:[%s2821_s30 + $0x80] sm:$0xff]  ;;  %v764_v53 = vld [vmem:[%s2821_s30 + $0x88] sm:$0xff]  ;;  %v765_v54 = vld [vmem:[%s2821_s30 + $0x90] sm:$0xff] }
  0x2b   : > { %v702_v11 = vrot.slane %v701_v61, 2  ;;  %v711_v13 = vrot.slane %v710_v62, 2  ;;  %v778_v21 = vsel %vm4084_vm7, %v750_v0, 0.0  ;;  %v779_v27 = vsel %vm743_vm6, %v751_v3, 0.0  ;;  %v766_v55 = vld [vmem:[%s2821_s30 + $0x98] sm:$0xff] }
  0x2c   : > { %v676_v17 = vadd.f32 %v675_v1, %v674_v56  ;;  %v685_v18 = vadd.f32 %v684_v2, %v683_v57  ;;  %v694_v22 = vadd.f32 %v693_v10, %v692_v60  ;;  %v780_v32 = vsel %vm744_vm3, %v752_v14, 0.0 }
  0x2d   : > { %v703_v23 = vadd.f32 %v702_v11, %v701_v61  ;;  %v712_v24 = vadd.f32 %v711_v13, %v710_v62  ;;  %v781_v33 = vsel %vm745_vm9, %v753_v15, 0.0  ;;  %v782_v39 = vsel %vm4084_vm7, %v754_v19, 0.0  ;;  %v629_v61 = vld [vmem:[%s2661_s18] sm:$0x1f] }
  0x2e   : > { %v677_v28 = vrot.slane %v676_v17, 1  ;;  %v686_v29 = vrot.slane %v685_v18, 1  ;;  %v695_v34 = vrot.slane %v694_v22, 1  ;;  %v783_v47 = vsel %vm743_vm6, %v755_v25, 0.0 }
  0x2f   : > { %v704_v35 = vrot.slane %v703_v23, 1  ;;  %v713_v36 = vrot.slane %v712_v24, 1  ;;  %v784_v48 = vsel %vm744_vm3, %v756_v26, 0.0  ;;  %v785_v56 = vsel %vm745_vm9, %v757_v30, 0.0 }
  0x30   : > { %v678_v40 = vadd.f32 %v677_v28, %v676_v17  ;;  %v687_v41 = vadd.f32 %v686_v29, %v685_v18  ;;  %v696_v49 = vadd.f32 %v695_v34, %v694_v22  ;;  %v786_v58 = vsel %vm4084_vm7, %v758_v31, 0.0 }
  0x31   : > { %v705_v51 = vadd.f32 %v704_v35, %v703_v23  ;;  %v714_v52 = vadd.f32 %v713_v36, %v712_v24  ;;  %v787_v59 = vsel %vm743_vm6, %v759_v37, 0.0  ;;  %v788_v60 = vsel %vm744_vm3, %v760_v38, 0.0 }
  0x32   : > { %v721_v57 = vsel %vm720_vm8, %v687_v41, %v678_v40  ;;  %v789_v63 = vsel %vm745_vm9, %v761_v42, 0.0  ;;  %v790_v0 = vsel %vm4084_vm7, %v762_v44, 0.0  ;;  %v791_v1 = vsel %vm743_vm6, %v763_v45, 0.0 }
  0x33   : > { %v723_v62 = vsel %vm722_vm11, %v696_v49, %v721_v57  ;;  %v792_v3 = vsel %vm744_vm3, %v764_v53, 0.0  ;;  %v793_v10 = vsel %vm745_vm9, %v765_v54, 0.0  ;;  %v794_v11 = vsel %vm4084_vm7, %v766_v55, 0.0 }
  0x34   : > { %v725_v2 = vsel %vm724_vm10, %v705_v51, %v723_v62  ;;  %v850_v14 = vadd.f32 %v849_v16, %v777_v20  ;;  %v858_v15 = vadd.f32 %v780_v32, %v779_v27  ;;  %v867_v17 = vadd.f32 %v784_v48, %v783_v47 }
  0x35   : > { %v727_v13 = vsel %vm726_vm15, %v714_v52, %v725_v2  ;;  %v876_v19 = vadd.f32 %v788_v60, %v787_v59  ;;  %v885_v22 = vadd.f32 %v792_v3, %v791_v1  ;;  %v2900_v23 = vsel %vm4088_vm0, %v2833_v4, 0.0 }
  0x36   : > { %v729_v18 = vadd.f32 %v727_v13, %v629_v61  ;;  %v851_v24 = vadd.f32 %v850_v14, %v778_v21  ;;  %v859_v25 = vadd.f32 %v858_v15, %v781_v33  ;;  %v868_v26 = vadd.f32 %v867_v17, %v785_v56 }
  0x37   : > { %v2905_v28 = vsel %vm4085_vm1, %v2837_v9, 0.0  ;;  %v877_v16 = vadd.f32 %v876_v19, %v789_v63  ;;  %v886_v29 = vadd.f32 %v885_v22, %v793_v10  ;;  %v2910_v30 = vsel %vm4087_vm2, %v777_v20, 0.0 }
  0x38   : > { %730 = vst [vmem:[%s2661_s18] sm:$0x1f] %v729_v18  ;;  %vm4094_vm7 = vcmp.eq.s32.totalorder %v2674_v8, 0  ;;  %v852_v4 = vrot.slane %v851_v24, 4  ;;  %v860_v34 = vadd.f32 %v859_v25, %v782_v39  ;;  %v869_v35 = vadd.f32 %v868_v26, %v786_v58 }
  0x39   : > { %v2914_v31 = vsel %vm4094_vm7, %v778_v21, 0.0  ;;  %v799_v36 = vsel %vm4086_vm4, %v779_v27, 0.0  ;;  %v878_v37 = vadd.f32 %v877_v16, %v790_v0  ;;  %v887_v9 = vadd.f32 %v886_v29, %v794_v11 }
  0x3a   : > { %v800_v38 = vsel %vm4089_vm5, %v780_v32, 0.0  ;;  %vm4095_vm1 = vcmp.eq.s32.totalorder %v2672_v7, 1  ;;  %v853_v20 = vadd.f32 %v852_v4, %v851_v24  ;;  %v861_v41 = vrot.slane %v860_v34, 4 }
  0x3b   : > { %v2922_v40 = vsel %vm4095_vm1, %v781_v33, 0.0  ;;  %v870_v42 = vrot.slane %v869_v35, 4  ;;  %vm4096_vm7 = vcmp.eq.s32.totalorder %v2674_v8, 1  ;;  %v879_v44 = vrot.slane %v878_v37, 4 }
  0x3c   : > { %v2926_v21 = vsel %vm4096_vm7, %v782_v39, 0.0  ;;  %v888_v45 = vrot.slane %v887_v9, 4  ;;  %vm4097_vm4 = vcmp.eq.s32.totalorder %v2668_v5, 2  ;;  %vm4098_vm2 = vcmp.eq.s32.totalorder %v2670_v6, 2 }
  0x3d   : > { %v2930_v27 = vsel %vm4097_vm4, %v783_v47, 0.0  ;;  %v2934_v32 = vsel %vm4098_vm2, %v784_v48, 0.0  ;;  %v854_v49 = vrot.slane %v853_v20, 2  ;;  %v862_v33 = vadd.f32 %v861_v41, %v860_v34 }
  0x3e   : > { %v871_v51 = vadd.f32 %v870_v42, %v869_v35  ;;  %vm4099_vm1 = vcmp.eq.s32.totalorder %v2672_v7, 2  ;;  %v880_v53 = vadd.f32 %v879_v44, %v878_v37  ;;  %v889_v39 = vadd.f32 %v888_v45, %v887_v9  ;;  %v2426_v44 = vld [vmem:[%s2661_s18 + $0x8] sm:$0x1f] }
  0x3f   : > { %v2938_v52 = vsel %vm4099_vm1, %v785_v56, 0.0  ;;  %vm4100_vm7 = vcmp.eq.s32.totalorder %v2674_v8, 2  ;;  %v807_v47 = vsel %vm621_vm12, %v787_v59, 0.0  ;;  %v855_v55 = vadd.f32 %v854_v49, %v853_v20 }
  0x40   : > { %v2942_v54 = vsel %vm4100_vm7, %v786_v58, 0.0  ;;  %v863_v57 = vrot.slane %v862_v33, 2  ;;  %v872_v48 = vrot.slane %v871_v51, 2  ;;  %v808_v61 = vsel %vm622_vm13, %v788_v60, 0.0 }
  0x41   : > { %v881_v62 = vrot.slane %v880_v53, 2  ;;  %v890_v2 = vrot.slane %v889_v39, 2  ;;  %v2950_v56 = vsel %vm623_vm14, %v789_v63, 0.0  ;;  %vm4101_vm2 = vcmp.eq.s32.totalorder %v2674_v8, 3 }
  0x42   : > { %v2954_v13 = vsel %vm4101_vm2, %v790_v0, 0.0  ;;  %v856_v58 = vrot.slane %v855_v55, 1  ;;  %v864_v14 = vadd.f32 %v863_v57, %v862_v33  ;;  %v873_v15 = vadd.f32 %v872_v48, %v871_v51 }
  0x43   : > { %vm4102_vm4 = vcmp.eq.s32.totalorder %v2668_v5, 4  ;;  %v882_v17 = vadd.f32 %v881_v62, %v880_v53  ;;  %v891_v18 = vadd.f32 %v890_v2, %v889_v39  ;;  %vm4103_vm1 = vcmp.eq.s32.totalorder %v2670_v6, 4 }
  0x44   : > { %v811_v59 = vsel %vm4102_vm4, %v791_v1, 0.0  ;;  %v812_v60 = vsel %vm4103_vm1, %v792_v3, 0.0  ;;  %vm4104_vm7 = vcmp.eq.s32.totalorder %v2672_v7, 4  ;;  %v857_v63 = vadd.f32 %v856_v58, %v855_v55 }
  0x45   : > { %v813_v19 = vsel %vm4104_vm7, %v793_v10, 0.0  ;;  %v865_v22 = vrot.slane %v864_v14, 1  ;;  %v874_v24 = vrot.slane %v873_v15, 1  ;;  %vm4105_vm2 = vcmp.eq.s32.totalorder %v2674_v8, 4 }
  0x46   : > { %v2964_v0 = vsel %vm4105_vm2, %v794_v11, 0.0  ;;  %v883_v25 = vrot.slane %v882_v17, 1  ;;  %v892_v26 = vrot.slane %v891_v18, 1  ;;  %v815_v1 = vadd.f32 %v799_v36, %v2900_v23 }
  0x47   : > { %v819_v16 = vadd.f32 %v800_v38, %v2905_v28  ;;  %v866_v29 = vadd.f32 %v865_v22, %v864_v14  ;;  %v875_v4 = vadd.f32 %v874_v24, %v873_v15  ;;  %v823_v3 = vadd.f32 %v2922_v40, %v2910_v30 }
  0x48   : > { %v827_v10 = vadd.f32 %v2926_v21, %v2914_v31  ;;  %v884_v34 = vadd.f32 %v883_v25, %v882_v17  ;;  %v893_v35 = vadd.f32 %v892_v26, %v891_v18  ;;  %v816_v11 = vadd.f32 %v815_v1, %v2930_v27  ;;  %v1044_v1 = vld [vmem:[%s2993_s9] sm:$0xff] }
  0x49   : > { %v820_v37 = vadd.f32 %v819_v16, %v2934_v32  ;;  %v899_v9 = vsel %vm720_vm8, %v866_v29, %v857_v63  ;;  %v824_v20 = vadd.f32 %v823_v3, %v2938_v52  ;;  %v908_v42 = vadd.f32 %v2905_v28, %v2900_v23 }
  0x4a   : > { %v828_v41 = vadd.f32 %v827_v10, %v2942_v54  ;;  %v900_v45 = vsel %vm722_vm11, %v875_v4, %v899_v9  ;;  %v817_v49 = vadd.f32 %v816_v11, %v807_v47  ;;  %v917_v51 = vadd.f32 %v800_v38, %v799_v36  ;;  %v1049_v9 = vld [vmem:[%s2993_s9 + $0x28] sm:$0xff] }
  0x4b   : > { %v821_v33 = vadd.f32 %v820_v37, %v808_v61  ;;  %v901_v53 = vsel %vm724_vm10, %v884_v34, %v900_v45  ;;  %v825_v39 = vadd.f32 %v824_v20, %v2950_v56  ;;  %v909_v57 = vadd.f32 %v908_v42, %v2910_v30  ;;  %v1050_v42 = vld [vmem:[%s2993_s9 + $0x30] sm:$0xff] }
  0x4c   : > { %v829_v55 = vadd.f32 %v828_v41, %v2954_v13  ;;  %v902_v48 = vsel %vm726_vm15, %v893_v35, %v901_v53  ;;  %v818_v62 = vadd.f32 %v817_v49, %v811_v59  ;;  %v918_v28 = vadd.f32 %v917_v51, %v2922_v40  ;;  %v1047_v35 = vld [vmem:[%s2993_s9 + $0x18] sm:$0xff] }
  0x4d   : > { %v822_v23 = vadd.f32 %v821_v33, %v812_v60  ;;  %v904_v2 = vadd.f32 %v2426_v44, %v902_v48  ;;  %v826_v58 = vadd.f32 %v825_v39, %v813_v19  ;;  %v910_v36 = vadd.f32 %v909_v57, %v2914_v31 }
  0x4e   : > { %v830_v14 = vadd.f32 %v829_v55, %v2964_v0  ;;  %v831_v38 = vmax.f32 %v818_v62, 0.005  ;;  %v919_v15 = vadd.f32 %v918_v28, %v2926_v21  ;;  %v926_v17 = vadd.f32 %v2934_v32, %v2930_v27 }
  0x4f   : > { %v832_v30 = vmax.f32 %v822_v23, 0.005  ;;  %2427 = vst [vmem:[%s2661_s18 + $0x8] sm:$0x1f] %v904_v2  ;;  %v833_v40 = vmax.f32 %v826_v58, 0.005  ;;  %v935_v63 = vadd.f32 %v808_v61, %v807_v47  ;;  %v944_v22 = vadd.f32 %v812_v60, %v811_v59 }
  0x50   : > { %v834_v18 = vmax.f32 %v830_v14, 0.005  ;;  %v835_v31 = vmin.f32 %v831_v38, 1.0  ;;  %v911_v25 = vrot.slane %v910_v36, 4  ;;  %v920_v26 = vrot.slane %v919_v15, 4  ;;  %v1045_v47 = vld [vmem:[%s2993_s9 + $0x8] sm:$0xff] }
  0x51   : > { %v836_v24 = vmin.f32 %v832_v30, 1.0  ;;  %v837_v16 = vmin.f32 %v833_v40, 1.0  ;;  %v927_v4 = vadd.f32 %v926_v17, %v2938_v52  ;;  %v936_v21 = vadd.f32 %v935_v63, %v2950_v56  ;;  %v1046_v60 = vld [vmem:[%s2993_s9 + $0x10] sm:$0xff] }
  0x52   : > { %v838_v29 = vmin.f32 %v834_v18, 1.0  ;;  %2500 = vlog2.f32 %v835_v31  ;;  %v912_v27 = vadd.f32 %v911_v25, %v910_v36  ;;  %v921_v32 = vadd.f32 %v920_v26, %v919_v15 }
  0x53   : > { %v945_v3 = vadd.f32 %v944_v22, %v813_v19  ;;  %2502 = vlog2.f32 %v836_v24  ;;  %v928_v61 = vadd.f32 %v927_v4, %v2942_v54  ;;  %v937_v59 = vadd.f32 %v936_v21, %v2954_v13  ;;  %v1048_v19 = vld [vmem:[%s2993_s9 + $0x20] sm:$0xff] }
  0x54   : > { %v3008_v52 = vsel %vm743_vm6, %v1044_v1, 0.0  ;;  %2504 = vlog2.f32 %v837_v16  ;;  %v913_v56 = vrot.slane %v912_v27, 2  ;;  %v922_v10 = vrot.slane %v921_v32, 2 }
  0x55   : > { %v946_v34 = vadd.f32 %v945_v3, %v2964_v0  ;;  %2506 = vlog2.f32 %v838_v29  ;;  %v929_v11 = vrot.slane %v928_v61, 4  ;;  %v938_v37 = vrot.slane %v937_v59, 4 }
  0x56   : > { %v3016_v54 = vsel %vm744_vm3, %v1045_v47, 0.0  ;;  %v914_v13 = vadd.f32 %v913_v56, %v912_v27  ;;  %v923_v20 = vadd.f32 %v922_v10, %v921_v32  ;;  %v3021_v44 = vsel %vm745_vm9, %v1046_v60, 0.0 }
  0x57   : > { %v947_v41 = vrot.slane %v946_v34, 4  ;;  %v930_v45 = vadd.f32 %v929_v11, %v928_v61  ;;  %v939_v0 = vadd.f32 %v938_v37, %v937_v59  ;;  %vm4106_vm4 = vcmp.lt.s32.totalorder %v2812_v50, 32 }
  0x58   : > { %v3025_v49 = vsel %vm4106_vm4, %v1047_v35, 0.0  ;;  %v3029_v33 = vsel %vm743_vm6, %v1048_v19, 0.0  ;;  %v2501_v51 = vpop.eup %2500  ;;  %v915_v53 = vrot.slane %v914_v13, 1  ;;  %v924_v39 = vrot.slane %v923_v20, 1  ;;  %v2428_v35 = vld [vmem:[%s2661_s18 + $0x10] sm:$0x1f] }
  0x59   : > { %v948_v55 = vadd.f32 %v947_v41, %v946_v34  ;;  %v3033_v57 = vsel %vm744_vm3, %v1049_v9, 0.0  ;;  %v2503_v48 = vpop.eup %2502  ;;  %v840_v62 = vmul.f32 0.6931472, %v2501_v51  ;;  %v931_v23 = vrot.slane %v930_v45, 2 }
  0x5a   : > { %v940_v28 = vrot.slane %v939_v0, 2  ;;  %v3037_v2 = vsel %vm745_vm9, %v1050_v42, 0.0  ;;  %v2505_v58 = vpop.eup %2504  ;;  %v842_v14 = vmul.f32 0.6931472, %v2503_v48  ;;  %v916_v36 = vadd.f32 %v915_v53, %v914_v13  ;;  %v1053_v48 = vld [vmem:[%s2993_s9 + $0x48] sm:$0xff] }
  0x5b   : > { %v925_v38 = vadd.f32 %v924_v39, %v923_v20  ;;  %v949_v30 = vrot.slane %v948_v55, 2  ;;  %v2507_v15 = vpop.eup %2506  ;;  %v844_v17 = vmul.f32 0.6931472, %v2505_v58  ;;  %v932_v40 = vadd.f32 %v931_v23, %v930_v45  ;;  %v1051_v45 = vld [vmem:[%s2993_s9 + $0x38] sm:$0xff] }
  0x5c   : > { %v941_v18 = vadd.f32 %v940_v28, %v939_v0  ;;  %v967_v63 = vsel %vm4088_vm0, %v840_v62, 0.0  ;;  %v846_v22 = vmul.f32 0.6931472, %v2507_v15  ;;  %vm4107_vm1 = vcmp.eq.s32.totalorder %v2670_v6, 0  ;;  %v1052_v0 = vld [vmem:[%s2993_s9 + $0x40] sm:$0xff] }
  0x5d   : > { %v950_v31 = vadd.f32 %v949_v30, %v948_v55  ;;  %v958_v24 = vsel %vm720_vm8, %v925_v38, %v916_v36  ;;  %v968_v25 = vsel %vm4107_vm1, %v842_v14, 0.0  ;;  %v933_v26 = vrot.slane %v932_v40, 1  ;;  %v1055_v36 = vld [vmem:[%s2993_s9 + $0x58] sm:$0xff]  ;;  %v1056_v15 = vld [vmem:[%s2993_s9 + $0x60] sm:$0xff] }
  0x5e   : > { %v942_v1 = vrot.slane %v941_v18, 1  ;;  %vm4108_vm7 = vcmp.eq.s32.totalorder %v2672_v7, 0  ;;  %vm4109_vm2 = vcmp.eq.s32.totalorder %v2668_v5, 1  ;;  %vm4110_vm4 = vcmp.eq.s32.totalorder %v2674_v8, 0 }
  0x5f   : > { %v969_v16 = vsel %vm4108_vm7, %v844_v17, 0.0  ;;  %v971_v29 = vsel %vm4109_vm2, %v840_v62, 0.0  ;;  %v951_v4 = vrot.slane %v950_v31, 1  ;;  %v970_v21 = vsel %vm4110_vm4, %v846_v22, 0.0 }
  0x60   : > { %v972_v27 = vsel %vm4089_vm5, %v842_v14, 0.0  ;;  %vm4111_vm0 = vcmp.eq.s32.totalorder %v2672_v7, 1  ;;  %v934_v3 = vadd.f32 %v933_v26, %v932_v40  ;;  %v943_v47 = vadd.f32 %v942_v1, %v941_v18 }
  0x61   : > { %v973_v32 = vsel %vm4111_vm0, %v844_v17, 0.0  ;;  %vm4112_vm1 = vcmp.eq.s32.totalorder %v2674_v8, 1  ;;  %vm4113_vm7 = vcmp.eq.s32.totalorder %v2668_v5, 2  ;;  %v952_v60 = vadd.f32 %v951_v4, %v950_v31  ;;  %v1057_v31 = vld [vmem:[%s2993_s9 + $0x68] sm:$0xff] }
  0x62   : > { %v974_v61 = vsel %vm4112_vm1, %v846_v22, 0.0  ;;  %v975_v59 = vsel %vm4113_vm7, %v840_v62, 0.0  ;;  %vm4114_vm2 = vcmp.eq.s32.totalorder %v2670_v6, 2  ;;  %vm4115_vm4 = vcmp.eq.s32.totalorder %v2672_v7, 2 }
  0x63   : > { %v976_v56 = vsel %vm4114_vm2, %v842_v14, 0.0  ;;  %v977_v10 = vsel %vm4115_vm4, %v844_v17, 0.0  ;;  %vm4116_vm5 = vcmp.eq.s32.totalorder %v2674_v8, 2  ;;  %v959_v19 = vsel %vm722_vm11, %v934_v3, %v958_v24  ;;  %v1058_v24 = vld [vmem:[%s2993_s9 + $0x70] sm:$0xff] }
  0x64   : > { %v978_v34 = vsel %vm4116_vm5, %v846_v22, 0.0  ;;  %v979_v11 = vsel %vm621_vm12, %v840_v62, 0.0  ;;  %v980_v37 = vsel %vm622_vm13, %v842_v14, 0.0  ;;  %v981_v9 = vsel %vm623_vm14, %v844_v17, 0.0 }
  0x65   : > { %v960_v13 = vsel %vm724_vm10, %v943_v47, %v959_v19  ;;  %vm4117_vm0 = vcmp.eq.s32.totalorder %v2674_v8, 3  ;;  %vm4118_vm5 = vcmp.eq.s32.totalorder %v2668_v5, 4  ;;  %vm4119_vm1 = vcmp.eq.s32.totalorder %v2670_v6, 4  ;;  %v1060_v47 = vld [vmem:[%s2993_s9 + $0x80] sm:$0xff] }
  0x66   : > { %v982_v20 = vsel %vm4117_vm0, %v846_v22, 0.0  ;;  %v983_v41 = vsel %vm4118_vm5, %v840_v62, 0.0  ;;  %v984_v42 = vsel %vm4119_vm1, %v842_v14, 0.0  ;;  %v961_v51 = vsel %vm726_vm15, %v952_v60, %v960_v13  ;;  %v1054_v14 = vld [vmem:[%s2993_s9 + $0x50] sm:$0xff] }
  0x67   : > { %vm4120_vm7 = vcmp.eq.s32.totalorder %v2672_v7, 4  ;;  %vm4121_vm2 = vcmp.eq.s32.totalorder %v2674_v8, 4  ;;  %v987_v55 = vadd.f32 %v968_v25, %v967_v63  ;;  %v963_v23 = vadd.f32 %v2428_v35, %v961_v51 }
  0x68   : > { %v985_v53 = vsel %vm4120_vm7, %v844_v17, 0.0  ;;  %v986_v39 = vsel %vm4121_vm2, %v846_v22, 0.0  ;;  %v996_v62 = vadd.f32 %v972_v27, %v971_v29  ;;  %v1005_v28 = vadd.f32 %v976_v56, %v975_v59  ;;  %v1061_v59 = vld [vmem:[%s2993_s9 + $0x88] sm:$0xff] }
  0x69   : > { %v1014_v58 = vadd.f32 %v980_v37, %v979_v11  ;;  %v988_v38 = vadd.f32 %v987_v55, %v969_v16  ;;  %v1023_v30 = vadd.f32 %v984_v42, %v983_v41  ;;  %vm4122_vm4 = vcmp.lt.s32.totalorder %v2812_v50, 32  ;;  %2429 = vst [vmem:[%s2661_s18 + $0x10] sm:$0x1f] %v963_v23  ;;  %v1059_v16 = vld [vmem:[%s2993_s9 + $0x78] sm:$0xff] }
  0x6a   : > { %v3092_v17 = vsel %vm4122_vm4, %v1051_v45, 0.0  ;;  %v3096_v40 = vsel %vm743_vm6, %v1052_v0, 0.0  ;;  %v997_v18 = vadd.f32 %v996_v62, %v973_v32  ;;  %v1006_v63 = vadd.f32 %v1005_v28, %v977_v10  ;;  %vm4123_vm0 = vmmov %vm4122_vm4  ;;  %v1062_v10 = vld [vmem:[%s2993_s9 + $0x90] sm:$0xff]  ;;  %v1063_v37 = vld [vmem:[%s2993_s9 + $0x98] sm:$0xff] }
  0x6b   : > { %v1015_v22 = vadd.f32 %v1014_v58, %v981_v9  ;;  %v3103_v25 = vsel %vm744_vm3, %v1053_v48, 0.0  ;;  %v989_v26 = vadd.f32 %v988_v38, %v970_v21  ;;  %v1024_v1 = vadd.f32 %v1023_v30, %v985_v53  ;;  %vm4124_vm5 = vmmov %vm4123_vm0 }
  0x6c   : > { %v3108_v29 = vsel %vm745_vm9, %v1054_v14, 0.0  ;;  %v3112_v4 = vsel %vm4123_vm0, %v1055_v36, 0.0  ;;  %v998_v27 = vadd.f32 %v997_v18, %v974_v61  ;;  %v1007_v32 = vadd.f32 %v1006_v63, %v978_v34  ;;  %vm4125_vm1 = vmmov %vm4123_vm0 }
  0x6d   : > { %v1016_v3 = vadd.f32 %v1015_v22, %v982_v20  ;;  %v3118_v60 = vsel %vm743_vm6, %v1056_v15, 0.0  ;;  %v990_v21 = vrot.slane %v989_v26, 4  ;;  %v1025_v56 = vadd.f32 %v1024_v1, %v986_v39 }
  0x6e   : > { %v3123_v35 = vsel %vm744_vm3, %v1057_v31, 0.0  ;;  %v3127_v19 = vsel %vm745_vm9, %v1058_v24, 0.0  ;;  %v999_v61 = vrot.slane %v998_v27, 4  ;;  %v1008_v34 = vrot.slane %v1007_v32, 4 }
  0x6f   : > { %v1017_v11 = vrot.slane %v1016_v3, 4  ;;  %v3132_v9 = vsel %vm4124_vm5, %v1059_v16, 0.0  ;;  %v991_v13 = vadd.f32 %v990_v21, %v989_v26  ;;  %v1026_v20 = vrot.slane %v1025_v56, 4 }
  0x70   : > { %v3136_v41 = vsel %vm743_vm6, %v1060_v47, 0.0  ;;  %v3140_v42 = vsel %vm744_vm3, %v1061_v59, 0.0  ;;  %v1000_v45 = vadd.f32 %v999_v61, %v998_v27  ;;  %v1009_v0 = vadd.f32 %v1008_v34, %v1007_v32 }
  0x71   : > { %v1018_v51 = vadd.f32 %v1017_v11, %v1016_v3  ;;  %v3144_v53 = vsel %vm745_vm9, %v1062_v10, 0.0  ;;  %v992_v39 = vrot.slane %v991_v13, 2  ;;  %v1027_v55 = vadd.f32 %v1026_v20, %v1025_v56 }
  0x72   : > { %v3148_v48 = vsel %vm4125_vm1, %v1063_v37, 0.0  ;;  %v1138_v23 = vadd.f32 %v3016_v54, %v3008_v52  ;;  %v1001_v62 = vrot.slane %v1000_v45, 2  ;;  %v1010_v28 = vrot.slane %v1009_v0, 2 }
  0x73   : > { %v1019_v58 = vrot.slane %v1018_v51, 2  ;;  %v1147_v14 = vadd.f32 %v3033_v57, %v3029_v33  ;;  %v993_v36 = vadd.f32 %v992_v39, %v991_v13  ;;  %v1028_v38 = vrot.slane %v1027_v55, 2 }
  0x74   : > { %v1139_v30 = vadd.f32 %v1138_v23, %v3021_v44  ;;  %v1156_v15 = vadd.f32 %v3103_v25, %v3096_v40  ;;  %v1002_v18 = vadd.f32 %v1001_v62, %v1000_v45  ;;  %v1011_v63 = vadd.f32 %v1010_v28, %v1009_v0  ;;  %v2430_v62 = vld [vmem:[%s2661_s18 + $0x18] sm:$0x1f] }
  0x75   : > { %v1020_v22 = vadd.f32 %v1019_v58, %v1018_v51  ;;  %v1148_v31 = vadd.f32 %v1147_v14, %v3037_v2  ;;  %v994_v24 = vrot.slane %v993_v36, 1  ;;  %v1029_v26 = vadd.f32 %v1028_v38, %v1027_v55 }
  0x76   : > { %v1140_v1 = vadd.f32 %v1139_v30, %v3025_v49  ;;  %v1157_v16 = vadd.f32 %v1156_v15, %v3108_v29  ;;  %v1003_v27 = vrot.slane %v1002_v18, 1  ;;  %v1012_v32 = vrot.slane %v1011_v63, 1 }
  0x77   : > { %v1021_v3 = vrot.slane %v1020_v22, 1  ;;  %v1149_v47 = vadd.f32 %v1148_v31, %v3092_v17  ;;  %v995_v59 = vadd.f32 %v994_v24, %v993_v36  ;;  %v1030_v21 = vrot.slane %v1029_v26, 1 }
  0x78   : > { %v1141_v56 = vrot.slane %v1140_v1, 4  ;;  %v1158_v10 = vadd.f32 %v1157_v16, %v3112_v4  ;;  %v1004_v61 = vadd.f32 %v1003_v27, %v1002_v18  ;;  %v1013_v34 = vadd.f32 %v1012_v32, %v1011_v63 }
  0x79   : > { %v1022_v11 = vadd.f32 %v1021_v3, %v1020_v22  ;;  %v1150_v37 = vrot.slane %v1149_v47, 4  ;;  %v1031_v13 = vadd.f32 %v1030_v21, %v1029_v26  ;;  %v1165_v0 = vadd.f32 %v3123_v35, %v3118_v60 }
  0x7a   : > { %v1142_v20 = vadd.f32 %v1141_v56, %v1140_v1  ;;  %v1159_v45 = vrot.slane %v1158_v10, 4  ;;  %v1037_v51 = vsel %vm720_vm8, %v1004_v61, %v995_v59  ;;  %v1174_v55 = vadd.f32 %v3140_v42, %v3136_v41 }
  0x7b   : > { %v1151_v39 = vadd.f32 %v1150_v37, %v1149_v47  ;;  %vm4126_vm7 = vcmp.eq.s32.totalorder %v2668_v5, 0  ;;  %v1038_v28 = vsel %vm722_vm11, %v1013_v34, %v1037_v51  ;;  %v1166_v36 = vadd.f32 %v1165_v0, %v3127_v19 }
  0x7c   : > { %v1084_v23 = vsel %vm4126_vm7, %v3008_v52, 0.0  ;;  %v1143_v58 = vrot.slane %v1142_v20, 2  ;;  %v1160_v14 = vadd.f32 %v1159_v45, %v1158_v10  ;;  %v1039_v38 = vsel %vm724_vm10, %v1022_v11, %v1038_v28 }
  0x7d   : > { %v1152_v30 = vrot.slane %v1151_v39, 2  ;;  %v1175_v15 = vadd.f32 %v1174_v55, %v3144_v53  ;;  %vm4127_vm2 = vcmp.eq.s32.totalorder %v2670_v6, 0  ;;  %v1040_v63 = vsel %vm726_vm15, %v1031_v13, %v1039_v38 }
  0x7e   : > { %v1085_v18 = vsel %vm4127_vm2, %v3016_v54, 0.0  ;;  %v1144_v52 = vadd.f32 %v1143_v58, %v1142_v20  ;;  %v1161_v22 = vrot.slane %v1160_v14, 2  ;;  %v1167_v31 = vadd.f32 %v1166_v36, %v3132_v9 }
  0x7f   : > { %v1042_v24 = vadd.f32 %v2430_v62, %v1040_v63  ;;  %v1153_v26 = vadd.f32 %v1152_v30, %v1151_v39  ;;  %v1176_v1 = vadd.f32 %v1175_v15, %v3148_v48  ;;  %vm4128_vm4 = vcmp.eq.s32.totalorder %v2672_v7, 0  ;;  %v2432_v63 = vld [vmem:[%s2661_s18 + $0x20] sm:$0x1f] }
  0x80   : > { %v1086_v16 = vsel %vm4128_vm4, %v3021_v44, 0.0  ;;  %v1145_v27 = vrot.slane %v1144_v52, 1  ;;  %v1162_v32 = vadd.f32 %v1161_v22, %v1160_v14  ;;  %v1168_v3 = vrot.slane %v1167_v31, 4 }
  0x81   : > { %vm4129_vm0 = vcmp.eq.s32.totalorder %v2674_v8, 0  ;;  %2431 = vst [vmem:[%s2661_s18 + $0x18] sm:$0x1f] %v1042_v24  ;;  %v1154_v47 = vrot.slane %v1153_v26, 1  ;;  %v1177_v59 = vrot.slane %v1176_v1, 4  ;;  %vm4130_vm5 = vcmp.eq.s32.totalorder %v2668_v5, 1 }
  0x82   : > { %v1087_v54 = vsel %vm4129_vm0, %v3025_v49, 0.0  ;;  %v1088_v21 = vsel %vm4130_vm5, %v3029_v33, 0.0  ;;  %vm4131_vm1 = vcmp.eq.s32.totalorder %v2670_v6, 1  ;;  %v1146_v10 = vadd.f32 %v1145_v27, %v1144_v52 }
  0x83   : > { %v1089_v56 = vsel %vm4131_vm1, %v3033_v57, 0.0  ;;  %v1163_v44 = vrot.slane %v1162_v32, 1  ;;  %v1169_v61 = vadd.f32 %v1168_v3, %v1167_v31  ;;  %vm4132_vm7 = vcmp.eq.s32.totalorder %v2672_v7, 1 }
  0x84   : > { %v1090_v34 = vsel %vm4132_vm7, %v3037_v2, 0.0  ;;  %v1155_v11 = vadd.f32 %v1154_v47, %v1153_v26  ;;  %v1178_v49 = vadd.f32 %v1177_v59, %v1176_v1  ;;  %vm4133_vm2 = vcmp.eq.s32.totalorder %v2674_v8, 1 }
  0x85   : > { %v1091_v37 = vsel %vm4133_vm2, %v3092_v17, 0.0  ;;  %vm4134_vm4 = vcmp.eq.s32.totalorder %v2668_v5, 2  ;;  %v1164_v13 = vadd.f32 %v1163_v44, %v1162_v32  ;;  %v1170_v20 = vrot.slane %v1169_v61, 2 }
  0x86   : > { %v1092_v33 = vsel %vm4134_vm4, %v3096_v40, 0.0  ;;  %vm4135_vm0 = vcmp.eq.s32.totalorder %v2670_v6, 2  ;;  %vm4136_vm5 = vcmp.eq.s32.totalorder %v2672_v7, 2  ;;  %v1179_v45 = vrot.slane %v1178_v49, 2 }
  0x87   : > { %v1093_v57 = vsel %vm4135_vm0, %v3103_v25, 0.0  ;;  %v1094_v2 = vsel %vm4136_vm5, %v3108_v29, 0.0  ;;  %v1188_v0 = vsel %vm720_vm8, %v1155_v11, %v1146_v10  ;;  %vm4137_vm1 = vcmp.eq.s32.totalorder %v2674_v8, 2 }
  0x88   : > { %v1095_v17 = vsel %vm4137_vm1, %v3112_v4, 0.0  ;;  %v1096_v40 = vsel %vm621_vm12, %v3118_v60, 0.0  ;;  %v1171_v51 = vadd.f32 %v1170_v20, %v1169_v61  ;;  %v1189_v39 = vsel %vm722_vm11, %v1164_v13, %v1188_v0 }
  0x89   : > { %v1097_v25 = vsel %vm622_vm13, %v3123_v35, 0.0  ;;  %v1098_v29 = vsel %vm623_vm14, %v3127_v19, 0.0  ;;  %v1180_v55 = vadd.f32 %v1179_v45, %v1178_v49  ;;  %vm4138_vm7 = vcmp.eq.s32.totalorder %v2674_v8, 3 }
  0x8a   : > { %v1099_v4 = vsel %vm4138_vm7, %v3132_v9, 0.0  ;;  %vm4139_vm2 = vcmp.eq.s32.totalorder %v2668_v5, 4  ;;  %vm4140_vm4 = vcmp.eq.s32.totalorder %v2670_v6, 4  ;;  %v1172_v28 = vrot.slane %v1171_v51, 1 }
  0x8b   : > { %v1100_v60 = vsel %vm4139_vm2, %v3136_v41, 0.0  ;;  %v1101_v62 = vsel %vm4140_vm4, %v3140_v42, 0.0  ;;  %vm4141_vm0 = vcmp.eq.s32.totalorder %v2672_v7, 4  ;;  %vm4142_vm5 = vcmp.eq.s32.totalorder %v2674_v8, 4 }
  0x8c   : > { %v3235_v35 = vsel %vm4141_vm0, %v3144_v53, 0.0  ;;  %v3240_v19 = vsel %vm4142_vm5, %v3148_v48, 0.0  ;;  %v1104_v9 = vadd.f32 %v1088_v21, %v1084_v23  ;;  %v1181_v58 = vrot.slane %v1180_v55, 1 }
  0x8d   : > { %v1108_v14 = vadd.f32 %v1089_v56, %v1085_v18  ;;  %v1112_v36 = vadd.f32 %v1090_v34, %v1086_v16  ;;  %v1116_v41 = vadd.f32 %v1091_v37, %v1087_v54  ;;  %v1173_v38 = vadd.f32 %v1172_v28, %v1171_v51  ;;  %v1333_v51 = vld [vmem:[%s3251_s12] sm:$0xff] }
  0x8e   : > { %v1105_v30 = vadd.f32 %v1104_v9, %v1092_v33  ;;  %v1197_v15 = vadd.f32 %v1085_v18, %v1084_v23  ;;  %v1206_v42 = vadd.f32 %v1089_v56, %v1088_v21  ;;  %v1182_v52 = vadd.f32 %v1181_v58, %v1180_v55 }
  0x8f   : > { %v1109_v22 = vadd.f32 %v1108_v14, %v1093_v57  ;;  %v1113_v31 = vadd.f32 %v1112_v36, %v1094_v2  ;;  %v1117_v53 = vadd.f32 %v1116_v41, %v1095_v17  ;;  %v1190_v24 = vsel %vm724_vm10, %v1173_v38, %v1189_v39  ;;  %v1334_v14 = vld [vmem:[%s3251_s12 + $0x8] sm:$0xff]  ;;  %v1335_v41 = vld [vmem:[%s3251_s12 + $0x10] sm:$0xff] }
  0x90   : > { %v1106_v26 = vadd.f32 %v1105_v30, %v1096_v40  ;;  %v1198_v48 = vadd.f32 %v1197_v15, %v1086_v16  ;;  %v1207_v1 = vadd.f32 %v1206_v42, %v1090_v34  ;;  %v1191_v27 = vsel %vm726_vm15, %v1182_v52, %v1190_v24  ;;  %v1336_v15 = vld [vmem:[%s3251_s12 + $0x18] sm:$0xff]  ;;  %v1337_v42 = vld [vmem:[%s3251_s12 + $0x20] sm:$0xff]  ;;  %v1338_v52 = vld [vmem:[%s3251_s12 + $0x28] sm:$0xff] }
  0x91   : > { %v1110_v32 = vadd.f32 %v1109_v22, %v1097_v25  ;;  %v1114_v3 = vadd.f32 %v1113_v31, %v1098_v29  ;;  %v1118_v47 = vadd.f32 %v1117_v53, %v1099_v4  ;;  %v1193_v59 = vadd.f32 %v2432_v63, %v1191_v27  ;;  %v1339_v53 = vld [vmem:[%s3251_s12 + $0x30] sm:$0xff] }
  0x92   : > { %v1107_v23 = vadd.f32 %v1106_v26, %v1100_v60  ;;  %v1199_v18 = vadd.f32 %v1198_v48, %v1087_v54  ;;  %v1208_v21 = vadd.f32 %v1207_v1, %v1091_v37  ;;  %v1215_v61 = vadd.f32 %v1093_v57, %v1092_v33  ;;  %v1340_v1 = vld [vmem:[%s3251_s12 + $0x38] sm:$0xff] }
  0x93   : > { %v1111_v56 = vadd.f32 %v1110_v32, %v1101_v62  ;;  %v1115_v10 = vadd.f32 %v1114_v3, %v3235_v35  ;;  %v1119_v44 = vadd.f32 %v1118_v47, %v3240_v19  ;;  %2433 = vst [vmem:[%s2661_s18 + $0x20] sm:$0x1f] %v1193_v59  ;;  %v1224_v49 = vadd.f32 %v1097_v25, %v1096_v40 }
  0x94   : > { %v1120_v16 = vmax.f32 %v1107_v23, 0.005  ;;  %v1200_v34 = vrot.slane %v1199_v18, 4  ;;  %v1209_v11 = vrot.slane %v1208_v21, 4  ;;  %v1216_v20 = vadd.f32 %v1215_v61, %v1094_v2 }
  0x95   : > { %v1121_v13 = vmax.f32 %v1111_v56, 0.005  ;;  %v1122_v54 = vmax.f32 %v1115_v10, 0.005  ;;  %v1123_v37 = vmax.f32 %v1119_v44, 0.005  ;;  %v1225_v57 = vadd.f32 %v1224_v49, %v1098_v29 }
  0x96   : > { %v1124_v45 = vmin.f32 %v1120_v16, 1.0  ;;  %v1201_v0 = vadd.f32 %v1200_v34, %v1199_v18  ;;  %v1210_v33 = vadd.f32 %v1209_v11, %v1208_v21  ;;  %v1217_v9 = vadd.f32 %v1216_v20, %v1095_v17 }
  0x97   : > { %v1125_v39 = vmin.f32 %v1121_v13, 1.0  ;;  %v1126_v55 = vmin.f32 %v1122_v54, 1.0  ;;  %v1127_v28 = vmin.f32 %v1123_v37, 1.0  ;;  %v1226_v25 = vadd.f32 %v1225_v57, %v1099_v4 }
  0x98   : > { %2508 = vlog2.f32 %v1124_v45  ;;  %v1202_v58 = vrot.slane %v1201_v0, 2  ;;  %v1211_v40 = vrot.slane %v1210_v33, 2  ;;  %v1218_v2 = vrot.slane %v1217_v9, 4 }
  0x99   : > { %2510 = vlog2.f32 %v1125_v39  ;;  %v1233_v36 = vadd.f32 %v1101_v62, %v1100_v60  ;;  %v3259_v29 = vsel %vm743_vm6, %v1333_v51, 0.0  ;;  %v1227_v17 = vrot.slane %v1226_v25, 4 }
  0x9a   : > { %2512 = vlog2.f32 %v1126_v55  ;;  %v1203_v38 = vadd.f32 %v1202_v58, %v1201_v0  ;;  %v1212_v30 = vadd.f32 %v1211_v40, %v1210_v33  ;;  %v1219_v4 = vadd.f32 %v1218_v2, %v1217_v9 }
  0x9b   : > { %2514 = vlog2.f32 %v1127_v28  ;;  %v1234_v63 = vadd.f32 %v1233_v36, %v3235_v35  ;;  %v3267_v60 = vsel %vm744_vm3, %v1334_v14, 0.0  ;;  %v1228_v31 = vadd.f32 %v1227_v17, %v1226_v25 }
  0x9c   : > { %v1204_v62 = vrot.slane %v1203_v38, 1  ;;  %v1213_v22 = vrot.slane %v1212_v30, 1  ;;  %v3272_v24 = vsel %vm745_vm9, %v1335_v41, 0.0  ;;  %v1220_v26 = vrot.slane %v1219_v4, 2 }
  0x9d   : > { %v1235_v48 = vadd.f32 %v1234_v63, %v3240_v19  ;;  %vm4143_vm1 = vcmp.lt.s32.totalorder %v2812_v50, 32  ;;  %v3282_v27 = vsel %vm743_vm6, %v1337_v42, 0.0  ;;  %v1229_v59 = vrot.slane %v1228_v31, 2 }
  0x9e   : > { %v3278_v35 = vsel %vm4143_vm1, %v1336_v15, 0.0  ;;  %v2509_v32 = vpop.eup %2508  ;;  %v1205_v3 = vadd.f32 %v1204_v62, %v1203_v38  ;;  %v1214_v47 = vadd.f32 %v1213_v22, %v1212_v30  ;;  %v3286_v23 = vsel %vm744_vm3, %v1338_v52, 0.0  ;;  %vm4144_vm7 = vmmov %vm4143_vm1  ;;  %v1341_v62 = vld [vmem:[%s3251_s12 + $0x40] sm:$0xff]  ;;  %v1342_v22 = vld [vmem:[%s3251_s12 + $0x48] sm:$0xff] }
  0x9f   : > { %v2511_v18 = vpop.eup %2510  ;;  %v1129_v21 = vmul.f32 0.6931472, %v2509_v32  ;;  %v1221_v19 = vadd.f32 %v1220_v26, %v1219_v4  ;;  %v1236_v56 = vrot.slane %v1235_v48, 4  ;;  %v3290_v10 = vsel %vm745_vm9, %v1339_v53, 0.0 }
  0xa0   : > { %v2513_v44 = vpop.eup %2512  ;;  %v1131_v61 = vmul.f32 0.6931472, %v2511_v18  ;;  %v1230_v16 = vadd.f32 %v1229_v59, %v1228_v31  ;;  %v1247_v34 = vsel %vm720_vm8, %v1214_v47, %v1205_v3  ;;  %v3295_v11 = vsel %vm4144_vm7, %v1340_v1, 0.0  ;;  %v2434_v1 = vld [vmem:[%s2661_s18 + $0x28] sm:$0x1f]  ;;  %v1343_v18 = vld [vmem:[%s3251_s12 + $0x50] sm:$0xff] }
  0xa1   : > { %v2515_v49 = vpop.eup %2514  ;;  %v1133_v13 = vmul.f32 0.6931472, %v2513_v44  ;;  %v1222_v54 = vrot.slane %v1221_v19, 1  ;;  %v1237_v37 = vadd.f32 %v1236_v56, %v1235_v48  ;;  %vm4145_vm2 = vcmp.eq.s32.totalorder %v2668_v5, 0  ;;  %v1344_v56 = vld [vmem:[%s3251_s12 + $0x58] sm:$0xff] }
  0xa2   : > { %v1256_v20 = vsel %vm4145_vm2, %v1129_v21, 0.0  ;;  %v1135_v45 = vmul.f32 0.6931472, %v2515_v49  ;;  %v1231_v0 = vrot.slane %v1230_v16, 1  ;;  %vm4146_vm4 = vcmp.eq.s32.totalorder %v2670_v6, 0 }
  0xa3   : > { %v1257_v33 = vsel %vm4146_vm4, %v1131_v61, 0.0  ;;  %vm4147_vm0 = vcmp.eq.s32.totalorder %v2668_v5, 1  ;;  %v1223_v51 = vadd.f32 %v1222_v54, %v1221_v19  ;;  %v1238_v39 = vrot.slane %v1237_v37, 2  ;;  %v1345_v54 = vld [vmem:[%s3251_s12 + $0x60] sm:$0xff] }
  0xa4   : > { %v1260_v57 = vsel %vm4147_vm0, %v1129_v21, 0.0  ;;  %vm4148_vm5 = vcmp.eq.s32.totalorder %v2672_v7, 0  ;;  %vm4149_vm1 = vcmp.eq.s32.totalorder %v2670_v6, 1  ;;  %v1232_v9 = vadd.f32 %v1231_v0, %v1230_v16 }
  0xa5   : > { %v1258_v55 = vsel %vm4148_vm5, %v1133_v13, 0.0  ;;  %v1261_v28 = vsel %vm4149_vm1, %v1131_v61, 0.0  ;;  %vm4150_vm7 = vcmp.eq.s32.totalorder %v2674_v8, 0  ;;  %vm4151_vm2 = vcmp.eq.s32.totalorder %v2672_v7, 1 }
  0xa6   : > { %v1259_v58 = vsel %vm4150_vm7, %v1135_v45, 0.0  ;;  %v1262_v40 = vsel %vm4151_vm2, %v1133_v13, 0.0  ;;  %vm4152_vm4 = vcmp.eq.s32.totalorder %v2674_v8, 1  ;;  %v1239_v14 = vadd.f32 %v1238_v39, %v1237_v37  ;;  %v1346_v37 = vld [vmem:[%s3251_s12 + $0x68] sm:$0xff] }
  0xa7   : > { %v1263_v25 = vsel %vm4152_vm4, %v1135_v45, 0.0  ;;  %v1248_v2 = vsel %vm722_vm11, %v1223_v51, %v1247_v34  ;;  %vm4153_vm0 = vcmp.eq.s32.totalorder %v2668_v5, 2  ;;  %vm4154_vm5 = vcmp.eq.s32.totalorder %v2670_v6, 2 }
  0xa8   : > { %v1264_v36 = vsel %vm4153_vm0, %v1129_v21, 0.0  ;;  %v1265_v41 = vsel %vm4154_vm5, %v1131_v61, 0.0  ;;  %v1249_v38 = vsel %vm724_vm10, %v1232_v9, %v1248_v2  ;;  %vm4155_vm1 = vcmp.eq.s32.totalorder %v2672_v7, 2  ;;  %v1349_v9 = vld [vmem:[%s3251_s12 + $0x80] sm:$0xff] }
  0xa9   : > { %v1266_v30 = vsel %vm4155_vm1, %v1133_v13, 0.0  ;;  %vm4156_vm7 = vcmp.eq.s32.totalorder %v2674_v8, 2  ;;  %v1268_v15 = vsel %vm621_vm12, %v1129_v21, 0.0  ;;  %v1240_v42 = vrot.slane %v1239_v14, 1 }
  0xaa   : > { %v1267_v17 = vsel %vm4156_vm7, %v1135_v45, 0.0  ;;  %v1269_v4 = vsel %vm622_vm13, %v1131_v61, 0.0  ;;  %v1270_v63 = vsel %vm623_vm14, %v1133_v13, 0.0  ;;  %vm4157_vm2 = vcmp.eq.s32.totalorder %v2674_v8, 3 }
  0xab   : > { %v1271_v52 = vsel %vm4157_vm2, %v1135_v45, 0.0  ;;  %vm4158_vm4 = vcmp.eq.s32.totalorder %v2668_v5, 4  ;;  %vm4159_vm0 = vcmp.eq.s32.totalorder %v2670_v6, 4  ;;  %vm4160_vm5 = vcmp.eq.s32.totalorder %v2672_v7, 4 }
  0xac   : > { %v1272_v31 = vsel %vm4158_vm4, %v1129_v21, 0.0  ;;  %v1273_v53 = vsel %vm4159_vm0, %v1131_v61, 0.0  ;;  %v1274_v26 = vsel %vm4160_vm5, %v1133_v13, 0.0  ;;  %vm4161_vm1 = vcmp.eq.s32.totalorder %v2674_v8, 4 }
  0xad   : > { %v1275_v48 = vsel %vm4161_vm1, %v1135_v45, 0.0  ;;  %v1241_v32 = vadd.f32 %v1240_v42, %v1239_v14  ;;  %v1276_v3 = vadd.f32 %v1257_v33, %v1256_v20  ;;  %v1285_v47 = vadd.f32 %v1261_v28, %v1260_v57  ;;  %v1347_v33 = vld [vmem:[%s3251_s12 + $0x70] sm:$0xff] }
  0xae   : > { %v1294_v59 = vadd.f32 %v1265_v41, %v1264_v36  ;;  %v1303_v19 = vadd.f32 %v1269_v4, %v1268_v15  ;;  %v1312_v21 = vadd.f32 %v1273_v53, %v1272_v31  ;;  %v3346_v44 = vsel %vm743_vm6, %v1341_v62, 0.0  ;;  %v1350_v36 = vld [vmem:[%s3251_s12 + $0x88] sm:$0xff]  ;;  %v1352_v15 = vld [vmem:[%s3251_s12 + $0x98] sm:$0xff] }
  0xaf   : > { %v3350_v61 = vsel %vm744_vm3, %v1342_v22, 0.0  ;;  %v1250_v16 = vsel %vm726_vm15, %v1241_v32, %v1249_v38  ;;  %v1277_v34 = vadd.f32 %v1276_v3, %v1258_v55  ;;  %v1286_v49 = vadd.f32 %v1285_v47, %v1262_v40  ;;  %v1348_v55 = vld [vmem:[%s3251_s12 + $0x78] sm:$0xff] }
  0xb0   : > { %v1295_v13 = vadd.f32 %v1294_v59, %v1266_v30  ;;  %v1252_v20 = vadd.f32 %v2434_v1, %v1250_v16  ;;  %v1304_v45 = vadd.f32 %v1303_v19, %v1270_v63  ;;  %v1313_v0 = vadd.f32 %v1312_v21, %v1274_v26 }
  0xb1   : > { %v3358_v57 = vsel %vm745_vm9, %v1343_v18, 0.0  ;;  %v1278_v51 = vadd.f32 %v1277_v34, %v1259_v58  ;;  %v1287_v39 = vadd.f32 %v1286_v49, %v1263_v25  ;;  %vm4162_vm7 = vcmp.lt.s32.totalorder %v2812_v50, 32 }
  0xb2   : > { %v1296_v28 = vadd.f32 %v1295_v13, %v1267_v17  ;;  %v3364_v40 = vsel %vm4162_vm7, %v1344_v56, 0.0  ;;  %2435 = vst [vmem:[%s2661_s18 + $0x28] sm:$0x1f] %v1252_v20  ;;  %v1305_v14 = vadd.f32 %v1304_v45, %v1271_v52  ;;  %v1314_v2 = vadd.f32 %v1313_v0, %v1275_v48  ;;  %v1351_v17 = vld [vmem:[%s3251_s12 + $0x90] sm:$0xff]  ;;  %vm4163_vm2 = vmmov %vm4162_vm7 }
  0xb3   : > { %v3370_v41 = vsel %vm743_vm6, %v1345_v54, 0.0  ;;  %v3374_v58 = vsel %vm744_vm3, %v1346_v37, 0.0  ;;  %v1279_v25 = vrot.slane %v1278_v51, 4  ;;  %v1288_v38 = vrot.slane %v1287_v39, 4  ;;  %vm4164_vm4 = vmmov %vm4163_vm2 }
  0xb4   : > { %v1297_v30 = vrot.slane %v1296_v28, 4  ;;  %v3380_v42 = vsel %vm745_vm9, %v1347_v33, 0.0  ;;  %v1306_v4 = vrot.slane %v1305_v14, 4  ;;  %v1315_v63 = vrot.slane %v1314_v2, 4 }
  0xb5   : > { %v3384_v52 = vsel %vm4163_vm2, %v1348_v55, 0.0  ;;  %v3388_v62 = vsel %vm743_vm6, %v1349_v9, 0.0  ;;  %v1280_v22 = vadd.f32 %v1279_v25, %v1278_v51  ;;  %v1289_v31 = vadd.f32 %v1288_v38, %v1287_v39 }
  0xb6   : > { %v1298_v53 = vadd.f32 %v1297_v30, %v1296_v28  ;;  %v3392_v26 = vsel %vm744_vm3, %v1350_v36, 0.0  ;;  %v1307_v48 = vadd.f32 %v1306_v4, %v1305_v14  ;;  %v1316_v1 = vadd.f32 %v1315_v63, %v1314_v2 }
  0xb7   : > { %v3396_v32 = vsel %vm745_vm9, %v1351_v17, 0.0  ;;  %v3400_v3 = vsel %vm4164_vm4, %v1352_v15, 0.0  ;;  %v1281_v47 = vrot.slane %v1280_v22, 2  ;;  %v1290_v59 = vrot.slane %v1289_v31, 2 }
  0xb8   : > { %v1299_v18 = vrot.slane %v1298_v53, 2  ;;  %v1427_v19 = vadd.f32 %v3267_v60, %v3259_v29  ;;  %v1308_v21 = vrot.slane %v1307_v48, 2  ;;  %v1317_v56 = vrot.slane %v1316_v1, 2 }
  0xb9   : > { %v1436_v16 = vadd.f32 %v3286_v23, %v3282_v27  ;;  %v1445_v34 = vadd.f32 %v3350_v61, %v3346_v44  ;;  %v1282_v49 = vadd.f32 %v1281_v47, %v1280_v22  ;;  %v1291_v13 = vadd.f32 %v1290_v59, %v1289_v31  ;;  %v2436_v47 = vld [vmem:[%s2661_s18 + $0x30] sm:$0x1f] }
  0xba   : > { %v1300_v54 = vadd.f32 %v1299_v18, %v1298_v53  ;;  %v1428_v37 = vadd.f32 %v1427_v19, %v3272_v24  ;;  %v1309_v20 = vadd.f32 %v1308_v21, %v1307_v48  ;;  %v1318_v45 = vadd.f32 %v1317_v56, %v1316_v1 }
  0xbb   : > { %v1437_v0 = vadd.f32 %v1436_v16, %v3290_v10  ;;  %v1446_v33 = vadd.f32 %v1445_v34, %v3358_v57  ;;  %v1283_v51 = vrot.slane %v1282_v49, 1  ;;  %v1292_v39 = vrot.slane %v1291_v13, 1 }
  0xbc   : > { %v1301_v28 = vrot.slane %v1300_v54, 1  ;;  %v1429_v55 = vadd.f32 %v1428_v37, %v3278_v35  ;;  %v1310_v9 = vrot.slane %v1309_v20, 1  ;;  %v1319_v14 = vrot.slane %v1318_v45, 1 }
  0xbd   : > { %v1438_v2 = vadd.f32 %v1437_v0, %v3295_v11  ;;  %v1447_v36 = vadd.f32 %v1446_v33, %v3364_v40  ;;  %v1284_v25 = vadd.f32 %v1283_v51, %v1282_v49  ;;  %v1293_v38 = vadd.f32 %v1292_v39, %v1291_v13 }
  0xbe   : > { %v1302_v30 = vadd.f32 %v1301_v28, %v1300_v54  ;;  %v1430_v17 = vrot.slane %v1429_v55, 4  ;;  %v1311_v15 = vadd.f32 %v1310_v9, %v1309_v20  ;;  %v1320_v4 = vadd.f32 %v1319_v14, %v1318_v45 }
  0xbf   : > { %v1439_v63 = vrot.slane %v1438_v2, 4  ;;  %v1448_v22 = vrot.slane %v1447_v36, 4  ;;  %v1326_v31 = vsel %vm720_vm8, %v1293_v38, %v1284_v25  ;;  %v1454_v48 = vadd.f32 %v3374_v58, %v3370_v41 }
  0xc0   : > { %v1431_v53 = vadd.f32 %v1430_v17, %v1429_v55  ;;  %v1463_v1 = vadd.f32 %v3392_v26, %v3388_v62  ;;  %v1327_v59 = vsel %vm722_vm11, %v1302_v30, %v1326_v31  ;;  %vm4165_vm0 = vcmp.eq.s32.totalorder %v2668_v5, 0 }
  0xc1   : > { %v1440_v18 = vadd.f32 %v1439_v63, %v1438_v2  ;;  %v1449_v19 = vadd.f32 %v1448_v22, %v1447_v36  ;;  %v1373_v21 = vsel %vm4165_vm0, %v3259_v29, 0.0  ;;  %v1328_v56 = vsel %vm724_vm10, %v1311_v15, %v1327_v59 }
  0xc2   : > { %v1432_v16 = vrot.slane %v1431_v53, 2  ;;  %v1455_v34 = vadd.f32 %v1454_v48, %v3380_v42  ;;  %v1464_v49 = vadd.f32 %v1463_v1, %v3396_v32  ;;  %v1329_v13 = vsel %vm726_vm15, %v1320_v4, %v1328_v56 }
  0xc3   : > { %v1441_v54 = vrot.slane %v1440_v18, 2  ;;  %v1450_v37 = vrot.slane %v1449_v19, 2  ;;  %vm4166_vm5 = vcmp.eq.s32.totalorder %v2670_v6, 0  ;;  %v1331_v45 = vadd.f32 %v2436_v47, %v1329_v13 }
  0xc4   : > { %v1374_v20 = vsel %vm4166_vm5, %v3267_v60, 0.0  ;;  %v1433_v0 = vadd.f32 %v1432_v16, %v1431_v53  ;;  %v1456_v29 = vadd.f32 %v1455_v34, %v3384_v52  ;;  %v1465_v33 = vadd.f32 %v1464_v49, %v3400_v3 }
  0xc5   : > { %v1442_v51 = vadd.f32 %v1441_v54, %v1440_v18  ;;  %v1451_v39 = vadd.f32 %v1450_v37, %v1449_v19  ;;  %vm4167_vm1 = vcmp.eq.s32.totalorder %v2672_v7, 0  ;;  %vm4168_vm7 = vcmp.eq.s32.totalorder %v2674_v8, 0  ;;  %2437 = vst [vmem:[%s2661_s18 + $0x30] sm:$0x1f] %v1331_v45  ;;  %v2438_v45 = vld [vmem:[%s2661_s18 + $0x38] sm:$0x1f] }
  0xc6   : > { %v1375_v28 = vsel %vm4167_vm1, %v3272_v24, 0.0  ;;  %v1376_v55 = vsel %vm4168_vm7, %v3278_v35, 0.0  ;;  %v1434_v9 = vrot.slane %v1433_v0, 1  ;;  %v1457_v14 = vrot.slane %v1456_v29, 4 }
  0xc7   : > { %v1466_v60 = vrot.slane %v1465_v33, 4  ;;  %vm4169_vm2 = vcmp.eq.s32.totalorder %v2668_v5, 1  ;;  %v1443_v36 = vrot.slane %v1442_v51, 1  ;;  %v1452_v25 = vrot.slane %v1451_v39, 1 }
  0xc8   : > { %v1377_v2 = vsel %vm4169_vm2, %v3282_v27, 0.0  ;;  %vm4170_vm4 = vcmp.eq.s32.totalorder %v2670_v6, 1  ;;  %vm4171_vm0 = vcmp.eq.s32.totalorder %v2672_v7, 1  ;;  %v1435_v30 = vadd.f32 %v1434_v9, %v1433_v0 }
  0xc9   : > { %v1378_v38 = vsel %vm4170_vm4, %v3286_v23, 0.0  ;;  %v1379_v24 = vsel %vm4171_vm0, %v3290_v10, 0.0  ;;  %v1458_v35 = vadd.f32 %v1457_v14, %v1456_v29  ;;  %v1467_v17 = vadd.f32 %v1466_v60, %v1465_v33 }
  0xca   : > { %vm4172_vm5 = vcmp.eq.s32.totalorder %v2674_v8, 1  ;;  %v1444_v4 = vadd.f32 %v1443_v36, %v1442_v51  ;;  %v1453_v63 = vadd.f32 %v1452_v25, %v1451_v39  ;;  %vm4173_vm1 = vcmp.eq.s32.totalorder %v2668_v5, 2 }
  0xcb   : > { %v1380_v15 = vsel %vm4172_vm5, %v3295_v11, 0.0  ;;  %v1381_v27 = vsel %vm4173_vm1, %v3346_v44, 0.0  ;;  %vm4174_vm7 = vcmp.eq.s32.totalorder %v2670_v6, 2  ;;  %v1459_v22 = vrot.slane %v1458_v35, 2 }
  0xcc   : > { %v1382_v23 = vsel %vm4174_vm7, %v3350_v61, 0.0  ;;  %v1468_v31 = vrot.slane %v1467_v17, 2  ;;  %vm4175_vm2 = vcmp.eq.s32.totalorder %v2672_v7, 2  ;;  %vm4176_vm4 = vcmp.eq.s32.totalorder %v2674_v8, 2 }
  0xcd   : > { %v1383_v10 = vsel %vm4175_vm2, %v3358_v57, 0.0  ;;  %v1384_v11 = vsel %vm4176_vm4, %v3364_v40, 0.0  ;;  %v1477_v53 = vsel %vm720_vm8, %v1444_v4, %v1435_v30  ;;  %v1385_v44 = vsel %vm621_vm12, %v3370_v41, 0.0 }
  0xce   : > { %v1386_v61 = vsel %vm622_vm13, %v3374_v58, 0.0  ;;  %v1387_v48 = vsel %vm623_vm14, %v3380_v42, 0.0  ;;  %v1460_v1 = vadd.f32 %v1459_v22, %v1458_v35  ;;  %v1469_v57 = vadd.f32 %v1468_v31, %v1467_v17 }
  0xcf   : > { %v1478_v47 = vsel %vm722_vm11, %v1453_v63, %v1477_v53  ;;  %vm4177_vm0 = vcmp.eq.s32.totalorder %v2674_v8, 3  ;;  %vm4178_vm5 = vcmp.eq.s32.totalorder %v2668_v5, 4  ;;  %vm4179_vm1 = vcmp.eq.s32.totalorder %v2670_v6, 4 }
  0xd0   : > { %v1388_v40 = vsel %vm4177_vm0, %v3384_v52, 0.0  ;;  %v1389_v41 = vsel %vm4178_vm5, %v3388_v62, 0.0  ;;  %v1390_v58 = vsel %vm4179_vm1, %v3392_v26, 0.0  ;;  %vm4180_vm7 = vcmp.eq.s32.totalorder %v2672_v7, 4 }
  0xd1   : > { %v1391_v42 = vsel %vm4180_vm7, %v3396_v32, 0.0  ;;  %vm4181_vm2 = vcmp.eq.s32.totalorder %v2674_v8, 4  ;;  %v1461_v18 = vrot.slane %v1460_v1, 1  ;;  %v1470_v52 = vrot.slane %v1469_v57, 1 }
  0xd2   : > { %v3490_v59 = vsel %vm4181_vm2, %v3400_v3, 0.0  ;;  %v1393_v19 = vadd.f32 %v1377_v2, %v1373_v21  ;;  %v1397_v56 = vadd.f32 %v1378_v38, %v1374_v20  ;;  %v1401_v16 = vadd.f32 %v1379_v24, %v1375_v28 }
  0xd3   : > { %v1405_v62 = vadd.f32 %v1380_v15, %v1376_v55  ;;  %v1486_v34 = vadd.f32 %v1374_v20, %v1373_v21  ;;  %v1495_v49 = vadd.f32 %v1378_v38, %v1377_v2  ;;  %v1462_v13 = vadd.f32 %v1461_v18, %v1460_v1 }
  0xd4   : > { %v1471_v54 = vadd.f32 %v1470_v52, %v1469_v57  ;;  %v1394_v26 = vadd.f32 %v1393_v19, %v1381_v27  ;;  %v1398_v37 = vadd.f32 %v1397_v56, %v1382_v23  ;;  %v1402_v0 = vadd.f32 %v1401_v16, %v1383_v10  ;;  %v1622_v57 = vld [vmem:[%s3500_s15] sm:$0xff] }
  0xd5   : > { %v1406_v32 = vadd.f32 %v1405_v62, %v1384_v11  ;;  %v1487_v29 = vadd.f32 %v1486_v34, %v1375_v28  ;;  %v1496_v33 = vadd.f32 %v1495_v49, %v1379_v24  ;;  %v1479_v3 = vsel %vm724_vm10, %v1462_v13, %v1478_v47  ;;  %v1624_v62 = vld [vmem:[%s3500_s15 + $0x10] sm:$0xff]  ;;  %v1625_v13 = vld [vmem:[%s3500_s15 + $0x18] sm:$0xff] }
  0xd6   : > { %v1395_v51 = vadd.f32 %v1394_v26, %v1385_v44  ;;  %v1399_v39 = vadd.f32 %v1398_v37, %v1386_v61  ;;  %v1504_v9 = vadd.f32 %v1382_v23, %v1381_v27  ;;  %v1480_v14 = vsel %vm726_vm15, %v1471_v54, %v1479_v3  ;;  %v1627_v26 = vld [vmem:[%s3500_s15 + $0x28] sm:$0xff] }
  0xd7   : > { %v1403_v21 = vadd.f32 %v1402_v0, %v1387_v48  ;;  %v1407_v20 = vadd.f32 %v1406_v32, %v1388_v40  ;;  %v1488_v60 = vadd.f32 %v1487_v29, %v1376_v55  ;;  %v1482_v2 = vadd.f32 %v2438_v45, %v1480_v14  ;;  %v1628_v29 = vld [vmem:[%s3500_s15 + $0x30] sm:$0xff] }
  0xd8   : > { %v1396_v36 = vadd.f32 %v1395_v51, %v1389_v41  ;;  %v1400_v25 = vadd.f32 %v1399_v39, %v1390_v58  ;;  %v1497_v38 = vadd.f32 %v1496_v33, %v1380_v15  ;;  %v1505_v35 = vadd.f32 %v1504_v9, %v1383_v10  ;;  %v1629_v33 = vld [vmem:[%s3500_s15 + $0x38] sm:$0xff] }
  0xd9   : > { %v1404_v30 = vadd.f32 %v1403_v21, %v1391_v42  ;;  %v1408_v28 = vadd.f32 %v1407_v20, %v3490_v59  ;;  %v1489_v24 = vrot.slane %v1488_v60, 4  ;;  %2439 = vst [vmem:[%s2661_s18 + $0x38] sm:$0x1f] %v1482_v2  ;;  %v1513_v63 = vadd.f32 %v1386_v61, %v1385_v44 }
  0xda   : > { %v1409_v17 = vmax.f32 %v1396_v36, 0.005  ;;  %v1410_v4 = vmax.f32 %v1400_v25, 0.005  ;;  %v1522_v55 = vadd.f32 %v1390_v58, %v1389_v41  ;;  %v1498_v22 = vrot.slane %v1497_v38, 4  ;;  %v1623_v58 = vld [vmem:[%s3500_s15 + $0x8] sm:$0xff] }
  0xdb   : > { %v1411_v27 = vmax.f32 %v1404_v30, 0.005  ;;  %v1412_v23 = vmax.f32 %v1408_v28, 0.005  ;;  %v1490_v15 = vadd.f32 %v1489_v24, %v1488_v60  ;;  %v1506_v10 = vadd.f32 %v1505_v35, %v1384_v11 }
  0xdc   : > { %v1413_v31 = vmin.f32 %v1409_v17, 1.0  ;;  %v1414_v53 = vmin.f32 %v1410_v4, 1.0  ;;  %v1514_v1 = vadd.f32 %v1513_v63, %v1387_v48  ;;  %v1499_v19 = vadd.f32 %v1498_v22, %v1497_v38 }
  0xdd   : > { %v1415_v47 = vmin.f32 %v1411_v27, 1.0  ;;  %v1416_v18 = vmin.f32 %v1412_v23, 1.0  ;;  %v1491_v52 = vrot.slane %v1490_v15, 2  ;;  %v1507_v44 = vrot.slane %v1506_v10, 4 }
  0xde   : > { %2516 = vlog2.f32 %v1413_v31  ;;  %v1515_v61 = vadd.f32 %v1514_v1, %v1388_v40  ;;  %v1523_v41 = vadd.f32 %v1522_v55, %v1391_v42  ;;  %v1500_v16 = vrot.slane %v1499_v19, 2  ;;  %v1626_v40 = vld [vmem:[%s3500_s15 + $0x20] sm:$0xff] }
  0xdf   : > { %2518 = vlog2.f32 %v1414_v53  ;;  %v1492_v56 = vadd.f32 %v1491_v52, %v1490_v15  ;;  %v3508_v11 = vsel %vm743_vm6, %v1622_v57, 0.0  ;;  %v1508_v48 = vadd.f32 %v1507_v44, %v1506_v10 }
  0xe0   : > { %2520 = vlog2.f32 %v1415_v47  ;;  %v1516_v34 = vrot.slane %v1515_v61, 4  ;;  %v1524_v49 = vadd.f32 %v1523_v41, %v3490_v59  ;;  %v1501_v54 = vadd.f32 %v1500_v16, %v1499_v19 }
  0xe1   : > { %2522 = vlog2.f32 %v1416_v18  ;;  %v1493_v42 = vrot.slane %v1492_v56, 1  ;;  %v3516_v37 = vsel %vm744_vm3, %v1623_v58, 0.0  ;;  %v1509_v45 = vrot.slane %v1508_v48, 2 }
  0xe2   : > { %v1517_v0 = vadd.f32 %v1516_v34, %v1515_v61  ;;  %v1525_v32 = vrot.slane %v1524_v49, 4  ;;  %v3522_v3 = vsel %vm745_vm9, %v1624_v62, 0.0  ;;  %v1502_v51 = vrot.slane %v1501_v54, 1 }
  0xe3   : > { %v1494_v59 = vadd.f32 %v1493_v42, %v1492_v56  ;;  %vm4182_vm4 = vcmp.lt.s32.totalorder %v2812_v50, 32  ;;  %v3530_v9 = vsel %vm743_vm6, %v1626_v40, 0.0  ;;  %v1510_v21 = vadd.f32 %v1509_v45, %v1508_v48  ;;  %v2440_v48 = vld [vmem:[%s2661_s18 + $0x40] sm:$0x1f] }
  0xe4   : > { %v3526_v39 = vsel %vm4182_vm4, %v1625_v13, 0.0  ;;  %v2517_v14 = vpop.eup %2516  ;;  %v1518_v20 = vrot.slane %v1517_v0, 2  ;;  %v1526_v60 = vadd.f32 %v1525_v32, %v1524_v49  ;;  %v3534_v2 = vsel %vm744_vm3, %v1627_v26, 0.0  ;;  %vm4183_vm0 = vmmov %vm4182_vm4  ;;  %v1631_v32 = vld [vmem:[%s3500_s15 + $0x48] sm:$0xff] }
  0xe5   : > { %v2519_v36 = vpop.eup %2518  ;;  %v1418_v25 = vmul.f32 0.6931472, %v2517_v14  ;;  %v1503_v38 = vadd.f32 %v1502_v51, %v1501_v54  ;;  %v3538_v30 = vsel %vm745_vm9, %v1628_v29, 0.0  ;;  %v3542_v28 = vsel %vm4183_vm0, %v1629_v33, 0.0  ;;  %v1632_v14 = vld [vmem:[%s3500_s15 + $0x50] sm:$0xff] }
  0xe6   : > { %v2521_v24 = vpop.eup %2520  ;;  %v1420_v35 = vmul.f32 0.6931472, %v2519_v36  ;;  %v1511_v17 = vrot.slane %v1510_v21, 1  ;;  %v1519_v4 = vadd.f32 %v1518_v20, %v1517_v0  ;;  %v1527_v63 = vrot.slane %v1526_v60, 2  ;;  %v1630_v0 = vld [vmem:[%s3500_s15 + $0x40] sm:$0xff] }
  0xe7   : > { %v2523_v55 = vpop.eup %2522  ;;  %v1422_v27 = vmul.f32 0.6931472, %v2521_v24  ;;  %v1536_v23 = vsel %vm720_vm8, %v1503_v38, %v1494_v59  ;;  %vm4184_vm5 = vcmp.eq.s32.totalorder %v2668_v5, 0  ;;  %vm4185_vm1 = vcmp.eq.s32.totalorder %v2668_v5, 1  ;;  %v1634_v38 = vld [vmem:[%s3500_s15 + $0x60] sm:$0xff] }
  0xe8   : > { %v1545_v15 = vsel %vm4184_vm5, %v1418_v25, 0.0  ;;  %v1549_v22 = vsel %vm4185_vm1, %v1418_v25, 0.0  ;;  %v1424_v31 = vmul.f32 0.6931472, %v2523_v55  ;;  %v1512_v53 = vadd.f32 %v1511_v17, %v1510_v21 }
  0xe9   : > { %v1520_v10 = vrot.slane %v1519_v4, 1  ;;  %v1528_v1 = vadd.f32 %v1527_v63, %v1526_v60  ;;  %vm4186_vm7 = vcmp.eq.s32.totalorder %v2670_v6, 0  ;;  %vm4187_vm2 = vcmp.eq.s32.totalorder %v2672_v7, 0 }
  0xea   : > { %v1546_v57 = vsel %vm4186_vm7, %v1420_v35, 0.0  ;;  %v1547_v47 = vsel %vm4187_vm2, %v1422_v27, 0.0  ;;  %vm4188_vm4 = vcmp.eq.s32.totalorder %v2670_v6, 1  ;;  %vm4189_vm0 = vcmp.eq.s32.totalorder %v2672_v7, 1 }
  0xeb   : > { %v1550_v18 = vsel %vm4188_vm4, %v1420_v35, 0.0  ;;  %v1551_v52 = vsel %vm4189_vm0, %v1422_v27, 0.0  ;;  %v1521_v19 = vadd.f32 %v1520_v10, %v1519_v4  ;;  %v1529_v44 = vrot.slane %v1528_v1, 1  ;;  %v1635_v4 = vld [vmem:[%s3500_s15 + $0x68] sm:$0xff] }
  0xec   : > { %v1537_v61 = vsel %vm722_vm11, %v1512_v53, %v1536_v23  ;;  %vm4190_vm5 = vcmp.eq.s32.totalorder %v2674_v8, 0  ;;  %vm4191_vm1 = vcmp.eq.s32.totalorder %v2674_v8, 1  ;;  %vm4192_vm7 = vcmp.eq.s32.totalorder %v2668_v5, 2 }
  0xed   : > { %v1548_v41 = vsel %vm4190_vm5, %v1424_v31, 0.0  ;;  %v1552_v58 = vsel %vm4191_vm1, %v1424_v31, 0.0  ;;  %v1553_v56 = vsel %vm4192_vm7, %v1418_v25, 0.0  ;;  %vm4193_vm2 = vcmp.eq.s32.totalorder %v2670_v6, 2 }
  0xee   : > { %v1554_v16 = vsel %vm4193_vm2, %v1420_v35, 0.0  ;;  %vm4194_vm4 = vcmp.eq.s32.totalorder %v2672_v7, 2  ;;  %v1530_v34 = vadd.f32 %v1529_v44, %v1528_v1  ;;  %v1538_v49 = vsel %vm724_vm10, %v1521_v19, %v1537_v61  ;;  %v1638_v1 = vld [vmem:[%s3500_s15 + $0x80] sm:$0xff]  ;;  %v1639_v44 = vld [vmem:[%s3500_s15 + $0x88] sm:$0xff]  ;;  %v1640_v61 = vld [vmem:[%s3500_s15 + $0x90] sm:$0xff] }
  0xef   : > { %v1555_v62 = vsel %vm4194_vm4, %v1422_v27, 0.0  ;;  %vm4195_vm0 = vcmp.eq.s32.totalorder %v2674_v8, 2  ;;  %v1557_v40 = vsel %vm621_vm12, %v1418_v25, 0.0  ;;  %v1558_v42 = vsel %vm622_vm13, %v1420_v35, 0.0 }
  0xf0   : > { %v1556_v13 = vsel %vm4195_vm0, %v1424_v31, 0.0  ;;  %v1559_v54 = vsel %vm623_vm14, %v1422_v27, 0.0  ;;  %vm4196_vm5 = vcmp.eq.s32.totalorder %v2674_v8, 3  ;;  %vm4197_vm1 = vcmp.eq.s32.totalorder %v2668_v5, 4 }
  0xf1   : > { %v1560_v26 = vsel %vm4196_vm5, %v1424_v31, 0.0  ;;  %v1561_v45 = vsel %vm4197_vm1, %v1418_v25, 0.0  ;;  %v1539_v29 = vsel %vm726_vm15, %v1530_v34, %v1538_v49  ;;  %vm4198_vm7 = vcmp.eq.s32.totalorder %v2670_v6, 4  ;;  %v1633_v25 = vld [vmem:[%s3500_s15 + $0x58] sm:$0xff] }
  0xf2   : > { %v1562_v33 = vsel %vm4198_vm7, %v1420_v35, 0.0  ;;  %vm4199_vm2 = vcmp.eq.s32.totalorder %v2672_v7, 4  ;;  %vm4200_vm4 = vcmp.eq.s32.totalorder %v2674_v8, 4  ;;  %v1541_v21 = vadd.f32 %v2440_v48, %v1539_v29  ;;  %v1641_v48 = vld [vmem:[%s3500_s15 + $0x98] sm:$0xff] }
  0xf3   : > { %v1563_v59 = vsel %vm4199_vm2, %v1422_v27, 0.0  ;;  %v1564_v51 = vsel %vm4200_vm4, %v1424_v31, 0.0  ;;  %v1565_v20 = vadd.f32 %v1546_v57, %v1545_v15  ;;  %v1574_v60 = vadd.f32 %v1550_v18, %v1549_v22  ;;  %v1636_v15 = vld [vmem:[%s3500_s15 + $0x70] sm:$0xff]  ;;  %v1637_v22 = vld [vmem:[%s3500_s15 + $0x78] sm:$0xff] }
  0xf4   : > { %v1583_v36 = vadd.f32 %v1554_v16, %v1553_v56  ;;  %v1592_v24 = vadd.f32 %v1558_v42, %v1557_v40  ;;  %v1601_v17 = vadd.f32 %v1562_v33, %v1561_v45  ;;  %v3597_v35 = vsel %vm743_vm6, %v1630_v0, 0.0  ;;  %2441 = vst [vmem:[%s2661_s18 + $0x40] sm:$0x1f] %v1541_v21 }
  0xf5   : > { %v3601_v63 = vsel %vm744_vm3, %v1631_v32, 0.0  ;;  %v1566_v55 = vadd.f32 %v1565_v20, %v1547_v47  ;;  %v1575_v27 = vadd.f32 %v1574_v60, %v1551_v52  ;;  %v3608_v31 = vsel %vm745_vm9, %v1632_v14, 0.0 }
  0xf6   : > { %v1584_v23 = vadd.f32 %v1583_v36, %v1555_v62  ;;  %v1593_v53 = vadd.f32 %v1592_v24, %v1559_v54  ;;  %v1602_v10 = vadd.f32 %v1601_v17, %v1563_v59  ;;  %vm4201_vm0 = vcmp.lt.s32.totalorder %v2812_v50, 32 }
  0xf7   : > { %v3613_v57 = vsel %vm4201_vm0, %v1633_v25, 0.0  ;;  %v3617_v18 = vsel %vm743_vm6, %v1634_v38, 0.0  ;;  %v1567_v47 = vadd.f32 %v1566_v55, %v1548_v41  ;;  %v1576_v52 = vadd.f32 %v1575_v27, %v1552_v58  ;;  %vm4202_vm5 = vmmov %vm4201_vm0 }
  0xf8   : > { %v1585_v19 = vadd.f32 %v1584_v23, %v1556_v13  ;;  %v3623_v56 = vsel %vm744_vm3, %v1635_v4, 0.0  ;;  %v1594_v16 = vadd.f32 %v1593_v53, %v1560_v26  ;;  %v1603_v62 = vadd.f32 %v1602_v10, %v1564_v51  ;;  %vm4203_vm1 = vmmov %vm4201_vm0 }
  0xf9   : > { %v3628_v34 = vsel %vm745_vm9, %v1636_v15, 0.0  ;;  %v3632_v49 = vsel %vm4202_vm5, %v1637_v22, 0.0  ;;  %v1568_v41 = vrot.slane %v1567_v47, 4  ;;  %v1577_v58 = vrot.slane %v1576_v52, 4 }
  0xfa   : > { %v1586_v13 = vrot.slane %v1585_v19, 4  ;;  %v3636_v40 = vsel %vm743_vm6, %v1638_v1, 0.0  ;;  %v1595_v42 = vrot.slane %v1594_v16, 4  ;;  %v1604_v54 = vrot.slane %v1603_v62, 4 }
  0xfb   : > { %v3640_v26 = vsel %vm744_vm3, %v1639_v44, 0.0  ;;  %v3644_v45 = vsel %vm745_vm9, %v1640_v61, 0.0  ;;  %v1569_v0 = vadd.f32 %v1568_v41, %v1567_v47  ;;  %v1578_v32 = vadd.f32 %v1577_v58, %v1576_v52 }
  0xfc   : > { %v1587_v29 = vadd.f32 %v1586_v13, %v1585_v19  ;;  %v3648_v33 = vsel %vm4203_vm1, %v1641_v48, 0.0  ;;  %v1596_v59 = vadd.f32 %v1595_v42, %v1594_v16  ;;  %v1605_v51 = vadd.f32 %v1604_v54, %v1603_v62 }
  0xfd   : > { %v1716_v14 = vadd.f32 %v3516_v37, %v3508_v11  ;;  %v1725_v21 = vadd.f32 %v3534_v2, %v3530_v9  ;;  %v1570_v20 = vrot.slane %v1569_v0, 2  ;;  %v1579_v60 = vrot.slane %v1578_v32, 2 }
  0xfe   : > { %v1588_v36 = vrot.slane %v1587_v29, 2  ;;  %v1734_v25 = vadd.f32 %v3601_v63, %v3597_v35  ;;  %v1597_v38 = vrot.slane %v1596_v59, 2  ;;  %v1606_v24 = vrot.slane %v1605_v51, 2 }
  0xff   : > { %v1717_v17 = vadd.f32 %v1716_v14, %v3522_v3  ;;  %v1726_v4 = vadd.f32 %v1725_v21, %v3538_v30  ;;  %v1571_v55 = vadd.f32 %v1570_v20, %v1569_v0  ;;  %v1580_v27 = vadd.f32 %v1579_v60, %v1578_v32  ;;  %v2442_v20 = vld [vmem:[%s2661_s18 + $0x48] sm:$0x1f] }
 0x100   : > { %v1589_v23 = vadd.f32 %v1588_v36, %v1587_v29  ;;  %v1735_v15 = vadd.f32 %v1734_v25, %v3608_v31  ;;  %v1598_v22 = vadd.f32 %v1597_v38, %v1596_v59  ;;  %v1607_v53 = vadd.f32 %v1606_v24, %v1605_v51 }
 0x101   : > { %v1718_v10 = vadd.f32 %v1717_v17, %v3526_v39  ;;  %v1727_v1 = vadd.f32 %v1726_v4, %v3542_v28  ;;  %v1572_v47 = vrot.slane %v1571_v55, 1  ;;  %v1581_v52 = vrot.slane %v1580_v27, 1 }
 0x102   : > { %v1590_v19 = vrot.slane %v1589_v23, 1  ;;  %v1736_v44 = vadd.f32 %v1735_v15, %v3613_v57  ;;  %v1599_v61 = vrot.slane %v1598_v22, 1  ;;  %v1608_v16 = vrot.slane %v1607_v53, 1 }
 0x103   : > { %v1719_v62 = vrot.slane %v1718_v10, 4  ;;  %v1728_v48 = vrot.slane %v1727_v1, 4  ;;  %v1573_v41 = vadd.f32 %v1572_v47, %v1571_v55  ;;  %v1582_v58 = vadd.f32 %v1581_v52, %v1580_v27 }
 0x104   : > { %v1591_v13 = vadd.f32 %v1590_v19, %v1589_v23  ;;  %v1737_v42 = vrot.slane %v1736_v44, 4  ;;  %v1600_v54 = vadd.f32 %v1599_v61, %v1598_v22  ;;  %v1609_v0 = vadd.f32 %v1608_v16, %v1607_v53 }
 0x105   : > { %v1720_v32 = vadd.f32 %v1719_v62, %v1718_v10  ;;  %v1729_v29 = vadd.f32 %v1728_v48, %v1727_v1  ;;  %v1615_v59 = vsel %vm720_vm8, %v1582_v58, %v1573_v41  ;;  %v1743_v14 = vadd.f32 %v3623_v56, %v3617_v18 }
 0x106   : > { %v1738_v51 = vadd.f32 %v1737_v42, %v1736_v44  ;;  %v1752_v21 = vadd.f32 %v3640_v26, %v3636_v40  ;;  %v1616_v60 = vsel %vm722_vm11, %v1591_v13, %v1615_v59  ;;  %vm4204_vm7 = vcmp.eq.s32.totalorder %v2668_v5, 0 }
 0x107   : > { %v1721_v36 = vrot.slane %v1720_v32, 2  ;;  %v1730_v25 = vrot.slane %v1729_v29, 2  ;;  %v1662_v38 = vsel %vm4204_vm7, %v3508_v11, 0.0  ;;  %v1617_v24 = vsel %vm724_vm10, %v1600_v54, %v1616_v60 }
 0x108   : > { %v1739_v17 = vrot.slane %v1738_v51, 2  ;;  %v1744_v4 = vadd.f32 %v1743_v14, %v3628_v34  ;;  %v1753_v55 = vadd.f32 %v1752_v21, %v3644_v45  ;;  %v1618_v27 = vsel %vm726_vm15, %v1609_v0, %v1617_v24 }
 0x109   : > { %v1722_v23 = vadd.f32 %v1721_v36, %v1720_v32  ;;  %v1731_v15 = vadd.f32 %v1730_v25, %v1729_v29  ;;  %vm4205_vm2 = vcmp.eq.s32.totalorder %v2670_v6, 0  ;;  %v1620_v53 = vadd.f32 %v2442_v20, %v1618_v27 }
 0x10a   : > { %v1663_v22 = vsel %vm4205_vm2, %v3516_v37, 0.0  ;;  %v1740_v10 = vadd.f32 %v1739_v17, %v1738_v51  ;;  %v1745_v11 = vadd.f32 %v1744_v4, %v3632_v49  ;;  %v1754_v1 = vadd.f32 %v1753_v55, %v3648_v33 }
 0x10b   : > { %v1723_v47 = vrot.slane %v1722_v23, 1  ;;  %v1732_v52 = vrot.slane %v1731_v15, 1  ;;  %vm4206_vm4 = vcmp.eq.s32.totalorder %v2672_v7, 0  ;;  %vm4207_vm0 = vcmp.eq.s32.totalorder %v2674_v8, 0  ;;  %2443 = vst [vmem:[%s2661_s18 + $0x48] sm:$0x1f] %v1620_v53 }
 0x10c   : > { %v1664_v19 = vsel %vm4206_vm4, %v3522_v3, 0.0  ;;  %v1665_v44 = vsel %vm4207_vm0, %v3526_v39, 0.0  ;;  %v1741_v61 = vrot.slane %v1740_v10, 1  ;;  %v1746_v16 = vrot.slane %v1745_v11, 4 }
 0x10d   : > { %v1755_v37 = vrot.slane %v1754_v1, 4  ;;  %vm4208_vm5 = vcmp.eq.s32.totalorder %v2668_v5, 1  ;;  %v1724_v48 = vadd.f32 %v1723_v47, %v1722_v23  ;;  %v1733_v41 = vadd.f32 %v1732_v52, %v1731_v15  ;;  %v2444_v15 = vld [vmem:[%s2661_s18 + $0x50] sm:$0x1f] }
 0x10e   : > { %v1666_v62 = vsel %vm4208_vm5, %v3530_v9, 0.0  ;;  %vm4209_vm1 = vcmp.eq.s32.totalorder %v2670_v6, 1  ;;  %vm4210_vm7 = vcmp.eq.s32.totalorder %v2672_v7, 1  ;;  %v1742_v13 = vadd.f32 %v1741_v61, %v1740_v10 }
 0x10f   : > { %v1667_v58 = vsel %vm4209_vm1, %v3534_v2, 0.0  ;;  %v1668_v3 = vsel %vm4210_vm7, %v3538_v30, 0.0  ;;  %v1747_v39 = vadd.f32 %v1746_v16, %v1745_v11  ;;  %v1756_v42 = vadd.f32 %v1755_v37, %v1754_v1 }
 0x110   : > { %vm4211_vm2 = vcmp.eq.s32.totalorder %v2674_v8, 1  ;;  %v1766_v0 = vsel %vm720_vm8, %v1733_v41, %v1724_v48  ;;  %vm4212_vm4 = vcmp.eq.s32.totalorder %v2668_v5, 2  ;;  %vm4213_vm0 = vcmp.eq.s32.totalorder %v2670_v6, 2 }
 0x111   : > { %v1669_v54 = vsel %vm4211_vm2, %v3542_v28, 0.0  ;;  %v1670_v9 = vsel %vm4212_vm4, %v3597_v35, 0.0  ;;  %v1671_v2 = vsel %vm4213_vm0, %v3601_v63, 0.0  ;;  %vm4214_vm5 = vcmp.eq.s32.totalorder %v2672_v7, 2 }
 0x112   : > { %v1672_v30 = vsel %vm4214_vm5, %v3608_v31, 0.0  ;;  %v1748_v32 = vrot.slane %v1747_v39, 2  ;;  %v1757_v29 = vrot.slane %v1756_v42, 2  ;;  %v1767_v59 = vsel %vm722_vm11, %v1742_v13, %v1766_v0 }
 0x113   : > { %vm4215_vm1 = vcmp.eq.s32.totalorder %v2674_v8, 2  ;;  %v1674_v35 = vsel %vm621_vm12, %v3617_v18, 0.0  ;;  %v1675_v63 = vsel %vm622_vm13, %v3623_v56, 0.0  ;;  %v1676_v31 = vsel %vm623_vm14, %v3628_v34, 0.0 }
 0x114   : > { %v1673_v28 = vsel %vm4215_vm1, %v3613_v57, 0.0  ;;  %vm4216_vm7 = vcmp.eq.s32.totalorder %v2674_v8, 3  ;;  %v1749_v14 = vadd.f32 %v1748_v32, %v1747_v39  ;;  %v1758_v21 = vadd.f32 %v1757_v29, %v1756_v42 }
 0x115   : > { %v3726_v51 = vsel %vm4216_vm7, %v3632_v49, 0.0  ;;  %vm4217_vm2 = vcmp.eq.s32.totalorder %v2668_v5, 4  ;;  %vm4218_vm4 = vcmp.eq.s32.totalorder %v2670_v6, 4  ;;  %vm4219_vm0 = vcmp.eq.s32.totalorder %v2672_v7, 4 }
 0x116   : > { %v1678_v57 = vsel %vm4217_vm2, %v3636_v40, 0.0  ;;  %v1679_v18 = vsel %vm4218_vm4, %v3640_v26, 0.0  ;;  %v1680_v56 = vsel %vm4219_vm0, %v3644_v45, 0.0  ;;  %vm4220_vm5 = vcmp.eq.s32.totalorder %v2674_v8, 4 }
 0x117   : > { %v3740_v34 = vsel %vm4220_vm5, %v3648_v33, 0.0  ;;  %v1682_v49 = vadd.f32 %v1666_v62, %v1662_v38  ;;  %v1686_v20 = vadd.f32 %v1667_v58, %v1663_v22  ;;  %v1750_v60 = vrot.slane %v1749_v14, 1 }
 0x118   : > { %v1759_v36 = vrot.slane %v1758_v21, 1  ;;  %v1690_v25 = vadd.f32 %v1668_v3, %v1664_v19  ;;  %v1694_v40 = vadd.f32 %v1669_v54, %v1665_v44  ;;  %v1775_v4 = vadd.f32 %v1663_v22, %v1662_v38 }
 0x119   : > { %v1683_v24 = vadd.f32 %v1682_v49, %v1670_v9  ;;  %v1687_v17 = vadd.f32 %v1686_v20, %v1671_v2  ;;  %v1784_v26 = vadd.f32 %v1667_v58, %v1666_v62  ;;  %v1751_v55 = vadd.f32 %v1750_v60, %v1749_v14 }
 0x11a   : > { %v1760_v27 = vadd.f32 %v1759_v36, %v1758_v21  ;;  %v1691_v23 = vadd.f32 %v1690_v25, %v1672_v30  ;;  %v1695_v45 = vadd.f32 %v1694_v40, %v1673_v28  ;;  %v1776_v33 = vadd.f32 %v1775_v4, %v1664_v19  ;;  %v1912_v25 = vld [vmem:[%s3751_s19 + $0x8] sm:$0xff] }
 0x11b   : > { %v1684_v53 = vadd.f32 %v1683_v24, %v1674_v35  ;;  %v1688_v10 = vadd.f32 %v1687_v17, %v1675_v63  ;;  %v1785_v11 = vadd.f32 %v1784_v26, %v1668_v3  ;;  %v1768_v1 = vsel %vm724_vm10, %v1751_v55, %v1767_v59  ;;  %v1911_v59 = vld [vmem:[%s3751_s19] sm:$0xff]  ;;  %v1914_v24 = vld [vmem:[%s3751_s19 + $0x18] sm:$0xff]  ;;  %v1916_v26 = vld [vmem:[%s3751_s19 + $0x28] sm:$0xff] }
 0x11c   : > { %v1692_v47 = vadd.f32 %v1691_v23, %v1676_v31  ;;  %v1696_v52 = vadd.f32 %v1695_v45, %v3726_v51  ;;  %v1793_v61 = vadd.f32 %v1671_v2, %v1670_v9  ;;  %v1769_v38 = vsel %vm726_vm15, %v1760_v27, %v1768_v1  ;;  %v1917_v45 = vld [vmem:[%s3751_s19 + $0x30] sm:$0xff] }
 0x11d   : > { %v1685_v22 = vadd.f32 %v1684_v53, %v1678_v57  ;;  %v1689_v16 = vadd.f32 %v1688_v10, %v1679_v18  ;;  %v1777_v37 = vadd.f32 %v1776_v33, %v1665_v44  ;;  %v1771_v62 = vadd.f32 %v2444_v15, %v1769_v38  ;;  %v1918_v10 = vld [vmem:[%s3751_s19 + $0x38] sm:$0xff] }
 0x11e   : > { %v1693_v48 = vadd.f32 %v1692_v47, %v1680_v56  ;;  %v1697_v41 = vadd.f32 %v1696_v52, %v3740_v34  ;;  %v1786_v58 = vadd.f32 %v1785_v11, %v1669_v54  ;;  %v1794_v39 = vadd.f32 %v1793_v61, %v1672_v30 }
 0x11f   : > { %v1698_v19 = vmax.f32 %v1685_v22, 0.005  ;;  %v1699_v3 = vmax.f32 %v1689_v16, 0.005  ;;  %v1778_v13 = vrot.slane %v1777_v37, 4  ;;  %v1802_v44 = vadd.f32 %v1675_v63, %v1674_v35 }
 0x120   : > { %2445 = vst [vmem:[%s2661_s18 + $0x50] sm:$0x1f] %v1771_v62  ;;  %v1700_v42 = vmax.f32 %v1693_v48, 0.005  ;;  %v1701_v0 = vmax.f32 %v1697_v41, 0.005  ;;  %v1811_v9 = vadd.f32 %v1679_v18, %v1678_v57  ;;  %v1795_v49 = vadd.f32 %v1794_v39, %v1673_v28 }
 0x121   : > { %v1702_v2 = vmin.f32 %v1698_v19, 1.0  ;;  %v1703_v32 = vmin.f32 %v1699_v3, 1.0  ;;  %v1779_v54 = vadd.f32 %v1778_v13, %v1777_v37  ;;  %v1787_v29 = vrot.slane %v1786_v58, 4  ;;  %v1913_v57 = vld [vmem:[%s3751_s19 + $0x10] sm:$0xff] }
 0x122   : > { %v1704_v14 = vmin.f32 %v1700_v42, 1.0  ;;  %v1705_v21 = vmin.f32 %v1701_v0, 1.0  ;;  %v1803_v20 = vadd.f32 %v1802_v44, %v1676_v31  ;;  %v1812_v36 = vadd.f32 %v1811_v9, %v1680_v56  ;;  %v1915_v56 = vld [vmem:[%s3751_s19 + $0x20] sm:$0xff] }
 0x123   : > { %2524 = vlog2.f32 %v1702_v2  ;;  %v1780_v30 = vrot.slane %v1779_v54, 2  ;;  %v1788_v60 = vadd.f32 %v1787_v29, %v1786_v58  ;;  %v1796_v35 = vrot.slane %v1795_v49, 4 }
 0x124   : > { %2526 = vlog2.f32 %v1703_v32  ;;  %v1804_v63 = vadd.f32 %v1803_v20, %v3726_v51  ;;  %v3760_v18 = vsel %vm743_vm6, %v1911_v59, 0.0  ;;  %v1813_v40 = vadd.f32 %v1812_v36, %v3740_v34 }
 0x125   : > { %2528 = vlog2.f32 %v1704_v14  ;;  %v1781_v28 = vadd.f32 %v1780_v30, %v1779_v54  ;;  %v1789_v31 = vrot.slane %v1788_v60, 2  ;;  %v1797_v17 = vadd.f32 %v1796_v35, %v1795_v49 }
 0x126   : > { %2530 = vlog2.f32 %v1705_v21  ;;  %v1805_v4 = vrot.slane %v1804_v63, 4  ;;  %v3768_v51 = vsel %vm744_vm3, %v1912_v25, 0.0  ;;  %v1814_v23 = vrot.slane %v1813_v40, 4 }
 0x127   : > { %v1782_v55 = vrot.slane %v1781_v28, 1  ;;  %v1790_v27 = vadd.f32 %v1789_v31, %v1788_v60  ;;  %v3773_v15 = vsel %vm745_vm9, %v1913_v57, 0.0  ;;  %v1798_v53 = vrot.slane %v1797_v17, 2 }
 0x128   : > { %v1806_v34 = vadd.f32 %v1805_v4, %v1804_v63  ;;  %vm4221_vm1 = vcmp.lt.s32.totalorder %v2812_v50, 32  ;;  %v3782_v11 = vsel %vm743_vm6, %v1915_v56, 0.0  ;;  %v1815_v61 = vadd.f32 %v1814_v23, %v1813_v40 }
 0x129   : > { %v3778_v33 = vsel %vm4221_vm1, %v1914_v24, 0.0  ;;  %v2525_v1 = vpop.eup %2524  ;;  %v1783_v47 = vadd.f32 %v1782_v55, %v1781_v28  ;;  %v1791_v52 = vrot.slane %v1790_v27, 1  ;;  %v3786_v38 = vsel %vm744_vm3, %v1916_v26, 0.0  ;;  %vm4222_vm7 = vmmov %vm4221_vm1  ;;  %v2446_v28 = vld [vmem:[%s2661_s18 + $0x58] sm:$0x1f] }
 0x12a   : > { %v2527_v22 = vpop.eup %2526  ;;  %v1707_v16 = vmul.f32 0.6931472, %v2525_v1  ;;  %v1799_v37 = vadd.f32 %v1798_v53, %v1797_v17  ;;  %v1807_v62 = vrot.slane %v1806_v34, 2  ;;  %v3790_v48 = vsel %vm745_vm9, %v1917_v45, 0.0  ;;  %v1921_v1 = vld [vmem:[%s3751_s19 + $0x50] sm:$0xff] }
 0x12b   : > { %v2529_v41 = vpop.eup %2528  ;;  %v1709_v58 = vmul.f32 0.6931472, %v2527_v22  ;;  %v1792_v19 = vadd.f32 %v1791_v52, %v1790_v27  ;;  %v1816_v3 = vrot.slane %v1815_v61, 2  ;;  %v3794_v13 = vsel %vm4222_vm7, %v1918_v10, 0.0  ;;  %v1920_v10 = vld [vmem:[%s3751_s19 + $0x48] sm:$0xff] }
 0x12c   : > { %v2531_v39 = vpop.eup %2530  ;;  %v1711_v42 = vmul.f32 0.6931472, %v2529_v41  ;;  %v1800_v0 = vrot.slane %v1799_v37, 1  ;;  %v1808_v44 = vadd.f32 %v1807_v62, %v1806_v34  ;;  %vm4223_vm2 = vcmp.eq.s32.totalorder %v2668_v5, 0  ;;  %v1919_v34 = vld [vmem:[%s3751_s19 + $0x40] sm:$0xff] }
 0x12d   : > { %v1834_v9 = vsel %vm4223_vm2, %v1707_v16, 0.0  ;;  %v1713_v2 = vmul.f32 0.6931472, %v2531_v39  ;;  %v1817_v32 = vadd.f32 %v1816_v3, %v1815_v61  ;;  %v1825_v54 = vsel %vm720_vm8, %v1792_v19, %v1783_v47  ;;  %v1922_v19 = vld [vmem:[%s3751_s19 + $0x58] sm:$0xff]  ;;  %v1924_v3 = vld [vmem:[%s3751_s19 + $0x68] sm:$0xff] }
 0x12e   : > { %vm4224_vm4 = vcmp.eq.s32.totalorder %v2670_v6, 0  ;;  %v1801_v59 = vadd.f32 %v1800_v0, %v1799_v37  ;;  %v1809_v14 = vrot.slane %v1808_v44, 1  ;;  %vm4225_vm0 = vcmp.eq.s32.totalorder %v2672_v7, 0 }
 0x12f   : > { %v1835_v29 = vsel %vm4224_vm4, %v1709_v58, 0.0  ;;  %v1836_v21 = vsel %vm4225_vm0, %v1711_v42, 0.0  ;;  %vm4226_vm5 = vcmp.eq.s32.totalorder %v2668_v5, 1  ;;  %v1818_v20 = vrot.slane %v1817_v32, 1 }
 0x130   : > { %v1838_v49 = vsel %vm4226_vm5, %v1707_v16, 0.0  ;;  %vm4227_vm1 = vcmp.eq.s32.totalorder %v2674_v8, 0  ;;  %vm4228_vm7 = vcmp.eq.s32.totalorder %v2670_v6, 1  ;;  %vm4229_vm2 = vcmp.eq.s32.totalorder %v2672_v7, 1 }
 0x131   : > { %v1837_v30 = vsel %vm4227_vm1, %v1713_v2, 0.0  ;;  %v1839_v60 = vsel %vm4228_vm7, %v1709_v58, 0.0  ;;  %v1840_v36 = vsel %vm4229_vm2, %v1711_v42, 0.0  ;;  %v1810_v25 = vadd.f32 %v1809_v14, %v1808_v44  ;;  %v1927_v14 = vld [vmem:[%s3751_s19 + $0x80] sm:$0xff] }
 0x132   : > { %v1826_v35 = vsel %vm722_vm11, %v1801_v59, %v1825_v54  ;;  %vm4230_vm4 = vcmp.eq.s32.totalorder %v2674_v8, 1  ;;  %vm4231_vm0 = vcmp.eq.s32.totalorder %v2668_v5, 2  ;;  %v1819_v31 = vadd.f32 %v1818_v20, %v1817_v32  ;;  %v1926_v59 = vld [vmem:[%s3751_s19 + $0x78] sm:$0xff] }
 0x133   : > { %v1841_v63 = vsel %vm4230_vm4, %v1713_v2, 0.0  ;;  %v1842_v57 = vsel %vm4231_vm0, %v1707_v16, 0.0  ;;  %vm4232_vm5 = vcmp.eq.s32.totalorder %v2670_v6, 2  ;;  %vm4233_vm1 = vcmp.eq.s32.totalorder %v2672_v7, 2 }
 0x134   : > { %v1843_v40 = vsel %vm4232_vm5, %v1709_v58, 0.0  ;;  %v1844_v24 = vsel %vm4233_vm1, %v1711_v42, 0.0  ;;  %vm4234_vm7 = vcmp.eq.s32.totalorder %v2674_v8, 2  ;;  %v1827_v17 = vsel %vm724_vm10, %v1810_v25, %v1826_v35 }
 0x135   : > { %v1845_v56 = vsel %vm4234_vm7, %v1713_v2, 0.0  ;;  %v1846_v4 = vsel %vm621_vm12, %v1707_v16, 0.0  ;;  %v1847_v26 = vsel %vm622_vm13, %v1709_v58, 0.0  ;;  %v1848_v55 = vsel %vm623_vm14, %v1711_v42, 0.0 }
 0x136   : > { %v1828_v27 = vsel %vm726_vm15, %v1819_v31, %v1827_v17  ;;  %vm4235_vm2 = vcmp.eq.s32.totalorder %v2674_v8, 3  ;;  %vm4236_vm4 = vcmp.eq.s32.totalorder %v2668_v5, 4  ;;  %vm4237_vm0 = vcmp.eq.s32.totalorder %v2670_v6, 4  ;;  %v1929_v31 = vld [vmem:[%s3751_s19 + $0x90] sm:$0xff] }
 0x137   : > { %v1849_v23 = vsel %vm4235_vm2, %v1713_v2, 0.0  ;;  %v1850_v45 = vsel %vm4236_vm4, %v1707_v16, 0.0  ;;  %v1851_v53 = vsel %vm4237_vm0, %v1709_v58, 0.0  ;;  %v1830_v47 = vadd.f32 %v2446_v28, %v1828_v27  ;;  %v1923_v58 = vld [vmem:[%s3751_s19 + $0x60] sm:$0xff]  ;;  %v1928_v28 = vld [vmem:[%s3751_s19 + $0x88] sm:$0xff] }
 0x138   : > { %vm4238_vm5 = vcmp.eq.s32.totalorder %v2672_v7, 4  ;;  %vm4239_vm1 = vcmp.eq.s32.totalorder %v2674_v8, 4  ;;  %v1854_v22 = vadd.f32 %v1835_v29, %v1834_v9  ;;  %v1863_v37 = vadd.f32 %v1839_v60, %v1838_v49  ;;  %v1925_v29 = vld [vmem:[%s3751_s19 + $0x70] sm:$0xff] }
 0x139   : > { %v1852_v52 = vsel %vm4238_vm5, %v1711_v42, 0.0  ;;  %v1853_v61 = vsel %vm4239_vm1, %v1713_v2, 0.0  ;;  %v1872_v62 = vadd.f32 %v1843_v40, %v1842_v57  ;;  %v1881_v16 = vadd.f32 %v1847_v26, %v1846_v4  ;;  %2447 = vst [vmem:[%s2661_s18 + $0x58] sm:$0x1f] %v1830_v47  ;;  %v1930_v40 = vld [vmem:[%s3751_s19 + $0x98] sm:$0xff] }
 0x13a   : > { %v1890_v41 = vadd.f32 %v1851_v53, %v1850_v45  ;;  %v1855_v39 = vadd.f32 %v1854_v22, %v1836_v21  ;;  %v3850_v0 = vsel %vm743_vm6, %v1919_v34, 0.0  ;;  %v3854_v42 = vsel %vm744_vm3, %v1920_v10, 0.0 }
 0x13b   : > { %v3858_v44 = vsel %vm745_vm9, %v1921_v1, 0.0  ;;  %v1864_v9 = vadd.f32 %v1863_v37, %v1840_v36  ;;  %v1873_v2 = vadd.f32 %v1872_v62, %v1844_v24  ;;  %v1882_v32 = vadd.f32 %v1881_v16, %v1848_v55 }
 0x13c   : > { %v1891_v54 = vadd.f32 %v1890_v41, %v1852_v52  ;;  %v1856_v21 = vadd.f32 %v1855_v39, %v1837_v30  ;;  %vm4240_vm7 = vcmp.lt.s32.totalorder %v2812_v50, 32  ;;  %v3869_v20 = vsel %vm743_vm6, %v1923_v58, 0.0 }
 0x13d   : > { %v3865_v49 = vsel %vm4240_vm7, %v1922_v19, 0.0  ;;  %v3873_v60 = vsel %vm744_vm3, %v1924_v3, 0.0  ;;  %v1865_v36 = vadd.f32 %v1864_v9, %v1841_v63  ;;  %v1874_v25 = vadd.f32 %v1873_v2, %v1845_v56  ;;  %vm4241_vm2 = vmmov %vm4240_vm7 }
 0x13e   : > { %v1883_v35 = vadd.f32 %v1882_v32, %v1849_v23  ;;  %v1892_v57 = vadd.f32 %v1891_v54, %v1853_v61  ;;  %v1857_v30 = vrot.slane %v1856_v21, 4  ;;  %v3880_v24 = vsel %vm745_vm9, %v1925_v29, 0.0  ;;  %vm4242_vm4 = vmmov %vm4241_vm2 }
 0x13f   : > { %v3884_v17 = vsel %vm4241_vm2, %v1926_v59, 0.0  ;;  %v3888_v4 = vsel %vm743_vm6, %v1927_v14, 0.0  ;;  %v1866_v63 = vrot.slane %v1865_v36, 4  ;;  %v1875_v56 = vrot.slane %v1874_v25, 4 }
 0x140   : > { %v1884_v26 = vrot.slane %v1883_v35, 4  ;;  %v1893_v55 = vrot.slane %v1892_v57, 4  ;;  %v1858_v27 = vadd.f32 %v1857_v30, %v1856_v21  ;;  %v3892_v23 = vsel %vm744_vm3, %v1928_v28, 0.0 }
 0x141   : > { %v3896_v45 = vsel %vm745_vm9, %v1929_v31, 0.0  ;;  %v3900_v53 = vsel %vm4242_vm4, %v1930_v40, 0.0  ;;  %v1867_v12 = vadd.f32 %v1866_v63, %v1865_v36  ;;  %v1876_v34 = vadd.f32 %v1875_v56, %v1874_v25 }
 0x142   : > { %v1885_v10 = vadd.f32 %v1884_v26, %v1883_v35  ;;  %v1894_v1 = vadd.f32 %v1893_v55, %v1892_v57  ;;  %v1859_v47 = vrot.slane %v1858_v27, 2  ;;  %v2005_v52 = vadd.f32 %v3768_v51, %v3760_v18 }
 0x143   : > { %v2014_v43 = vadd.f32 %v3786_v38, %v3782_v11  ;;  %v2023_v46 = vadd.f32 %v3854_v42, %v3850_v0  ;;  %v1868_v61 = vrot.slane %v1867_v12, 2  ;;  %v1877_v22 = vrot.slane %v1876_v34, 2 }
 0x144   : > { %v1886_v37 = vrot.slane %v1885_v10, 2  ;;  %v1895_v50 = vrot.slane %v1894_v1, 2  ;;  %v1860_v62 = vadd.f32 %v1859_v47, %v1858_v27  ;;  %v2006_v16 = vadd.f32 %v2005_v52, %v3773_v15  ;;  %v2448_v47 = vld [vmem:[%s2661_s18 + $0x60] sm:$0x1f] }
 0x145   : > { %v2015_v41 = vadd.f32 %v2014_v43, %v3790_v48  ;;  %v2024_v19 = vadd.f32 %v2023_v46, %v3858_v44  ;;  %v1869_v58 = vadd.f32 %v1868_v61, %v1867_v12  ;;  %v1878_v3 = vadd.f32 %v1877_v22, %v1876_v34 }
 0x146   : > { %v1887_v39 = vadd.f32 %v1886_v37, %v1885_v10  ;;  %v1896_v9 = vadd.f32 %v1895_v50, %v1894_v1  ;;  %v1861_v2 = vrot.slane %v1860_v62, 1  ;;  %v2007_v32 = vadd.f32 %v2006_v16, %v3778_v33 }
 0x147   : > { %v2016_v54 = vadd.f32 %v2015_v41, %v3794_v13  ;;  %v2025_v29 = vadd.f32 %v2024_v19, %v3865_v49  ;;  %v1870_v59 = vrot.slane %v1869_v58, 1  ;;  %v1879_v14 = vrot.slane %v1878_v3, 1 }
 0x148   : > { %v1888_v21 = vrot.slane %v1887_v39, 1  ;;  %v1897_v36 = vrot.slane %v1896_v9, 1  ;;  %v1862_v25 = vadd.f32 %v1861_v2, %v1860_v62  ;;  %v2008_v35 = vrot.slane %v2007_v32, 4 }
 0x149   : > { %v2017_v57 = vrot.slane %v2016_v54, 4  ;;  %v2026_v28 = vrot.slane %v2025_v29, 4  ;;  %v1871_v31 = vadd.f32 %v1870_v59, %v1869_v58  ;;  %v1880_v40 = vadd.f32 %v1879_v14, %v1878_v3 }
 0x14a   : > { %v1889_v30 = vadd.f32 %v1888_v21, %v1887_v39  ;;  %v1898_v63 = vadd.f32 %v1897_v36, %v1896_v9  ;;  %v2009_v56 = vadd.f32 %v2008_v35, %v2007_v32  ;;  %v2032_v27 = vadd.f32 %v3873_v60, %v3869_v20 }
 0x14b   : > { %v2018_v26 = vadd.f32 %v2017_v57, %v2016_v54  ;;  %v2027_v55 = vadd.f32 %v2026_v28, %v2025_v29  ;;  %v1904_v12 = vsel %vm720_vm8, %v1871_v31, %v1862_v25  ;;  %v2041_v34 = vadd.f32 %v3892_v23, %v3888_v4 }
 0x14c   : > { %vm4243_vm9 = vcmp.eq.s32.totalorder %v2668_v5, 0  ;;  %vm4244_vm6 = vcmp.eq.s32.totalorder %v2670_v6, 0  ;;  %v1905_v52 = vsel %vm722_vm11, %v1880_v40, %v1904_v12  ;;  %v2010_v43 = vrot.slane %v2009_v56, 2 }
 0x14d   : > { %v1951_v10 = vsel %vm4243_vm9, %v3760_v18, 0.0  ;;  %v1952_v1 = vsel %vm4244_vm6, %v3768_v51, 0.0  ;;  %v2019_v46 = vrot.slane %v2018_v26, 2  ;;  %v2028_v61 = vrot.slane %v2027_v55, 2 }
 0x14e   : > { %v1906_v22 = vsel %vm724_vm10, %v1889_v30, %v1905_v52  ;;  %v2033_v37 = vadd.f32 %v2032_v27, %v3880_v24  ;;  %v2042_v50 = vadd.f32 %v2041_v34, %v3896_v45  ;;  %vm4245_vm3 = vcmp.eq.s32.totalorder %v2672_v7, 0 }
 0x14f   : > { %v1953_v18 = vsel %vm4245_vm3, %v3773_v15, 0.0  ;;  %v1907_v62 = vsel %vm726_vm15, %v1898_v63, %v1906_v22  ;;  %v2011_v51 = vadd.f32 %v2010_v43, %v2009_v56  ;;  %v2020_v16 = vadd.f32 %v2019_v46, %v2018_v26 }
 0x150   : > { %v2029_v41 = vadd.f32 %v2028_v61, %v2027_v55  ;;  %v1909_v19 = vadd.f32 %v2448_v47, %v1907_v62  ;;  %v2034_v58 = vadd.f32 %v2033_v37, %v3884_v17  ;;  %v2043_v3 = vadd.f32 %v2042_v50, %v3900_v53  ;;  %v2450_v62 = vld [vmem:[%s2661_s18 + $0x68] sm:$0x1f] }
 0x151   : > { %vm4246_vm0 = vcmp.eq.s32.totalorder %v2674_v8, 0  ;;  %v2012_v9 = vrot.slane %v2011_v51, 1  ;;  %v2021_v2 = vrot.slane %v2020_v16, 1  ;;  %vm4247_vm5 = vcmp.eq.s32.totalorder %v2668_v5, 1 }
 0x152   : > { %v1954_v39 = vsel %vm4246_vm0, %v3778_v33, 0.0  ;;  %v2030_v32 = vrot.slane %v2029_v41, 1  ;;  %v1955_v15 = vsel %vm4247_vm5, %v3782_v11, 0.0  ;;  %2449 = vst [vmem:[%s2661_s18 + $0x60] sm:$0x1f] %v1909_v19  ;;  %v2035_v54 = vrot.slane %v2034_v58, 4 }
 0x153   : > { %v2044_v29 = vrot.slane %v2043_v3, 4  ;;  %vm4248_vm1 = vcmp.eq.s32.totalorder %v2670_v6, 1  ;;  %vm4249_vm7 = vcmp.eq.s32.totalorder %v2672_v7, 1  ;;  %v2013_v21 = vadd.f32 %v2012_v9, %v2011_v51 }
 0x154   : > { %v1956_v59 = vsel %vm4248_vm1, %v3786_v38, 0.0  ;;  %v1957_v14 = vsel %vm4249_vm7, %v3790_v48, 0.0  ;;  %v2022_v33 = vadd.f32 %v2021_v2, %v2020_v16  ;;  %v2031_v36 = vadd.f32 %v2030_v32, %v2029_v41 }
 0x155   : > { %vm4250_vm2 = vcmp.eq.s32.totalorder %v2674_v8, 1  ;;  %v2036_v35 = vadd.f32 %v2035_v54, %v2034_v58  ;;  %v2045_v11 = vadd.f32 %v2044_v29, %v2043_v3  ;;  %vm4251_vm4 = vcmp.eq.s32.totalorder %v2668_v5, 2 }
 0x156   : > { %v1958_v25 = vsel %vm4250_vm2, %v3794_v13, 0.0  ;;  %v1959_v57 = vsel %vm4251_vm4, %v3850_v0, 0.0  ;;  %vm4252_vm9 = vcmp.eq.s32.totalorder %v2670_v6, 2  ;;  %v2055_v28 = vsel %vm720_vm8, %v2022_v33, %v2013_v21 }
 0x157   : > { %v1960_v38 = vsel %vm4252_vm9, %v3854_v42, 0.0  ;;  %vm4253_vm6 = vcmp.eq.s32.totalorder %v2672_v7, 2  ;;  %vm4254_vm3 = vcmp.eq.s32.totalorder %v2674_v8, 2  ;;  %v1963_v31 = vsel %vm621_vm12, %v3869_v20, 0.0 }
 0x158   : > { %v1961_v48 = vsel %vm4253_vm6, %v3858_v44, 0.0  ;;  %v1962_v13 = vsel %vm4254_vm3, %v3865_v49, 0.0  ;;  %v2037_v40 = vrot.slane %v2036_v35, 2  ;;  %v2046_v0 = vrot.slane %v2045_v11, 2 }
 0x159   : > { %v2056_v30 = vsel %vm722_vm11, %v2031_v36, %v2055_v28  ;;  %v1964_v42 = vsel %vm622_vm13, %v3873_v60, 0.0  ;;  %v1965_v44 = vsel %vm623_vm14, %v3880_v24, 0.0  ;;  %vm4255_vm0 = vcmp.eq.s32.totalorder %v2674_v8, 3 }
 0x15a   : > { %v3978_v49 = vsel %vm4255_vm0, %v3884_v17, 0.0  ;;  %vm4256_vm5 = vcmp.eq.s32.totalorder %v2668_v5, 4  ;;  %vm4257_vm1 = vcmp.eq.s32.totalorder %v2670_v6, 4  ;;  %v2038_v56 = vadd.f32 %v2037_v40, %v2036_v35 }
 0x15b   : > { %v1967_v20 = vsel %vm4256_vm5, %v3888_v4, 0.0  ;;  %v1968_v63 = vsel %vm4257_vm1, %v3892_v23, 0.0  ;;  %v2047_v26 = vadd.f32 %v2046_v0, %v2045_v11  ;;  %vm4258_vm7 = vcmp.eq.s32.totalorder %v2672_v7, 4 }
 0x15c   : > { %v1969_v60 = vsel %vm4258_vm7, %v3896_v45, 0.0  ;;  %vm4259_vm2 = vcmp.eq.s32.totalorder %v2674_v8, 4  ;;  %v1971_v17 = vadd.f32 %v1955_v15, %v1951_v10  ;;  %v1975_v55 = vadd.f32 %v1956_v59, %v1952_v1 }
 0x15d   : > { %v3992_v24 = vsel %vm4259_vm2, %v3900_v53, 0.0  ;;  %v1979_v27 = vadd.f32 %v1957_v14, %v1953_v18  ;;  %v1983_v4 = vadd.f32 %v1958_v25, %v1954_v39  ;;  %v2039_v12 = vrot.slane %v2038_v56, 1 }
 0x15e   : > { %v2048_v34 = vrot.slane %v2047_v26, 1  ;;  %v2064_v47 = vadd.f32 %v1952_v1, %v1951_v10  ;;  %v2073_v23 = vadd.f32 %v1956_v59, %v1955_v15  ;;  %v1972_v52 = vadd.f32 %v1971_v17, %v1959_v57 }
 0x15f   : > { %v1976_v43 = vadd.f32 %v1975_v55, %v1960_v38  ;;  %v1980_v46 = vadd.f32 %v1979_v27, %v1961_v48  ;;  %v1984_v61 = vadd.f32 %v1983_v4, %v1962_v13  ;;  %v2040_v22 = vadd.f32 %v2039_v12, %v2038_v56 }
 0x160   : > { %v2049_v45 = vadd.f32 %v2048_v34, %v2047_v26  ;;  %v2065_v37 = vadd.f32 %v2064_v47, %v1953_v18  ;;  %v2074_v50 = vadd.f32 %v2073_v23, %v1957_v14  ;;  %v1973_v53 = vadd.f32 %v1972_v52, %v1963_v31 }
 0x161   : > { %v1977_v51 = vadd.f32 %v1976_v43, %v1964_v42  ;;  %v1981_v16 = vadd.f32 %v1980_v46, %v1965_v44  ;;  %v1985_v41 = vadd.f32 %v1984_v61, %v3978_v49  ;;  %v2057_v19 = vsel %vm724_vm10, %v2040_v22, %v2056_v30 }
 0x162   : > { %v2066_v58 = vadd.f32 %v2065_v37, %v1954_v39  ;;  %v2075_v10 = vadd.f32 %v2074_v50, %v1958_v25  ;;  %v2082_v1 = vadd.f32 %v1960_v38, %v1959_v57  ;;  %v2058_v3 = vsel %vm726_vm15, %v2049_v45, %v2057_v19 }
 0x163   : > { %v1974_v9 = vadd.f32 %v1973_v53, %v1967_v20  ;;  %v1978_v2 = vadd.f32 %v1977_v51, %v1968_v63  ;;  %v1982_v32 = vadd.f32 %v1981_v16, %v1969_v60  ;;  %v2060_v15 = vadd.f32 %v2450_v62, %v2058_v3 }
 0x164   : > { %v1986_v18 = vadd.f32 %v1985_v41, %v3992_v24  ;;  %v2067_v54 = vrot.slane %v2066_v58, 4  ;;  %v2076_v29 = vrot.slane %v2075_v10, 4  ;;  %v2083_v33 = vadd.f32 %v2082_v1, %v1961_v48 }
 0x165   : > { %v1987_v59 = vmax.f32 %v1974_v9, 0.005  ;;  %v1988_v14 = vmax.f32 %v1978_v2, 0.005  ;;  %v1989_v21 = vmax.f32 %v1982_v32, 0.005  ;;  %v2091_v25 = vadd.f32 %v1964_v42, %v1963_v31 }
 0x166   : > { %2451 = vst [vmem:[%s2661_s18 + $0x68] sm:$0x1f] %v2060_v15  ;;  %v1990_v36 = vmax.f32 %v1986_v18, 0.005  ;;  %v2068_v35 = vadd.f32 %v2067_v54, %v2066_v58  ;;  %v2077_v39 = vadd.f32 %v2076_v29, %v2075_v10  ;;  %v2084_v28 = vadd.f32 %v2083_v33, %v1962_v13 }
 0x167   : > { %v1991_v11 = vmin.f32 %v1987_v59, 1.0  ;;  %v1992_v57 = vmin.f32 %v1988_v14, 1.0  ;;  %v1993_v38 = vmin.f32 %v1989_v21, 1.0  ;;  %v2092_v56 = vadd.f32 %v2091_v25, %v1965_v44 }
 0x168   : > { %v1994_v40 = vmin.f32 %v1990_v36, 1.0  ;;  %v2069_v0 = vrot.slane %v2068_v35, 2  ;;  %v2078_v30 = vrot.slane %v2077_v39, 2  ;;  %v2085_v26 = vrot.slane %v2084_v28, 4 }
 0x169   : > { %2532 = vlog2.f32 %v1991_v11  ;;  %v2100_v17 = vadd.f32 %v1968_v63, %v1967_v20  ;;  %v2093_v48 = vadd.f32 %v2092_v56, %v3978_v49  ;;  %vm4260_vm4 = vcmp.eq.s32.totalorder %v2668_v5, 0 }
 0x16a   : > { %2534 = vlog2.f32 %v1992_v57  ;;  %v2070_v55 = vadd.f32 %v2069_v0, %v2068_v35  ;;  %v2079_v27 = vadd.f32 %v2078_v30, %v2077_v39  ;;  %v2086_v4 = vadd.f32 %v2085_v26, %v2084_v28  ;;  %v2452_v57 = vld [vmem:[%s2661_s18 + $0x70] sm:$0x1f] }
 0x16b   : > { %2536 = vlog2.f32 %v1993_v38  ;;  %v2101_v12 = vadd.f32 %v2100_v17, %v1969_v60  ;;  %v2094_v34 = vrot.slane %v2093_v48, 4  ;;  %vm4261_vm9 = vcmp.eq.s32.totalorder %v2670_v6, 0 }
 0x16c   : > { %2538 = vlog2.f32 %v1994_v40  ;;  %v2071_v31 = vrot.slane %v2070_v55, 1  ;;  %v2080_v42 = vrot.slane %v2079_v27, 1  ;;  %v2087_v13 = vrot.slane %v2086_v4, 2 }
 0x16d   : > { %v2102_v47 = vadd.f32 %v2101_v12, %v3992_v24  ;;  %v2095_v52 = vadd.f32 %v2094_v34, %v2093_v48  ;;  %vm4262_vm6 = vcmp.eq.s32.totalorder %v2672_v7, 0  ;;  %vm4263_vm3 = vcmp.eq.s32.totalorder %v2668_v5, 1 }
 0x16e   : > { %v2072_v23 = vadd.f32 %v2071_v31, %v2070_v55  ;;  %v2081_v44 = vadd.f32 %v2080_v42, %v2079_v27  ;;  %v2088_v20 = vadd.f32 %v2087_v13, %v2086_v4  ;;  %vm4264_vm0 = vcmp.eq.s32.totalorder %v2670_v6, 1 }
 0x16f   : > { %v2533_v43 = vpop.eup %2532  ;;  %v2103_v63 = vrot.slane %v2102_v47, 4  ;;  %v2096_v22 = vrot.slane %v2095_v52, 2  ;;  %vm4265_vm5 = vcmp.eq.s32.totalorder %v2672_v7, 1  ;;  %vm4266_vm1 = vcmp.eq.s32.totalorder %v2674_v8, 0 }
 0x170   : > { %v2535_v46 = vpop.eup %2534  ;;  %v1996_v61 = vmul.f32 0.6931472, %v2533_v43  ;;  %v2089_v37 = vrot.slane %v2088_v20, 1  ;;  %v2114_v51 = vsel %vm720_vm8, %v2081_v44, %v2072_v23  ;;  %vm4267_vm7 = vcmp.eq.s32.totalorder %v2674_v8, 1 }
 0x171   : > { %v2537_v49 = vpop.eup %2536  ;;  %v1998_v45 = vmul.f32 0.6931472, %v2535_v46  ;;  %v2104_v60 = vadd.f32 %v2103_v63, %v2102_v47  ;;  %v2097_v53 = vadd.f32 %v2096_v22, %v2095_v52  ;;  %vm4268_vm2 = vcmp.eq.s32.totalorder %v2668_v5, 2 }
 0x172   : > { %v2539_v50 = vpop.eup %2538  ;;  %v2000_v62 = vmul.f32 0.6931472, %v2537_v49  ;;  %v2090_v24 = vadd.f32 %v2089_v37, %v2088_v20  ;;  %v2123_v19 = vsel %vm4260_vm4, %v1996_v61, 0.0  ;;  %v2127_v3 = vsel %vm4263_vm3, %v1996_v61, 0.0 }
 0x173   : > { %v2002_v16 = vmul.f32 0.6931472, %v2539_v50  ;;  %v2105_v41 = vrot.slane %v2104_v60, 2  ;;  %v2098_v58 = vrot.slane %v2097_v53, 1  ;;  %v2124_v10 = vsel %vm4261_vm9, %v1998_v45, 0.0 }
 0x174   : > { %v2125_v1 = vsel %vm4262_vm6, %v2000_v62, 0.0  ;;  %v2115_v2 = vsel %vm722_vm11, %v2090_v24, %v2114_v51  ;;  %v2128_v32 = vsel %vm4264_vm0, %v1998_v45, 0.0  ;;  %v2129_v15 = vsel %vm4265_vm5, %v2000_v62, 0.0 }
 0x175   : > { %v2106_v9 = vadd.f32 %v2105_v41, %v2104_v60  ;;  %v2099_v18 = vadd.f32 %v2098_v58, %v2097_v53  ;;  %v2126_v54 = vsel %vm4266_vm1, %v2002_v16, 0.0  ;;  %v2130_v29 = vsel %vm4267_vm7, %v2002_v16, 0.0 }
 0x176   : > { %v2131_v59 = vsel %vm4268_vm2, %v1996_v61, 0.0  ;;  %vm4269_vm4 = vcmp.eq.s32.totalorder %v2670_v6, 2  ;;  %v2135_v33 = vsel %vm621_vm12, %v1996_v61, 0.0  ;;  %v2136_v36 = vsel %vm622_vm13, %v1998_v45, 0.0 }
 0x177   : > { %v2107_v14 = vrot.slane %v2106_v9, 1  ;;  %v2132_v21 = vsel %vm4269_vm4, %v1998_v45, 0.0  ;;  %v2116_v35 = vsel %vm724_vm10, %v2099_v18, %v2115_v2  ;;  %vm4270_vm9 = vcmp.eq.s32.totalorder %v2672_v7, 2 }
 0x178   : > { %v2133_v39 = vsel %vm4270_vm9, %v2000_v62, 0.0  ;;  %vm4271_vm6 = vcmp.eq.s32.totalorder %v2674_v8, 2  ;;  %vm4272_vm3 = vcmp.eq.s32.totalorder %v2668_v5, 4  ;;  %v2137_v28 = vsel %vm623_vm14, %v2000_v62, 0.0 }
 0x179   : > { %v2134_v25 = vsel %vm4271_vm6, %v2002_v16, 0.0  ;;  %v2139_v11 = vsel %vm4272_vm3, %v1996_v61, 0.0  ;;  %v2108_v38 = vadd.f32 %v2107_v14, %v2106_v9  ;;  %vm4273_vm12 = vcmp.eq.s32.totalorder %v2670_v6, 4 }
 0x17a   : > { %v2140_v40 = vsel %vm4273_vm12, %v1998_v45, 0.0  ;;  %vm4274_vm13 = vcmp.eq.s32.totalorder %v2672_v7, 4  ;;  %v2143_v30 = vadd.f32 %v2124_v10, %v2123_v19  ;;  %v2152_v56 = vadd.f32 %v2128_v32, %v2127_v3 }
 0x17b   : > { %v2141_v0 = vsel %vm4274_vm13, %v2000_v62, 0.0  ;;  %v2161_v26 = vadd.f32 %v2132_v21, %v2131_v59  ;;  %v2170_v17 = vadd.f32 %v2136_v36, %v2135_v33  ;;  %v2117_v55 = vsel %vm726_vm15, %v2108_v38, %v2116_v35  ;;  %v2454_v59 = vld [vmem:[%s2661_s18 + $0x78] sm:$0x1f] }
 0x17c   : > { %vm4275_vm0 = vcmp.eq.s32.totalorder %v2674_v8, 3  ;;  %vm4276_vm5 = vcmp.eq.s32.totalorder %v2674_v8, 4  ;;  %v2179_v48 = vadd.f32 %v2140_v40, %v2139_v11  ;;  %v2119_v4 = vadd.f32 %v2452_v57, %v2117_v55 }
 0x17d   : > { %v2138_v5 = vsel %vm4275_vm0, %v2002_v16, 0.0  ;;  %v2142_v27 = vsel %vm4276_vm5, %v2002_v16, 0.0  ;;  %v2144_v6 = vadd.f32 %v2143_v30, %v2125_v1  ;;  %v2153_v12 = vadd.f32 %v2152_v56, %v2129_v15 }
 0x17e   : > { %v2162_v31 = vadd.f32 %v2161_v26, %v2133_v39  ;;  %v2171_v7 = vadd.f32 %v2170_v17, %v2137_v28  ;;  %v2180_v42 = vadd.f32 %v2179_v48, %v2141_v0  ;;  %2453 = vst [vmem:[%s2661_s18 + $0x70] sm:$0x1f] %v2119_v4 }
 0x17f   : > { %v2145_v34 = vadd.f32 %v2144_v6, %v2126_v54  ;;  %v2154_v13 = vadd.f32 %v2153_v12, %v2130_v29 }
 0x180   : > { %v2163_v47 = vadd.f32 %v2162_v31, %v2134_v25  ;;  %v2172_v23 = vadd.f32 %v2171_v7, %v2138_v5  ;;  %v2181_v44 = vadd.f32 %v2180_v42, %v2142_v27 }
 0x181   : > { %v2146_v52 = vrot.slane %v2145_v34, 4  ;;  %v2155_v43 = vrot.slane %v2154_v13, 4 }
 0x182   : > { %v2164_v20 = vrot.slane %v2163_v47, 4  ;;  %v2173_v63 = vrot.slane %v2172_v23, 4  ;;  %v2182_v46 = vrot.slane %v2181_v44, 4 }
 0x183   : > { %v2147_v8 = vadd.f32 %v2146_v52, %v2145_v34  ;;  %v2156_v61 = vadd.f32 %v2155_v43, %v2154_v13 }
 0x184   : > { %v2165_v22 = vadd.f32 %v2164_v20, %v2163_v47  ;;  %v2174_v49 = vadd.f32 %v2173_v63, %v2172_v23  ;;  %v2183_v45 = vadd.f32 %v2182_v46, %v2181_v44 }
 0x185   : > { %v2148_v37 = vrot.slane %v2147_v8, 2  ;;  %v2157_v60 = vrot.slane %v2156_v61, 2 }
 0x186   : > { %v2166_v50 = vrot.slane %v2165_v22, 2  ;;  %v2175_v62 = vrot.slane %v2174_v49, 2  ;;  %v2184_v53 = vrot.slane %v2183_v45, 2 }
 0x187   : > { %v2149_v51 = vadd.f32 %v2148_v37, %v2147_v8  ;;  %v2158_v16 = vadd.f32 %v2157_v60, %v2156_v61 }
 0x188   : > { %v2167_v24 = vadd.f32 %v2166_v50, %v2165_v22  ;;  %v2176_v41 = vadd.f32 %v2175_v62, %v2174_v49  ;;  %v2185_v19 = vadd.f32 %v2184_v53, %v2183_v45 }
 0x189   : > { %v2150_v58 = vrot.slane %v2149_v51, 1  ;;  %v2159_v10 = vrot.slane %v2158_v16, 1 }
 0x18a   : > { %v2168_v1 = vrot.slane %v2167_v24, 1  ;;  %v2177_v3 = vrot.slane %v2176_v41, 1  ;;  %v2186_v9 = vrot.slane %v2185_v19, 1 }
 0x18b   : > { %v2151_v2 = vadd.f32 %v2150_v58, %v2149_v51  ;;  %v2160_v32 = vadd.f32 %v2159_v10, %v2158_v16 }
 0x18c   : > { %v2169_v15 = vadd.f32 %v2168_v1, %v2167_v24  ;;  %v2178_v18 = vadd.f32 %v2177_v3, %v2176_v41  ;;  %v2187_v54 = vadd.f32 %v2186_v9, %v2185_v19 }
 0x18d   : > { %v2193_v29 = vsel %vm720_vm8, %v2160_v32, %v2151_v2 }
 0x18e   : > { %v2194_v14 = vsel %vm722_vm11, %v2169_v15, %v2193_v29 }
 0x18f   : > { %v2195_v21 = vsel %vm724_vm10, %v2178_v18, %v2194_v14 }
 0x190   : > { %v2196_v33 = vsel %vm726_vm15, %v2187_v54, %v2195_v21 }
 0x191   : > { %v2198_v36 = vadd.f32 %v2454_v59, %v2196_v33 }
 0x193   : > { %2455 = vst [vmem:[%s2661_s18 + $0x78] sm:$0x1f] %v2198_v36 }
 0x194 PF: > { %s16_s25 = sadd.s32 1, %s2578_s25   ;;  %s4277_s21 = smov %s2570_s23 }
 0x195   : > { %p13_p9 = scmp.ge.s32.totalorder %s16_s25, 6   ;;  %s4278_s22 = smov %s2574_s24 }
 0x196   : > { %s4279_s23 = smov %s4282_s26  ;;  %s4280_s24 = smov %s4286_s27 }
 0x197   :  { %15 = sbr.rel (!%p13_p9) target bundleno = 3 (0x3), region = 108 }

</bundles_post_ra>
